<compile_context>
chip_gen: v6e
topology: v6e:2x2x1
jax: 0.10.0
libtpu: 0.0.40
codegen_flags: <defaults>
</compile_context>

<pallas_src>
import math

import jax
import jax.numpy as jnp
from jax.experimental import pallas as pl
from jax.experimental.pallas import tpu as pltpu


WIDTH = 36
LANE = 128
PACK = math.lcm(WIDTH, LANE) // WIDTH          # 32 x-rows per lane-dense output row
PACKED_COLS = PACK * WIDTH                     # 1152 = 9 * 128 (fully lane-dense)
ROW_ALIGN = 8 * PACK                           # 256: keeps sublane dim a multiple of 8
MAX_TILE_ROWS = 16384                          # ~5 MiB double-buffered VMEM: safe on v5e/v6e/v7x
MIN_PALLAS_ROWS = 1024                         # below this, XLA's fused broadcast wins


def _linear_dense_kernel(x_ref, w_ref, b_ref, o_ref):
    # x_ref: (R, 32)   w_ref: (32, 1152)   b_ref: (1, 1152)   o_ref: (R, 1152)
    # One K=32 MXU matmul per tile performs the repeat-by-36 *and* the scale;
    # every output vreg / DMA row is 100% lane-dense.  HIGHEST precision keeps
    # the single nonzero product per output exact to ~f32.
    acc = jnp.dot(
        x_ref[...],
        w_ref[...],
        preferred_element_type=jnp.float32,
        precision=jax.lax.Precision.HIGHEST,
    )
    o_ref[...] = (acc + b_ref[...]).astype(o_ref.dtype)


def _round_up(v, mult):
    return ((v + mult - 1) // mult) * mult


def _pick_tile_rows(m_rows):
    # Aim for >= 4 grid steps (v7x 2-TC split + pipelining depth), tile a
    # multiple of 256 rows (so the packed sublane dim is a multiple of 8),
    # capped at MAX_TILE_ROWS for VMEM headroom on every generation.
    target = _round_up(pl.cdiv(m_rows, 4), ROW_ALIGN)
    return max(ROW_ALIGN, min(MAX_TILE_ROWS, target))


def _pack_constants(weight, bias, dtype):
    """Build the resident lane-tiled constants (done once, outside the kernel).

    W_dense[i, q] = W[q % WIDTH] if q // WIDTH == i else 0      (PACK, 1152)
    b_tile[0, q]  = b[q % WIDTH]                                 (1, 1152)
    """
    w_flat = weight.reshape(-1).astype(dtype)          # (WIDTH,)
    b_flat = bias.reshape(-1).astype(dtype)            # (WIDTH,)
    q = jnp.arange(PACKED_COLS)
    w_dense = jnp.where(
        (q // WIDTH)[None, :] == jnp.arange(PACK)[:, None],
        jnp.take(w_flat, q % WIDTH)[None, :],
        jnp.zeros((), dtype),
    )
    b_tile = jnp.tile(b_flat, PACK).reshape(1, PACKED_COLS)
    return w_dense.astype(dtype), b_tile.astype(dtype)


def _branch2_pallas(x2d, w_dense, b_tile, out_dtype):
    m = x2d.shape[0]
    # Pad only up to the next multiple of PACK (<= 31 rows, only when ragged).
    m32 = _round_up(m, PACK)
    if m32 != m:
        x2d = jnp.pad(x2d, ((0, m32 - m), (0, 0)))

    packed_rows = m32 // PACK
    xr = x2d.reshape(packed_rows, PACK)                # pure reshape, no copy

    tile_rows = _pick_tile_rows(m32)
    r_blk = tile_rows // PACK                          # multiple of 8
    grid = (pl.cdiv(packed_rows, r_blk),)

    out = pl.pallas_call(
        _linear_dense_kernel,
        out_shape=jax.ShapeDtypeStruct((packed_rows, PACKED_COLS), out_dtype),
        grid=grid,
        in_specs=[
            pl.BlockSpec((r_blk, PACK), lambda i: (i, 0)),          # x tile, pipelined
            pl.BlockSpec((PACK, PACKED_COLS), lambda i: (0, 0)),    # W_dense, resident
            pl.BlockSpec((1, PACKED_COLS), lambda i: (0, 0)),       # bias row, resident
        ],
        out_specs=pl.BlockSpec((r_blk, PACKED_COLS), lambda i: (i, 0)),
        compiler_params=pltpu.CompilerParams(
            dimension_semantics=("parallel",)),                     # v7x: 2 TCs split M
        cost_estimate=pl.CostEstimate(
            flops=2 * packed_rows * PACK * PACKED_COLS,
            bytes_accessed=(m32 * 4 + m32 * WIDTH * 4
                            + PACK * PACKED_COLS * 4 + PACKED_COLS * 4),
            transcendentals=0),
    )(xr, w_dense, b_tile)

    out = out.reshape(m32, WIDTH)                      # pure reshape of the same buffer
    return out[:m] if m32 != m else out


def branch2_forward(x, weight, bias, *, force_pallas=False):
    """x: (..., 1); weight: (WIDTH, 1); bias: (WIDTH,) -> (..., WIDTH)."""
    assert x.shape[-1] == 1
    lead_shape = x.shape[:-1]
    m = math.prod(lead_shape) if lead_shape else 1
    out_dtype = jnp.promote_types(x.dtype, weight.dtype)

    x2d = x.reshape(m, 1).astype(out_dtype)

    if force_pallas or m >= MIN_PALLAS_ROWS:
        w_dense, b_tile = _pack_constants(weight, bias, out_dtype)
        out = _branch2_pallas(x2d, w_dense, b_tile, out_dtype)
    else:
        # Launch-overhead-dominated regime: let XLA fuse the broadcast FMA.
        out = (x2d * weight.reshape(1, WIDTH).astype(out_dtype)
               + bias.reshape(1, WIDTH).astype(out_dtype))

    return out.reshape(*lead_shape, WIDTH)


def init_params(key, width):
    # Deterministic init mimicking nn.Linear(1, width): U(-1, 1) since fan_in=1.
    kw, kb = jax.random.split(key)
    weight = jax.random.uniform(kw, (width, 1), jnp.float32, minval=-1.0, maxval=1.0)
    bias = jax.random.uniform(kb, (width,), jnp.float32, minval=-1.0, maxval=1.0)
    return weight, bias


if __name__ == "__main__":
    key = jax.random.PRNGKey(0)
    k_xs, k_xl, k_p = jax.random.split(key, 3)

    weight, bias = init_params(k_p, WIDTH)

    # 1) Small shape consistent with the module (batch=2, seq=8, in_features=1).
    #    Goes through the fused-jnp fast path (overhead gate).
    x_small = jax.random.normal(k_xs, (2, 8, 1), dtype=jnp.float32)
    y_small = jax.block_until_ready(branch2_forward(x_small, weight, bias))
    ref_small = x_small * weight[:, 0] + bias
    assert y_small.shape == (2, 8, WIDTH)
    assert jnp.allclose(y_small, ref_small, atol=1e-5, rtol=1e-5)

    # 2) Larger input to exercise the tiled, lane-dense Pallas kernel
    #    (M = 8192 rows -> packed (256, 1152) output, grid of 4 steps).
    x_large = jax.random.normal(k_xl, (8, 1024, 1), dtype=jnp.float32)
    y_large = jax.block_until_ready(
        branch2_forward(x_large, weight, bias, force_pallas=True))
    ref_large = x_large * weight[:, 0] + bias
    assert y_large.shape == (8, 1024, WIDTH)
    assert jnp.allclose(y_large, ref_large, atol=1e-5, rtol=1e-4)

    print("KERNEL_OK")
</pallas_src>

<mosaic_0001>
module attributes {stable_mosaic.version = 11 : i64} {
  func.func @_linear_dense_kernel(%arg0: i32, %arg1: memref<64x32xf32, #tpu.memory_space<vmem>>, %arg2: memref<32x1152xf32, #tpu.memory_space<vmem>>, %arg3: memref<1x1152xf32, #tpu.memory_space<vmem>>, %arg4: memref<64x1152xf32, #tpu.memory_space<vmem>>) attributes {dimension_semantics = [#tpu.dimension_semantics<parallel>], iteration_bounds = array<i64: 4>, scalar_prefetch = 0 : i64, scratch_operands = 0 : i64, tpu.core_type = #tpu.core_type<tc>, window_params = [{transform_indices = @transform_0, window_bounds = array<i64: 64, 32>}, {pipeline_mode = #tpu.pipeline_mode<synchronous>, transform_indices = @transform_1, window_bounds = array<i64: 32, 1152>}, {pipeline_mode = #tpu.pipeline_mode<synchronous>, transform_indices = @transform_2, window_bounds = array<i64: 1, 1152>}, {transform_indices = @transform_3, window_bounds = array<i64: 64, 1152>}]} {
    %c0 = arith.constant 0 : index
    %c0_0 = arith.constant 0 : index
    %0 = vector.load %arg1[%c0, %c0_0] : memref<64x32xf32, #tpu.memory_space<vmem>>, vector<64x32xf32>
    %c0_1 = arith.constant 0 : index
    %c0_2 = arith.constant 0 : index
    %1 = vector.load %arg2[%c0_1, %c0_2] : memref<32x1152xf32, #tpu.memory_space<vmem>>, vector<32x1152xf32>
    %cst = arith.constant dense<0.000000e+00> : vector<64x1152xf32>
    %2 = tpu.matmul %0, %1, %cst {dimension_numbers = #tpu.dot_dimension_numbers<[1], [0], [0], [1], [0, 0, 1, 1], [], []>, precision = #tpu.contract_precision<fp32>} : vector<64x32xf32>, vector<32x1152xf32>, vector<64x1152xf32> -> vector<64x1152xf32>
    %c0_3 = arith.constant 0 : index
    %c0_4 = arith.constant 0 : index
    %3 = vector.load %arg3[%c0_3, %c0_4] : memref<1x1152xf32, #tpu.memory_space<vmem>>, vector<1x1152xf32>
    %4 = vector.broadcast %3 : vector<1x1152xf32> to vector<64x1152xf32>
    %5 = arith.addf %2, %4 : vector<64x1152xf32>
    %c0_5 = arith.constant 0 : index
    %c0_6 = arith.constant 0 : index
    %6 = vector.load %arg4[%c0_5, %c0_6] : memref<64x1152xf32, #tpu.memory_space<vmem>>, vector<64x1152xf32>
    tpu.vector_store %arg4[%c0_5, %c0_6], %5 {strides = array<i32>} : memref<64x1152xf32, #tpu.memory_space<vmem>>, vector<64x1152xf32>,
    return
  }
  func.func @transform_0(%arg0: i32) -> (i32, i32) {
    %c0_i32 = arith.constant 0 : i32
    %c0_i32_0 = arith.constant 0 : i32
    return %arg0, %c0_i32 : i32, i32
  }
  func.func @transform_1(%arg0: i32) -> (i32, i32) {
    %c0_i32 = arith.constant 0 : i32
    %c0_i32_0 = arith.constant 0 : i32
    %c0_i32_1 = arith.constant 0 : i32
    return %c0_i32, %c0_i32_0 : i32, i32
  }
  func.func @transform_2(%arg0: i32) -> (i32, i32) {
    %c0_i32 = arith.constant 0 : i32
    %c0_i32_0 = arith.constant 0 : i32
    %c0_i32_1 = arith.constant 0 : i32
    return %c0_i32, %c0_i32_0 : i32, i32
  }
  func.func @transform_3(%arg0: i32) -> (i32, i32) {
    %c0_i32 = arith.constant 0 : i32
    %c0_i32_0 = arith.constant 0 : i32
    return %arg0, %c0_i32 : i32, i32
  }
}

</mosaic_0001>

<bundles_post_ra>
// kernel: tpu_custom_call.1
= control target key start
LH: loop header
LB: loop body
LE: loop exit
PB: predicated region body
PF: predicated region fallthrough
CT: control target
= control target key end

     0   :  { %8 = vsyncpa [#allocation3], 0  ;;  %s7419_s0 = inlined_call_operand.vmem [shape: f32[256,32], index: 0, kind: input, shape index: {}]   ;;  %s7420_s1 = inlined_call_operand.hbm [shape: f32[32,1152], index: 1, kind: input, shape index: {}]   ;;  %s7421_s2 = inlined_call_operand.hbm [shape: f32[1,1152], index: 2, kind: input, shape index: {}]   ;;  %s7422_s3 = inlined_call_operand.hbm [shape: f32[256,1152], index: 3, kind: output, shape index: {}]  }
   0x1   :  { %9 = vsyncpa [#allocation6], 0 }
   0x2   :  { %10 = vsyncpa [#allocation4], 0 }
   0x3   :  { %12 = vsyncpa [#allocation4 + $0x1], 0  ;;  %s5245_s12 = smov 0   ;;  %s5247_s13 = smov 0  }
   0x4   :  { %s5249_s14 = smov 0   ;;  %s5251_s15 = smov 0  }
   0x5 LB: > { %s5266_s16 = sadd.s32 4294967295, %s5215_s15   ;;  %s4819_s17 = sadd.s32 4294967294, %s5215_s15   ;;  %s5215_s15 = sphi %s5251_s15, %s7832_s15   ;;  %s5211_s14 = sphi %s5249_s14, %s7831_s14   ;;  %s5207_s13 = sphi %s5247_s13, %s7830_s13   ;;  %s5203_s12 = sphi %s5245_s12, %s7829_s12  }
   0x6   : > { %s5270_s18 = sadd.s32 1, %s5215_s15   ;;  %s93_s19 = sadd.s32 1, %s5211_s14 }
   0x7   : > { %s90_s20 = ssub.s32 %s5215_s15, %s5270_s18  ;;  %p103_p0 = scmp.ne.s32.totalorder %s5211_s14, %s5207_s13 }
   0x8   : > { %p91_p1 = scmp.eq.s32.totalorder %s90_s20, 0  ;;  %p104_p2 = scmp.eq.s32.totalorder %s5266_s16, 3 }
   0x9   : > { %p109_p3 = scmp.ne.s32.totalorder %s5207_s13, %s5203_s12  ;;  %p110_p4 = scmp.eq.s32.totalorder %s4819_s17, 3 }
   0xa   : > { %s5281_s21 = scalar_select %p91_p1, %s5211_s14, %s93_s19  }
   0xb   : > { %p5283_p5 = por %p104_p2, %p103_p0  ;;  %p5287_p6 = por %p110_p4, %p109_p3 }
   0xc   : > { %p4820_p7 = scmp.ge.s32.totalorder %s5215_s15, 1  ;;  %p117_p8 = scmp.lt.s32.totalorder %s5215_s15, 5 }
   0xd   : > { %p7423_p9 = scmp.eq.s32.totalorder %s5266_s16, 0  ;;  %s5217_s25 = smov [#allocation2]  }
   0xe   : > { %p5294_p10 = pnand %p4820_p7, %p117_p8  ;;  %s129_s26 = sshll.u32 %s5217_s25, 4  ;;  %s130_s26 = int_to_ptr.vmem [resolvable:$true] %s129_s26 }
   0xf   : > { %s5218_s28 = smov [#allocation5]   ;;  %s5106_s30 = scalar_lea.vmem %s130_s26, 4608 }
  0x10   : > { %p5039_p11 = pneg %p5294_p10  ;;  %s143_s29 = sshll.u32 %s5218_s28, 4  ;;  %s144_s29 = int_to_ptr.vmem [resolvable:$true] %s143_s29 }
  0x11   : > { %p5107_p0 = scmp.ne.s32.totalorder %s130_s26, %s5106_s30  ;;  %p5114_p3 = scmp.lt.s32.totalorder %s130_s26, %s130_s26 }
  0x12   : > { %p5302_p12 = pnand %p7423_p9, %p5039_p11  ;;  %p5115_p4 = scmp.lt.s32.totalorder %s5106_s30, %s5106_s30 }
  0x14   : > { %p5097_p13 = pneg %p5302_p12  ;;  %p5116_p7 = por %p5115_p4, %p5114_p3 }
  0x16   : > { %p5109_p1 = pnand %p5107_p0, %p5097_p13 }
  0x18   : > { %p5110_p2 = pneg %p5109_p1 }
  0x1a   : > { %p5117_p8 = pnand %p5116_p7, %p5110_p2 }
  0x1c   : > { %5120 = shalt.err (!%p5117_p8)
}
  0x1d   : > { %s5219_s4 = smov 1152   ;;  %s5220_s5 = smov 72  }
  0x1e   : > { %5042 = dma.hbm_to_vmem [thread:$0]  (!%p5302_p12), %s7420_s1, 4608, %s130_s26, [#allocation3], %s5219_s4, %s5219_s4, %s5220_s5  }
  0x1f   : > { %s5132_s8 = scalar_lea.vmem %s144_s29, 144  ;;  %s5139_s9 = scalar_lea.vmem %s144_s29, 160 }
  0x20   : > { %p5133_p11 = scmp.ne.s32.totalorder %s144_s29, %s5132_s8  ;;  %p5140_p9 = scmp.lt.s32.totalorder %s144_s29, %s144_s29 }
  0x21   : > { %p5141_p3 = scmp.lt.s32.totalorder %s5139_s9, %s5132_s8 }
  0x22   : > { %p5135_p0 = pnand %p5133_p11, %p5097_p13 }
  0x23   : > { %p5142_p2 = por %p5141_p3, %p5140_p9 }
  0x24   : > { %p5136_p1 = pneg %p5135_p0 }
  0x26   : > { %p5143_p4 = pnand %p5142_p2, %p5136_p1 }
  0x28   : > { %5146 = shalt.err (!%p5143_p4)
}
  0x29   : > { %5045 = dma.hbm_to_vmem [thread:$0]  (!%p5302_p12), %s7421_s2, 144, %s144_s29, [#allocation6]  }
  0x2a   : > { %165 = sbr.rel (%p5294_p10) target bundleno = 716 (0x2cc), region = 32 }
  0x2f   : > { %p7531_p7 = scmp.eq.s32.totalorder %s5266_s16, 0 }
  0x31   : > { %5190 = dma.done.wait (%p7531_p7), [#allocation3], 4608   ;;  %p7532_p13 = pmov %p7531_p7 }
  0x32   : > { %p7533_p8 = pmov %p7531_p7 }
  0x33   : > { %5192 = vsyncadd (%p7532_p13), [#allocation3], 4294962688 }
  0x34   : > { %5194 = dma.done.wait (%p7533_p8), [#allocation6], 144   ;;  %p7534_p9 = pmov %p7531_p7 }
  0x35   : > { %s4827_s17 = sshll.u32 %s5266_s16, 3  ;;  %v7500_v0 = vmov 0.0   ;;  %v236_v1 = vld [vmem:[#allocation2 + $0xe0] sm:$0xff]  ;;  %v235_v2 = vld [vmem:[#allocation2 + $0xd8] sm:$0xff]  ;;  %vm293_vm0 = vcmask 261120   ;;  %v226_v7 = vld [vmem:[#allocation2 + $0x90] sm:$0xff] }
  0x36   : > { %5196 = vsyncadd (%p7534_p9), [#allocation6], 4294967152  ;;  %390 = vmatprep.mubr.f32.mxu0 %v7500_v0  ;;  %p194_p12 = scmp.lt.s32.totalorder %s4827_s17, 31  ;;  %583 = vmatprep.mubr.f32.mxu1 %v7500_v0  ;;  %v227_v3 = vld [vmem:[#allocation2 + $0x98] sm:$0xff]  ;;  %v5342_v4 = vand.u32 4294901760, %v236_v1  ;;  %v5344_v5 = vand.u32 4294901760, %v235_v2 }
  0x37   : > { %v5346_v6 = vand.u32 4294901760, %v227_v3  ;;  %v218_v8 = vld [vmem:[#allocation2 + $0x50] sm:$0xff]  ;;  %v217_v9 = vld [vmem:[#allocation2 + $0x48] sm:$0xff]  ;;  %v5348_v10 = vand.u32 4294901760, %v226_v7  ;;  %v208_v14 = vld [vmem:[#allocation2] sm:$0xff]  ;;  %s190_s26 = sand.u32 1, %s5207_s13  }
  0x38   : > { %s7834_s17 = smov (!%p194_p12, %s4827_s17), 31  ;;  %v5350_v11 = vand.u32 4294901760, %v218_v8  ;;  %v5352_v12 = vand.u32 4294901760, %v217_v9  ;;  %v209_v13 = vld [vmem:[#allocation2 + $0x8] sm:$0xff]  ;;  %343 = vmatprep.subr.mxu0 %v5342_v4  ;;  %v5358_v17 = vand.u32 4294901760, %v208_v14  ;;  %v5361_v18 = vsub.f32 %v236_v1, %v5342_v4  ;;  %s6299_s27 = smul.u32 576, %s190_s26 }
  0x39   : > { %s4828_s19 = sshll.u32 %s7834_s17, 3  ;;  %v5356_v16 = vand.u32 4294901760, %v209_v13  ;;  %345 = vmatpush1.msra.mxu0 %v5344_v5  ;;  %v5369_v22 = vsub.f32 %v235_v2, %v5344_v5  ;;  %v5372_v23 = vsub.f32 %v227_v3, %v5346_v6  ;;  %v5375_v24 = vsub.f32 %v226_v7, %v5348_v10  ;;  %s5028_s29 = smul.u32 9216, %s5266_s16 }
  0x3a   : > { %s5340_s25 = scalar_lea.vmem %s7419_s0, %s4828_s19  ;;  %347 = vmatprep.subr.mxu0 %v5346_v6  ;;  %v505_v25 = vand.u32 4294901760, %v5361_v18  ;;  %v5380_v26 = vsub.f32 %v218_v8, %v5350_v11  ;;  %v5384_v28 = vsub.f32 %v217_v9, %v5352_v12  ;;  %v5442_v59 = vsub.f32 %v208_v14, %v5358_v17  ;;  %s6347_s28 = scalar_lea.vmem [#allocation7], %s6299_s27 }
  0x3b   : > { %v200_v15 = vld [vmem:[%s5340_s25] sm:$0xff]  ;;  %v201_v20 = vld [vmem:[%s5340_s25 + $0x8] sm:$0xff]  ;;  %349 = vmatpush1.msra.mxu0 %v5348_v10  ;;  %v511_v30 = vand.u32 4294901760, %v5369_v22  ;;  %v517_v31 = vand.u32 4294901760, %v5372_v23  ;;  %v523_v32 = vand.u32 4294901760, %v5375_v24  ;;  %v202_v45 = vld [vmem:[%s5340_s25 + $0x10] sm:$0xff]  ;;  %v5433_v54 = vsub.f32 %v209_v13, %v5356_v16  ;;  %s7371_s6 = scalar_lea.hbm %s7422_s3, %s5028_s29 }
  0x3c   : > { %v295_v19 = vsel %vm293_vm0, %v200_v15, 0  ;;  %v298_v27 = vsel %vm293_vm0, %v201_v20, 0  ;;  %351 = vmatprep.subr.mxu0 %v5350_v11  ;;  %v506_v33 = vsub.f32 %v5361_v18, %v505_v25  ;;  %v529_v34 = vand.u32 4294901760, %v5380_v26  ;;  %v203_v46 = vld [vmem:[%s5340_s25 + $0x18] sm:$0xff]  ;;  %v204_v55 = vld [vmem:[%s5340_s25 + $0x20] sm:$0xff]  ;;  %v205_v56 = vld [vmem:[%s5340_s25 + $0x28] sm:$0xff] }
  0x3d   : > { %v5366_v21 = vand.u32 4294901760, %v295_v19  ;;  %v5398_v35 = vand.u32 4294901760, %v298_v27  ;;  %v535_v36 = vand.u32 4294901760, %v5384_v28  ;;  %353 = vmatpush1.msra.mxu0 %v5352_v12  ;;  %v512_v38 = vsub.f32 %v5369_v22, %v511_v30  ;;  %v206_v57 = vld [vmem:[%s5340_s25 + $0x30] sm:$0xff]  ;;  %s4735_s30 = sshll.u32 %s6347_s28, 4  ;;  %s7379_s16 = scalar_lea.sflag [#allocation4], %s190_s26  ;;  %s7373_s30 = int_to_ptr.vmem [resolvable:$true] %s4735_s30 }
  0x3e   : > { %v518_v39 = vsub.f32 %v5372_v23, %v517_v31  ;;  %v524_v40 = vsub.f32 %v5375_v24, %v523_v32  ;;  %355 = vmatprep.subr.mxu0 %v5356_v16  ;;  %v507_v41 = vand.u32 4294901760, %v506_v33  ;;  %v530_v42 = vsub.f32 %v5380_v26, %v529_v34  ;;  %s5147_s7 = scalar_lea.vmem %s7373_s30, 9216  ;;  %s5222_s8 = smov [#allocation7]  }
  0x3f   : > { %v5388_v29 = vsub.f32 %v295_v19, %v5366_v21  ;;  %v5419_v43 = vsub.f32 %v298_v27, %v5398_v35  ;;  %v536_v44 = vsub.f32 %v5384_v28, %v535_v36  ;;  %357 = vmatpush1.msra.mxu0 %v5358_v17  ;;  %v513_v48 = vand.u32 4294901760, %v512_v38  ;;  %p5148_p10 = scmp.ne.s32.totalorder %s7373_s30, %s5147_s7  ;;  %s5151_s9 = sshll.u32 %s5222_s8, 4  ;;  %s5152_s9 = int_to_ptr.vmem [resolvable:$false] %s5151_s9 }
  0x40   : > { %v519_v49 = vand.u32 4294901760, %v518_v39  ;;  %v525_v50 = vand.u32 4294901760, %v524_v40  ;;  %508 = vmatprep.subr.mxu1 %v507_v41  ;;  %v531_v51 = vand.u32 4294901760, %v530_v42  ;;  %666 = vmatprep.subr.mxu0 %v5361_v18  ;;  %v301_v60 = vsel %vm293_vm0, %v202_v45, 0  ;;  %v207_v41 = vld [vmem:[%s5340_s25 + $0x38] sm:$0xff]  ;;  %s5153_s10 = scalar_lea.vmem %s5152_s9, 18432  ;;  %p5154_p1 = scmp.lt.s32.totalorder %s7373_s30, %s5152_s9 }
  0x41   : > { %7535 = vst [vmem:[#allocation11_spill] sm:$0xff] %v5388_v29  ;;  %v5403_v37 = vand.u32 4294901760, %v5388_v29  ;;  %7537 = vst [vmem:[#allocation13_spill] sm:$0xff] %v5419_v43  ;;  %v5430_v52 = vand.u32 4294901760, %v5419_v43  ;;  %v537_v53 = vand.u32 4294901760, %v536_v44  ;;  %514 = vmatpush1.msra.mxu1 %v513_v48  ;;  %v304_v61 = vsel %vm293_vm0, %v203_v46, 0  ;;  %p5149_p11 = pnand %p5148_p10, %p5283_p5  ;;  %p5155_p3 = scmp.lt.s32.totalorder %s5153_s10, %s5147_s7 }
  0x42   : > { %520 = vmatprep.subr.mxu1 %v519_v49  ;;  %v541_v63 = vand.u32 4294901760, %v5433_v54  ;;  %v5449_v1 = vand.u32 4294901760, %v301_v60  ;;  %v5451_v2 = vand.u32 4294901760, %v304_v61  ;;  %v547_v3 = vand.u32 4294901760, %v5442_v59 }
  0x43   : > { %7536 = vst [vmem:[#allocation12_spill] sm:$0xff] %v5403_v37  ;;  %v394_v47 = vsub.f32 %v5388_v29, %v5403_v37  ;;  %7538 = vst [vmem:[#allocation14_spill] sm:$0xff] %v5430_v52  ;;  %v405_v62 = vsub.f32 %v5419_v43, %v5430_v52  ;;  %526 = vmatpush1.msra.mxu1 %v525_v50  ;;  %v307_v7 = vsel %vm293_vm0, %v204_v55, 0  ;;  %v310_v8 = vsel %vm293_vm0, %v205_v56, 0  ;;  %p5150_p0 = pneg %p5149_p11  ;;  %p5156_p2 = por %p5155_p3, %p5154_p1 }
  0x44   : > { %7540 = vst [vmem:[#allocation16_spill] sm:$0xff] %v5451_v2  ;;  %v313_v9 = vsel %vm293_vm0, %v206_v57, 0  ;;  %532 = vmatprep.subr.mxu1 %v531_v51  ;;  %v542_v14 = vsub.f32 %v5433_v54, %v541_v63  ;;  %v5465_v15 = vsub.f32 %v301_v60, %v5449_v1  ;;  %v5468_v19 = vsub.f32 %v304_v61, %v5451_v2 }
  0x45   : > { %v5439_v58 = vand.u32 4294901760, %v394_v47  ;;  %v5459_v13 = vand.u32 4294901760, %v405_v62  ;;  %538 = vmatpush1.msra.mxu1 %v537_v53  ;;  %v548_v20 = vsub.f32 %v5442_v59, %v547_v3  ;;  %v5474_v27 = vand.u32 4294901760, %v307_v7  ;;  %p5157_p4 = pnand %p5156_p2, %p5150_p0 }
  0x46   : > { %7542 = vst [vmem:[#allocation18_spill] sm:$0xff] %v5465_v15  ;;  %7543 = vst [vmem:[#allocation19_spill] sm:$0xff] %v5468_v19  ;;  %v5476_v33 = vand.u32 4294901760, %v310_v8  ;;  %v543_v38 = vand.u32 4294901760, %v542_v14  ;;  %v5479_v39 = vand.u32 4294901760, %v5465_v15  ;;  %v5482_v40 = vand.u32 4294901760, %v5468_v19 }
  0x47   : > { %7539 = vst [vmem:[#allocation15_spill] sm:$0xff] %v5439_v58  ;;  %396 = vmatmul.mubr.f32.vlgmr.msra.gmra.mxu0 %v5439_v58  ;;  %7541 = vst [vmem:[#allocation17_spill] sm:$0xff] %v5459_v13  ;;  %v549_v42 = vand.u32 4294901760, %v548_v20  ;;  %v5488_v44 = vsub.f32 %v307_v7, %v5474_v27  ;;  %v5490_v45 = vand.u32 4294901760, %v313_v9  ;;  %v316_v50 = vsel %vm293_vm0, %v207_v41, 0 }
  0x48   : > { %401 = vmatprep.mubr.f32.mxu0 %v7500_v0  ;;  %669 = vmatpush1.msra.mxu0 %v5369_v22  ;;  %7544 = vst [vmem:[#allocation20_spill] sm:$0xff] %v5474_v27  ;;  %7545 = vst [vmem:[#allocation21_spill] sm:$0xff] %v5476_v33  ;;  %v416_v46 = vsub.f32 %v5465_v15, %v5479_v39  ;;  %v427_v47 = vsub.f32 %v5468_v19, %v5482_v40  ;;  %v5523_v60 = vand.u32 4294901760, %v316_v50 }
  0x49   : > { %7546 = vst [vmem:[#allocation22_spill] sm:$0xff] %v5479_v39  ;;  %7547 = vst [vmem:[#allocation23_spill] sm:$0xff] %v5482_v40  ;;  %672 = vmatprep.subr.mxu0 %v5372_v23  ;;  %544 = vmatprep.subr.mxu1 %v543_v38  ;;  %v5498_v48 = vsub.f32 %v310_v8, %v5476_v33  ;;  %v5502_v49 = vand.u32 4294901760, %v5488_v44  ;;  %v5512_v53 = vsub.f32 %v313_v9, %v5490_v45 }
  0x4a   : > { %7548 = vst [vmem:[#allocation24_spill] sm:$0xff] %v5488_v44  ;;  %7549 = vst [vmem:[#allocation25_spill] sm:$0xff] %v5490_v45  ;;  %550 = vmatpush1.msra.mxu1 %v549_v42  ;;  %675 = vmatpush1.msra.mxu0 %v5375_v24  ;;  %v5507_v51 = vand.u32 4294901760, %v416_v46  ;;  %v5515_v55 = vand.u32 4294901760, %v427_v47  ;;  %v5541_v8 = vsub.f32 %v316_v50, %v5523_v60 }
  0x4b   : > { %407 = vmatmul.mubr.f32.gmra.mxu0 %v5459_v13  ;;  %7550 = vst [vmem:[#allocation26_spill] sm:$0xff] %v5498_v48  ;;  %7551 = vst [vmem:[#allocation27_spill] sm:$0xff] %v5502_v49  ;;  %585 = vmatmul.mubr.f32.vlgmr.msra.gmra.mxu1 %v5366_v21  ;;  %v438_v56 = vsub.f32 %v5488_v44, %v5502_v49  ;;  %v5521_v57 = vand.u32 4294901760, %v5498_v48  ;;  %v5538_v7 = vand.u32 4294901760, %v5512_v53 }
  0x4c   : > { %412 = vmatprep.mubr.f32.mxu0 %v7500_v0  ;;  %810 = vmatprep.subr.mxu1 %v5342_v4  ;;  %7552 = vst [vmem:[#allocation28_spill] sm:$0xff] %v5507_v51  ;;  %7553 = vst [vmem:[#allocation29_spill] sm:$0xff] %v5512_v53  ;;  %v5555_v20 = vand.u32 4294901760, %v5541_v8 }
  0x4d   : > { %812 = vmatpush1.msra.mxu1 %v5344_v5  ;;  %590 = vmatprep.mubr.f32.mxu1 %v7500_v0  ;;  %7554 = vst [vmem:[#allocation30_spill] sm:$0xff] %v5515_v55  ;;  %7555 = vst [vmem:[#allocation31_spill] sm:$0xff] %v5521_v57  ;;  %v5532_v61 = vand.u32 4294901760, %v438_v56  ;;  %v449_v62 = vsub.f32 %v5498_v48, %v5521_v57  ;;  %v460_v14 = vsub.f32 %v5512_v53, %v5538_v7 }
  0x4e   : > { %814 = vmatprep.subr.mxu1 %v5346_v6  ;;  %7556 = vst [vmem:[#allocation32_spill] sm:$0xff] %v5523_v60  ;;  %678 = vmatprep.subr.mxu0 %v5380_v26  ;;  %7558 = vst [vmem:[#allocation34_spill] sm:$0xff] %v5538_v7  ;;  %v471_v41 = vsub.f32 %v5541_v8, %v5555_v20  ;;  %v211_v26 = vld [vmem:[#allocation2 + $0x18] sm:$0xff] }
  0x4f   : > { %418 = vmatmul.mubr.f32.gmra.mxu0 %v5507_v51  ;;  %816 = vmatpush1.msra.mxu1 %v5348_v10  ;;  %7557 = vst [vmem:[#allocation33_spill] sm:$0xff] %v5532_v61  ;;  %7559 = vst [vmem:[#allocation35_spill] sm:$0xff] %v5541_v8  ;;  %v5550_v9 = vand.u32 4294901760, %v449_v62  ;;  %v5566_v38 = vand.u32 4294901760, %v460_v14 }
  0x50   : > { %423 = vmatprep.mubr.f32.mxu0 %v7500_v0  ;;  %592 = vmatmul.mubr.f32.gmra.mxu1 %v5398_v35  ;;  %7561 = vst [vmem:[#allocation37_spill] sm:$0xff] %v5555_v20  ;;  %v5574_v18 = vand.u32 4294901760, %v471_v41 }
  0x51   : > { %597 = vmatprep.mubr.f32.mxu1 %v7500_v0  ;;  %681 = vmatpush1.msra.mxu0 %v5384_v28  ;;  %7560 = vst [vmem:[#allocation36_spill] sm:$0xff] %v5550_v9  ;;  %7562 = vst [vmem:[#allocation38_spill] sm:$0xff] %v5566_v38 }
  0x52   : > { %818 = vmatprep.subr.mxu1 %v5350_v11  ;;  %684 = vmatprep.subr.mxu0 %v5433_v54  ;;  %7563 = vst [vmem:[#allocation39_spill] sm:$0xff] %v5574_v18 }
  0x53   : > { %429 = vmatmul.mubr.f32.gmra.mxu0 %v5515_v55  ;;  %820 = vmatpush1.msra.mxu1 %v5352_v12 }
  0x54   : > { %434 = vmatprep.mubr.f32.mxu0 %v7500_v0  ;;  %599 = vmatmul.mubr.f32.gmra.mxu1 %v5449_v1 }
  0x55   : > { %604 = vmatprep.mubr.f32.mxu1 %v7500_v0  ;;  %687 = vmatpush1.msra.mxu0 %v5442_v59 }
  0x56   : > { %822 = vmatprep.subr.mxu1 %v5356_v16  ;;  %957 = vmatprep.subr.mxu0 %v505_v25 }
  0x57   : > { %440 = vmatmul.mubr.f32.gmra.mxu0 %v5532_v61  ;;  %824 = vmatpush1.msra.mxu1 %v5358_v17 }
  0x58   : > { %445 = vmatprep.mubr.f32.mxu0 %v7500_v0  ;;  %606 = vmatmul.mubr.f32.gmra.mxu1 %v5451_v2 }
  0x59   : > { %611 = vmatprep.mubr.f32.mxu1 %v7500_v0  ;;  %1100 = vmatprep.subr.mxu1 %v5342_v4  ;;  %v238_v4 = vld [vmem:[#allocation2 + $0xf0] sm:$0xff] }
  0x5a   : > { %v5580_v25 = vand.u32 4294901760, %v238_v4 }
  0x5b   : > { %451 = vmatmul.mubr.f32.gmra.mxu0 %v5550_v9 }
  0x5c   : > { %456 = vmatprep.mubr.f32.mxu0 %v7500_v0  ;;  %613 = vmatmul.mubr.f32.gmra.mxu1 %v5474_v27  ;;  %v5587_v42 = vsub.f32 %v238_v4, %v5580_v25 }
  0x5d   : > { %618 = vmatprep.mubr.f32.mxu1 %v7500_v0 }
  0x5e   : > { %v1391_v46 = vand.u32 4294901760, %v5587_v42 }
  0x5f   : > { %462 = vmatmul.mubr.f32.gmra.mxu0 %v5566_v38 }
  0x60   : > { %467 = vmatprep.mubr.f32.mxu0 %v7500_v0  ;;  %620 = vmatmul.mubr.f32.gmra.mxu1 %v5476_v33  ;;  %v1392_v22 = vsub.f32 %v5587_v42, %v1391_v46 }
  0x61   : > { %625 = vmatprep.mubr.f32.mxu1 %v7500_v0 }
  0x63   : > { %473 = vmatmul.mubr.f32.gmra.mxu0 %v5574_v18 }
  0x64   : > { %720 = vmatprep.mubr.f32.mxu0 %v7500_v0  ;;  %627 = vmatmul.mubr.f32.gmra.mxu1 %v5490_v45 }
  0x65   : > { %632 = vmatprep.mubr.f32.mxu1 %v7500_v0 }
  0x67   : > { %723 = vmatmul.mubr.f32.vlgmr.msra.gmra.mxu0 %v5388_v29 }
  0x68   : > { %728 = vmatprep.mubr.f32.mxu0 %v7500_v0  ;;  %961 = vmatpush1.msra.mxu0 %v511_v30 }
  0x69   : > { %634 = vmatmul.mubr.f32.gmra.mxu1 %v5523_v60  ;;  %965 = vmatprep.subr.mxu0 %v517_v31 }
  0x6a   : > { %857 = vmatprep.mubr.f32.mxu1 %v7500_v0  ;;  %969 = vmatpush1.msra.mxu0 %v523_v32 }
  0x6b   : > { %731 = vmatmul.mubr.f32.gmra.mxu0 %v5419_v43  ;;  %973 = vmatprep.subr.mxu0 %v529_v34  ;;  %v5655_v34 = vand.u32 4294901760, %v211_v26 }
  0x6c   : > { %736 = vmatprep.mubr.f32.mxu0 %v7500_v0  ;;  %977 = vmatpush1.msra.mxu0 %v535_v36  ;;  %v210_v36 = vld [vmem:[#allocation2 + $0x10] sm:$0xff] }
  0x6d   : > { %861 = vmatmul.mubr.f32.vlgmr.msra.gmra.mxu1 %v5403_v37  ;;  %981 = vmatprep.subr.mxu0 %v541_v63  ;;  %v5670_v47 = vand.u32 4294901760, %v210_v36  ;;  %v5675_v56 = vsub.f32 %v211_v26, %v5655_v34 }
  0x6e   : > { %1102 = vmatpush1.msra.mxu1 %v5344_v5  ;;  %866 = vmatprep.mubr.f32.mxu1 %v7500_v0  ;;  %v1393_v5 = vand.u32 4294901760, %v1392_v22 }
  0x6f   : > { %739 = vmatmul.mubr.f32.gmra.mxu0 %v5465_v15  ;;  %1104 = vmatprep.subr.mxu1 %v5346_v6  ;;  %v237_v6 = vld [vmem:[#allocation2 + $0xe8] sm:$0xff]  ;;  %v5687_v22 = vsub.f32 %v210_v36, %v5670_v47 }
  0x70   : > { %744 = vmatprep.mubr.f32.mxu0 %v7500_v0  ;;  %1106 = vmatpush1.msra.mxu1 %v5348_v10  ;;  %v229_v10 = vld [vmem:[#allocation2 + $0xa8] sm:$0xff] }
  0x71   : > { %870 = vmatmul.mubr.f32.gmra.mxu1 %v5430_v52  ;;  %1108 = vmatprep.subr.mxu1 %v5350_v11  ;;  %v228_v11 = vld [vmem:[#allocation2 + $0xa0] sm:$0xff]  ;;  %v5637_v23 = vand.u32 4294901760, %v229_v10  ;;  %v1433_v26 = vand.u32 4294901760, %v5687_v22 }
  0x72   : > { %875 = vmatprep.mubr.f32.mxu1 %v7500_v0  ;;  %1110 = vmatpush1.msra.mxu1 %v5352_v12  ;;  %v5634_v12 = vand.u32 4294901760, %v237_v6  ;;  %v5640_v24 = vand.u32 4294901760, %v228_v11 }
  0x73   : > { %747 = vmatmul.mubr.f32.gmra.mxu0 %v5468_v19  ;;  %1112 = vmatprep.subr.mxu1 %v5356_v16  ;;  %v220_v16 = vld [vmem:[#allocation2 + $0x60] sm:$0xff]  ;;  %v5653_v32 = vsub.f32 %v229_v10, %v5637_v23 }
  0x74   : > { %752 = vmatprep.mubr.f32.mxu0 %v7500_v0  ;;  %985 = vmatpush1.msra.mxu0 %v547_v3  ;;  %v5643_v28 = vand.u32 4294901760, %v220_v16  ;;  %v5647_v30 = vsub.f32 %v237_v6, %v5634_v12  ;;  %v5659_v54 = vsub.f32 %v228_v11, %v5640_v24  ;;  %v7427_v6 = vand.u32 4294901760, %v5675_v56 }
  0x75   : > { %879 = vmatmul.mubr.f32.gmra.mxu1 %v5479_v39  ;;  %1229 = vmatprep.subr.mxu0 %v5580_v25  ;;  %v1403_v50 = vand.u32 4294901760, %v5653_v32 }
  0x76   : > { %884 = vmatprep.mubr.f32.mxu1 %v7500_v0  ;;  %1114 = vmatpush1.msra.mxu1 %v5358_v17  ;;  %v219_v17 = vld [vmem:[#allocation2 + $0x58] sm:$0xff]  ;;  %v5663_v59 = vsub.f32 %v220_v16, %v5643_v28  ;;  %v1397_v63 = vand.u32 4294901760, %v5647_v30  ;;  %v7425_v62 = vand.u32 4294901760, %v5659_v54 }
  0x77   : > { %755 = vmatmul.mubr.f32.gmra.mxu0 %v5488_v44  ;;  %1394 = vmatprep.subr.mxu1 %v1393_v5  ;;  %v5649_v31 = vand.u32 4294901760, %v219_v17  ;;  %v1404_v5 = vsub.f32 %v5653_v32, %v1403_v50 }
  0x78   : > { %760 = vmatprep.mubr.f32.mxu0 %v7500_v0  ;;  %v7424_v14 = vand.u32 4294901760, %v5663_v59  ;;  %v1398_v41 = vsub.f32 %v5647_v30, %v1397_v63  ;;  %v1410_v10 = vsub.f32 %v5659_v54, %v7425_v62 }
  0x79   : > { %888 = vmatmul.mubr.f32.gmra.mxu1 %v5482_v40  ;;  %v5668_v3 = vsub.f32 %v219_v17, %v5649_v31  ;;  %v1405_v36 = vand.u32 4294901760, %v1404_v5 }
  0x7a   : > { %893 = vmatprep.mubr.f32.mxu1 %v7500_v0  ;;  %v1416_v11 = vsub.f32 %v5663_v59, %v7424_v14  ;;  %v1399_v16 = vand.u32 4294901760, %v1398_v41  ;;  %v1428_v14 = vsub.f32 %v5675_v56, %v7427_v6  ;;  %v1411_v41 = vand.u32 4294901760, %v1410_v10 }
  0x7b   : > { %763 = vmatmul.mubr.f32.gmra.mxu0 %v5498_v48  ;;  %v7426_v4 = vand.u32 4294901760, %v5668_v3 }
  0x7c   : > { %768 = vmatprep.mubr.f32.mxu0 %v7500_v0  ;;  %v1417_v62 = vand.u32 4294901760, %v1416_v11  ;;  %v1429_v6 = vand.u32 4294901760, %v1428_v14  ;;  %v7565_v14 = vand.u32 4294901760, %v5663_v59 }
  0x7d   : > { %897 = vmatmul.mubr.f32.gmra.mxu1 %v5502_v49  ;;  %v1422_v17 = vsub.f32 %v5668_v3, %v7426_v4  ;;  %v1434_v4 = vsub.f32 %v5687_v22, %v1433_v26 }
  0x7e   : > { %902 = vmatprep.mubr.f32.mxu1 %v7500_v0 }
  0x7f   : > { %771 = vmatmul.mubr.f32.gmra.mxu0 %v5512_v53  ;;  %v1423_v5 = vand.u32 4294901760, %v1422_v17  ;;  %v1435_v10 = vand.u32 4294901760, %v1434_v4 }
  0x80   : > { %776 = vmatprep.mubr.f32.mxu0 %v7500_v0 }
  0x81   : > { %906 = vmatmul.mubr.f32.gmra.mxu1 %v5521_v57 }
  0x82   : > { %911 = vmatprep.mubr.f32.mxu1 %v7500_v0 }
  0x83   : > { %779 = vmatmul.mubr.f32.gmra.mxu0 %v5541_v8 }
  0x84   : > { %1018 = vmatprep.mubr.f32.mxu0 %v7500_v0 }
  0x85   : > { %915 = vmatmul.mubr.f32.gmra.mxu1 %v5538_v7 }
  0x86   : > { %920 = vmatprep.mubr.f32.mxu1 %v7500_v0 }
  0x87   : > { %1020 = vmatmul.mubr.f32.vlgmr.msra.gmra.mxu0 %v5366_v21 }
  0x88   : > { %1025 = vmatprep.mubr.f32.mxu0 %v7500_v0  ;;  %1231 = vmatpush1.msra.mxu0 %v5634_v12 }
  0x89   : > { %924 = vmatmul.mubr.f32.gmra.mxu1 %v5555_v20  ;;  %1233 = vmatprep.subr.mxu0 %v5637_v23 }
  0x8a   : > { %1147 = vmatprep.mubr.f32.mxu1 %v7500_v0  ;;  %1235 = vmatpush1.msra.mxu0 %v5640_v24 }
  0x8b   : > { %1027 = vmatmul.mubr.f32.gmra.mxu0 %v5398_v35  ;;  %1237 = vmatprep.subr.mxu0 %v5643_v28 }
  0x8c   : > { %1032 = vmatprep.mubr.f32.mxu0 %v7500_v0  ;;  %1239 = vmatpush1.msra.mxu0 %v5649_v31 }
  0x8d   : > { %1149 = vmatmul.mubr.f32.vlgmr.msra.gmra.mxu1 %v5366_v21  ;;  %1241 = vmatprep.subr.mxu0 %v5655_v34 }
  0x8e   : > { %1400 = vmatpush1.msra.mxu1 %v1399_v16  ;;  %1154 = vmatprep.mubr.f32.mxu1 %v7500_v0  ;;  %v212_v16 = vld [vmem:[#allocation2 + $0x20] sm:$0xff] }
  0x8f   : > { %1034 = vmatmul.mubr.f32.gmra.mxu0 %v5449_v1  ;;  %1406 = vmatprep.subr.mxu1 %v1405_v36 }
  0x90   : > { %1039 = vmatprep.mubr.f32.mxu0 %v7500_v0  ;;  %1412 = vmatpush1.msra.mxu1 %v1411_v41 }
  0x91   : > { %1156 = vmatmul.mubr.f32.gmra.mxu1 %v5398_v35  ;;  %1418 = vmatprep.subr.mxu1 %v1417_v62  ;;  %v7564_v62 = vand.u32 4294901760, %v5659_v54 }
  0x92   : > { %1161 = vmatprep.mubr.f32.mxu1 %v7500_v0  ;;  %1424 = vmatpush1.msra.mxu1 %v1423_v5  ;;  %v5886_v5 = vand.u32 4294901760, %v212_v16 }
  0x93   : > { %1041 = vmatmul.mubr.f32.gmra.mxu0 %v5451_v2  ;;  %1430 = vmatprep.subr.mxu1 %v1429_v6 }
  0x94   : > { %1046 = vmatprep.mubr.f32.mxu0 %v7500_v0  ;;  %1243 = vmatpush1.msra.mxu0 %v5670_v47 }
  0x95   : > { %1163 = vmatmul.mubr.f32.gmra.mxu1 %v5449_v1  ;;  %1552 = vmatprep.subr.mxu0 %v5587_v42  ;;  %v240_v42 = vld [vmem:[#allocation2 + $0x100] sm:$0xff] }
  0x96   : > { %1168 = vmatprep.mubr.f32.mxu1 %v7500_v0  ;;  %1436 = vmatpush1.msra.mxu1 %v1435_v10 }
  0x97   : > { %1048 = vmatmul.mubr.f32.gmra.mxu0 %v5474_v27  ;;  %1696 = vmatprep.subr.mxu1 %v5580_v25 }
  0x98   : > { %1053 = vmatprep.mubr.f32.mxu0 %v7500_v0 }
  0x99   : > { %1170 = vmatmul.mubr.f32.gmra.mxu1 %v5451_v2 }
  0x9a   : > { %1175 = vmatprep.mubr.f32.mxu1 %v7500_v0 }
  0x9b   : > { %1055 = vmatmul.mubr.f32.gmra.mxu0 %v5476_v33 }
  0x9c   : > { %1060 = vmatprep.mubr.f32.mxu0 %v7500_v0 }
  0x9d   : > { %1177 = vmatmul.mubr.f32.gmra.mxu1 %v5474_v27 }
  0x9e   : > { %1182 = vmatprep.mubr.f32.mxu1 %v7500_v0 }
  0x9f   : > { %1062 = vmatmul.mubr.f32.gmra.mxu0 %v5490_v45 }
  0xa0   : > { %1067 = vmatprep.mubr.f32.mxu0 %v7500_v0 }
  0xa1   : > { %1184 = vmatmul.mubr.f32.gmra.mxu1 %v5476_v33 }
  0xa2   : > { %1189 = vmatprep.mubr.f32.mxu1 %v7500_v0 }
  0xa3   : > { %1069 = vmatmul.mubr.f32.gmra.mxu0 %v5523_v60 }
  0xa4   : > { %1276 = vmatprep.mubr.f32.mxu0 %v7500_v0 }
  0xa5   : > { %1191 = vmatmul.mubr.f32.gmra.mxu1 %v5490_v45 }
  0xa6   : > { %1196 = vmatprep.mubr.f32.mxu1 %v7500_v0 }
  0xa7   : > { %1282 = vmatmul.mubr.f32.vlgmr.msra.gmra.mxu0 %v5439_v58 }
  0xa8   : > { %1287 = vmatprep.mubr.f32.mxu0 %v7500_v0  ;;  %1555 = vmatpush1.msra.mxu0 %v5647_v30  ;;  %v7566_v30 = vand.u32 4294901760, %v5668_v3 }
  0xa9   : > { %1198 = vmatmul.mubr.f32.gmra.mxu1 %v5523_v60  ;;  %1558 = vmatprep.subr.mxu0 %v5653_v32  ;;  %v7567_v32 = vand.u32 4294901760, %v5675_v56 }
  0xaa   : > { %1469 = vmatprep.mubr.f32.mxu1 %v7500_v0  ;;  %1561 = vmatpush1.msra.mxu0 %v5659_v54 }
  0xab   : > { %1293 = vmatmul.mubr.f32.gmra.mxu0 %v5459_v13  ;;  %1564 = vmatprep.subr.mxu0 %v5663_v59 }
  0xac   : > { %1298 = vmatprep.mubr.f32.mxu0 %v7500_v0  ;;  %1567 = vmatpush1.msra.mxu0 %v5668_v3 }
  0xad   : > { %1471 = vmatmul.mubr.f32.vlgmr.msra.gmra.mxu1 %v5366_v21  ;;  %1570 = vmatprep.subr.mxu0 %v5675_v56 }
  0xae   : > { %1698 = vmatpush1.msra.mxu1 %v5634_v12  ;;  %1476 = vmatprep.mubr.f32.mxu1 %v7500_v0 }
  0xaf   : > { %1304 = vmatmul.mubr.f32.gmra.mxu0 %v5507_v51  ;;  %1700 = vmatprep.subr.mxu1 %v5637_v23 }
  0xb0   : > { %1309 = vmatprep.mubr.f32.mxu0 %v7500_v0  ;;  %1702 = vmatpush1.msra.mxu1 %v5640_v24 }
  0xb1   : > { %1478 = vmatmul.mubr.f32.gmra.mxu1 %v5398_v35  ;;  %1704 = vmatprep.subr.mxu1 %v5643_v28 }
  0xb2   : > { %1483 = vmatprep.mubr.f32.mxu1 %v7500_v0  ;;  %1706 = vmatpush1.msra.mxu1 %v5649_v31 }
  0xb3   : > { %1315 = vmatmul.mubr.f32.gmra.mxu0 %v5515_v55  ;;  %1708 = vmatprep.subr.mxu1 %v5655_v34 }
  0xb4   : > { %1320 = vmatprep.mubr.f32.mxu0 %v7500_v0  ;;  %1573 = vmatpush1.msra.mxu0 %v5687_v22 }
  0xb5   : > { %1485 = vmatmul.mubr.f32.gmra.mxu1 %v5449_v1  ;;  %1843 = vmatprep.subr.mxu0 %v1391_v46 }
  0xb6   : > { %1490 = vmatprep.mubr.f32.mxu1 %v7500_v0  ;;  %1710 = vmatpush1.msra.mxu1 %v5670_v47 }
  0xb7   : > { %1326 = vmatmul.mubr.f32.gmra.mxu0 %v5532_v61  ;;  %1986 = vmatprep.subr.mxu1 %v5580_v25  ;;  %v5796_v25 = vand.u32 4294901760, %v240_v42 }
  0xb8   : > { %1331 = vmatprep.mubr.f32.mxu0 %v7500_v0 }
  0xb9   : > { %1492 = vmatmul.mubr.f32.gmra.mxu1 %v5451_v2  ;;  %v5803_v46 = vsub.f32 %v240_v42, %v5796_v25 }
  0xba   : > { %1497 = vmatprep.mubr.f32.mxu1 %v7500_v0 }
  0xbb   : > { %1337 = vmatmul.mubr.f32.gmra.mxu0 %v5550_v9  ;;  %v2277_v4 = vand.u32 4294901760, %v5803_v46 }
  0xbc   : > { %1342 = vmatprep.mubr.f32.mxu0 %v7500_v0 }
  0xbd   : > { %1499 = vmatmul.mubr.f32.gmra.mxu1 %v5474_v27  ;;  %v2278_v54 = vsub.f32 %v5803_v46, %v2277_v4 }
  0xbe   : > { %1504 = vmatprep.mubr.f32.mxu1 %v7500_v0 }
  0xbf   : > { %1348 = vmatmul.mubr.f32.gmra.mxu0 %v5566_v38 }
  0xc0   : > { %1353 = vmatprep.mubr.f32.mxu0 %v7500_v0 }
  0xc1   : > { %1506 = vmatmul.mubr.f32.gmra.mxu1 %v5476_v33 }
  0xc2   : > { %1511 = vmatprep.mubr.f32.mxu1 %v7500_v0 }
  0xc3   : > { %1359 = vmatmul.mubr.f32.gmra.mxu0 %v5574_v18 }
  0xc4   : > { %1606 = vmatprep.mubr.f32.mxu0 %v7500_v0 }
  0xc5   : > { %1513 = vmatmul.mubr.f32.gmra.mxu1 %v5490_v45 }
  0xc6   : > { %1518 = vmatprep.mubr.f32.mxu1 %v7500_v0 }
  0xc7   : > { %1609 = vmatmul.mubr.f32.vlgmr.msra.gmra.mxu0 %v5388_v29 }
  0xc8   : > { %1614 = vmatprep.mubr.f32.mxu0 %v7500_v0  ;;  %1847 = vmatpush1.msra.mxu0 %v1397_v63  ;;  %v221_v63 = vld [vmem:[#allocation2 + $0x68] sm:$0xff] }
  0xc9   : > { %1520 = vmatmul.mubr.f32.gmra.mxu1 %v5523_v60  ;;  %1851 = vmatprep.subr.mxu0 %v1403_v50  ;;  %v5865_v22 = vand.u32 4294901760, %v221_v63 }
  0xca   : > { %1743 = vmatprep.mubr.f32.mxu1 %v7500_v0  ;;  %1855 = vmatpush1.msra.mxu0 %v7564_v62 }
  0xcb   : > { %1617 = vmatmul.mubr.f32.gmra.mxu0 %v5419_v43  ;;  %1859 = vmatprep.subr.mxu0 %v7565_v14  ;;  %v5884_v41 = vsub.f32 %v221_v63, %v5865_v22 }
  0xcc   : > { %1622 = vmatprep.mubr.f32.mxu0 %v7500_v0  ;;  %1863 = vmatpush1.msra.mxu0 %v7566_v30 }
  0xcd   : > { %1747 = vmatmul.mubr.f32.vlgmr.msra.gmra.mxu1 %v5403_v37  ;;  %1867 = vmatprep.subr.mxu0 %v7567_v32  ;;  %v7430_v32 = vand.u32 4294901760, %v5884_v41 }
  0xce   : > { %1988 = vmatpush1.msra.mxu1 %v5634_v12  ;;  %1752 = vmatprep.mubr.f32.mxu1 %v7500_v0  ;;  %v2279_v12 = vand.u32 4294901760, %v2278_v54  ;;  %v5903_v54 = vsub.f32 %v212_v16, %v5886_v5 }
  0xcf   : > { %1625 = vmatmul.mubr.f32.gmra.mxu0 %v5465_v15  ;;  %1990 = vmatprep.subr.mxu1 %v5637_v23  ;;  %v239_v23 = vld [vmem:[#allocation2 + $0xf8] sm:$0xff]  ;;  %v2308_v63 = vsub.f32 %v5884_v41, %v7430_v32 }
  0xd0   : > { %1630 = vmatprep.mubr.f32.mxu0 %v7500_v0  ;;  %1992 = vmatpush1.msra.mxu1 %v5640_v24  ;;  %v231_v24 = vld [vmem:[#allocation2 + $0xb8] sm:$0xff] }
  0xd1   : > { %1756 = vmatmul.mubr.f32.gmra.mxu1 %v5430_v52  ;;  %1994 = vmatprep.subr.mxu1 %v5643_v28  ;;  %v230_v28 = vld [vmem:[#allocation2 + $0xb0] sm:$0xff]  ;;  %v5853_v59 = vand.u32 4294901760, %v231_v24 }
  0xd2   : > { %1761 = vmatprep.mubr.f32.mxu1 %v7500_v0  ;;  %1996 = vmatpush1.msra.mxu1 %v5649_v31  ;;  %v5850_v31 = vand.u32 4294901760, %v239_v23  ;;  %v5856_v3 = vand.u32 4294901760, %v230_v28 }
  0xd3   : > { %1633 = vmatmul.mubr.f32.gmra.mxu0 %v5468_v19  ;;  %1998 = vmatprep.subr.mxu1 %v5655_v34  ;;  %v222_v34 = vld [vmem:[#allocation2 + $0x70] sm:$0xff]  ;;  %v5869_v6 = vsub.f32 %v231_v24, %v5853_v59 }
  0xd4   : > { %1638 = vmatprep.mubr.f32.mxu0 %v7500_v0  ;;  %1871 = vmatpush1.msra.mxu0 %v1433_v26  ;;  %v5859_v50 = vand.u32 4294901760, %v222_v34  ;;  %v5863_v56 = vsub.f32 %v239_v23, %v5850_v31  ;;  %v5875_v17 = vsub.f32 %v230_v28, %v5856_v3 }
  0xd5   : > { %1765 = vmatmul.mubr.f32.gmra.mxu1 %v5479_v39  ;;  %2115 = vmatprep.subr.mxu0 %v5796_v25  ;;  %v7433_v10 = vand.u32 4294901760, %v5869_v6 }
  0xd6   : > { %1770 = vmatprep.mubr.f32.mxu1 %v7500_v0  ;;  %2000 = vmatpush1.msra.mxu1 %v5670_v47  ;;  %v213_v47 = vld [vmem:[#allocation2 + $0x28] sm:$0xff]  ;;  %v5879_v26 = vsub.f32 %v222_v34, %v5859_v50  ;;  %v7434_v36 = vand.u32 4294901760, %v5863_v56  ;;  %v7429_v62 = vand.u32 4294901760, %v5875_v17 }
  0xd7   : > { %1641 = vmatmul.mubr.f32.gmra.mxu0 %v5488_v44  ;;  %2280 = vmatprep.subr.mxu1 %v2279_v12  ;;  %v5871_v11 = vand.u32 4294901760, %v213_v47  ;;  %v2290_v12 = vsub.f32 %v5869_v6, %v7433_v10 }
  0xd8   : > { %1646 = vmatprep.mubr.f32.mxu0 %v7500_v0  ;;  %v7428_v14 = vand.u32 4294901760, %v5879_v26  ;;  %v2284_v30 = vsub.f32 %v5863_v56, %v7434_v36  ;;  %v2296_v24 = vsub.f32 %v5875_v17, %v7429_v62 }
  0xd9   : > { %1774 = vmatmul.mubr.f32.gmra.mxu1 %v5482_v40  ;;  %v5891_v42 = vsub.f32 %v213_v47, %v5871_v11  ;;  %v7432_v47 = vand.u32 4294901760, %v5903_v54  ;;  %v2291_v16 = vand.u32 4294901760, %v2290_v12  ;;  %v2309_v12 = vand.u32 4294901760, %v2308_v63 }
  0xda   : > { %1779 = vmatprep.mubr.f32.mxu1 %v7500_v0  ;;  %v2302_v28 = vsub.f32 %v5879_v26, %v7428_v14  ;;  %v2285_v34 = vand.u32 4294901760, %v2284_v30  ;;  %v2297_v30 = vand.u32 4294901760, %v2296_v24 }
  0xdb   : > { %1649 = vmatmul.mubr.f32.gmra.mxu0 %v5498_v48  ;;  %v7431_v23 = vand.u32 4294901760, %v5891_v42  ;;  %v2320_v32 = vsub.f32 %v5903_v54, %v7432_v47 }
  0xdc   : > { %1654 = vmatprep.mubr.f32.mxu0 %v7500_v0  ;;  %v2303_v62 = vand.u32 4294901760, %v2302_v28 }
  0xdd   : > { %1783 = vmatmul.mubr.f32.gmra.mxu1 %v5502_v49  ;;  %v2314_v14 = vsub.f32 %v5891_v42, %v7431_v23  ;;  %v2321_v24 = vand.u32 4294901760, %v2320_v32 }
  0xde   : > { %1788 = vmatprep.mubr.f32.mxu1 %v7500_v0 }
  0xdf   : > { %1657 = vmatmul.mubr.f32.gmra.mxu0 %v5512_v53  ;;  %v2315_v23 = vand.u32 4294901760, %v2314_v14 }
  0xe0   : > { %1662 = vmatprep.mubr.f32.mxu0 %v7500_v0 }
  0xe1   : > { %1792 = vmatmul.mubr.f32.gmra.mxu1 %v5521_v57 }
  0xe2   : > { %1797 = vmatprep.mubr.f32.mxu1 %v7500_v0 }
  0xe3   : > { %1665 = vmatmul.mubr.f32.gmra.mxu0 %v5541_v8 }
  0xe4   : > { %1904 = vmatprep.mubr.f32.mxu0 %v7500_v0 }
  0xe5   : > { %1801 = vmatmul.mubr.f32.gmra.mxu1 %v5538_v7 }
  0xe6   : > { %1806 = vmatprep.mubr.f32.mxu1 %v7500_v0 }
  0xe7   : > { %1906 = vmatmul.mubr.f32.vlgmr.msra.gmra.mxu0 %v5366_v21 }
  0xe8   : > { %1911 = vmatprep.mubr.f32.mxu0 %v7500_v0  ;;  %2117 = vmatpush1.msra.mxu0 %v5850_v31 }
  0xe9   : > { %1810 = vmatmul.mubr.f32.gmra.mxu1 %v5555_v20  ;;  %2119 = vmatprep.subr.mxu0 %v5853_v59 }
  0xea   : > { %2033 = vmatprep.mubr.f32.mxu1 %v7500_v0  ;;  %2121 = vmatpush1.msra.mxu0 %v5856_v3 }
  0xeb   : > { %1913 = vmatmul.mubr.f32.gmra.mxu0 %v5398_v35  ;;  %2123 = vmatprep.subr.mxu0 %v5859_v50 }
  0xec   : > { %1918 = vmatprep.mubr.f32.mxu0 %v7500_v0  ;;  %2125 = vmatpush1.msra.mxu0 %v5865_v22 }
  0xed   : > { %2035 = vmatmul.mubr.f32.vlgmr.msra.gmra.mxu1 %v5366_v21  ;;  %2127 = vmatprep.subr.mxu0 %v5871_v11 }
  0xee   : > { %2286 = vmatpush1.msra.mxu1 %v2285_v34  ;;  %2040 = vmatprep.mubr.f32.mxu1 %v7500_v0 }
  0xef   : > { %1920 = vmatmul.mubr.f32.gmra.mxu0 %v5449_v1  ;;  %2292 = vmatprep.subr.mxu1 %v2291_v16 }
  0xf0   : > { %1925 = vmatprep.mubr.f32.mxu0 %v7500_v0  ;;  %2298 = vmatpush1.msra.mxu1 %v2297_v30 }
  0xf1   : > { %2042 = vmatmul.mubr.f32.gmra.mxu1 %v5398_v35  ;;  %2304 = vmatprep.subr.mxu1 %v2303_v62 }
  0xf2   : > { %2047 = vmatprep.mubr.f32.mxu1 %v7500_v0  ;;  %2310 = vmatpush1.msra.mxu1 %v2309_v12 }
  0xf3   : > { %1927 = vmatmul.mubr.f32.gmra.mxu0 %v5451_v2  ;;  %2316 = vmatprep.subr.mxu1 %v2315_v23 }
  0xf4   : > { %1932 = vmatprep.mubr.f32.mxu0 %v7500_v0  ;;  %2129 = vmatpush1.msra.mxu0 %v5886_v5 }
  0xf5   : > { %2049 = vmatmul.mubr.f32.gmra.mxu1 %v5449_v1  ;;  %2438 = vmatprep.subr.mxu0 %v5803_v46 }
  0xf6   : > { %2054 = vmatprep.mubr.f32.mxu1 %v7500_v0  ;;  %2322 = vmatpush1.msra.mxu1 %v2321_v24 }
  0xf7   : > { %1934 = vmatmul.mubr.f32.gmra.mxu0 %v5474_v27  ;;  %2582 = vmatprep.subr.mxu1 %v5796_v25 }
  0xf8   : > { %1939 = vmatprep.mubr.f32.mxu0 %v7500_v0 }
  0xf9   : > { %2056 = vmatmul.mubr.f32.gmra.mxu1 %v5451_v2 }
  0xfa   : > { %2061 = vmatprep.mubr.f32.mxu1 %v7500_v0 }
  0xfb   : > { %1941 = vmatmul.mubr.f32.gmra.mxu0 %v5476_v33 }
  0xfc   : > { %1946 = vmatprep.mubr.f32.mxu0 %v7500_v0 }
  0xfd   : > { %2063 = vmatmul.mubr.f32.gmra.mxu1 %v5474_v27 }
  0xfe   : > { %2068 = vmatprep.mubr.f32.mxu1 %v7500_v0 }
  0xff   : > { %1948 = vmatmul.mubr.f32.gmra.mxu0 %v5490_v45 }
 0x100   : > { %1953 = vmatprep.mubr.f32.mxu0 %v7500_v0 }
 0x101   : > { %2070 = vmatmul.mubr.f32.gmra.mxu1 %v5476_v33 }
 0x102   : > { %2075 = vmatprep.mubr.f32.mxu1 %v7500_v0 }
 0x103   : > { %1955 = vmatmul.mubr.f32.gmra.mxu0 %v5523_v60 }
 0x104   : > { %2162 = vmatprep.mubr.f32.mxu0 %v7500_v0 }
 0x105   : > { %2077 = vmatmul.mubr.f32.gmra.mxu1 %v5490_v45 }
 0x106   : > { %2082 = vmatprep.mubr.f32.mxu1 %v7500_v0 }
 0x107   : > { %v5965_v62 = vpop.f32.mrf.mxu0  ;;  %2168 = vmatmul.mubr.f32.vlgmr.msra.gmra.mxu0 %v5439_v58 }
 0x108   : > { %2173 = vmatprep.mubr.f32.mxu0 %v7500_v0  ;;  %2441 = vmatpush1.msra.mxu0 %v5863_v56 }
 0x109   : > { %v5969_v14 = vpop.f32.mrf.mxu0  ;;  %2084 = vmatmul.mubr.f32.gmra.mxu1 %v5523_v60  ;;  %2444 = vmatprep.subr.mxu0 %v5869_v6 }
 0x10a   : > { %2355 = vmatprep.mubr.f32.mxu1 %v7500_v0  ;;  %2447 = vmatpush1.msra.mxu0 %v5875_v17 }
 0x10b   : > { %v5975_v32 = vpop.f32.mrf.mxu0  ;;  %2179 = vmatmul.mubr.f32.gmra.mxu0 %v5459_v13  ;;  %2450 = vmatprep.subr.mxu0 %v5879_v26  ;;  %v5985_v28 = vpop.f32.mrf.mxu1 }
 0x10c   : > { %2184 = vmatprep.mubr.f32.mxu0 %v7500_v0  ;;  %2453 = vmatpush1.msra.mxu0 %v5884_v41 }
 0x10d   : > { %v5981_v23 = vpop.f32.mrf.mxu0  ;;  %2357 = vmatmul.mubr.f32.vlgmr.msra.gmra.mxu1 %v5366_v21  ;;  %2456 = vmatprep.subr.mxu0 %v5891_v42  ;;  %v5994_v63 = vpop.f32.mrf.mxu1 }
 0x10e   : > { %2584 = vmatpush1.msra.mxu1 %v5850_v31  ;;  %2362 = vmatprep.mubr.f32.mxu1 %v7500_v0 }
 0x10f   : > { %v5991_v34 = vpop.f32.mrf.mxu0  ;;  %2190 = vmatmul.mubr.f32.gmra.mxu0 %v5507_v51  ;;  %2586 = vmatprep.subr.mxu1 %v5853_v59 }
 0x110   : > { %2195 = vmatprep.mubr.f32.mxu0 %v7500_v0  ;;  %2588 = vmatpush1.msra.mxu1 %v5856_v3  ;;  %v6001_v30 = vpop.f32.mrf.mxu1 }
 0x111   : > { %v5999_v16 = vpop.f32.mrf.mxu0  ;;  %2364 = vmatmul.mubr.f32.gmra.mxu1 %v5398_v35  ;;  %2590 = vmatprep.subr.mxu1 %v5859_v50 }
 0x112   : > { %2369 = vmatprep.mubr.f32.mxu1 %v7500_v0  ;;  %2592 = vmatpush1.msra.mxu1 %v5865_v22  ;;  %v6010_v24 = vpop.f32.mrf.mxu1 }
 0x113   : > { %v6007_v12 = vpop.f32.mrf.mxu0  ;;  %2201 = vmatmul.mubr.f32.gmra.mxu0 %v5515_v55  ;;  %2594 = vmatprep.subr.mxu1 %v5871_v11 }
 0x114   : > { %2206 = vmatprep.mubr.f32.mxu0 %v7500_v0  ;;  %2459 = vmatpush1.msra.mxu0 %v5903_v54  ;;  %v6017_v10 = vpop.f32.mrf.mxu1 }
 0x115   : > { %v6015_v47 = vpop.f32.mrf.mxu0  ;;  %2371 = vmatmul.mubr.f32.gmra.mxu1 %v5449_v1  ;;  %2729 = vmatprep.subr.mxu0 %v2277_v4 }
 0x116   : > { %2376 = vmatprep.mubr.f32.mxu1 %v7500_v0  ;;  %2596 = vmatpush1.msra.mxu1 %v5886_v5  ;;  %v6027_v55 = vpop.f32.mrf.mxu1 }
 0x117   : > { %v6024_v36 = vpop.f32.mrf.mxu0  ;;  %2212 = vmatmul.mubr.f32.gmra.mxu0 %v5532_v61  ;;  %2872 = vmatprep.subr.mxu1 %v5796_v25 }
 0x118   : > { %2217 = vmatprep.mubr.f32.mxu0 %v7500_v0  ;;  %v6033_v13 = vpop.f32.mrf.mxu1 }
 0x119   : > { %v6031_v51 = vpop.f32.mrf.mxu0  ;;  %2378 = vmatmul.mubr.f32.gmra.mxu1 %v5451_v2 }
 0x11a   : > { %2383 = vmatprep.mubr.f32.mxu1 %v7500_v0  ;;  %v6040_v4 = vpop.f32.mrf.mxu1 }
 0x11b   : > { %v6037_v46 = vpop.f32.mrf.mxu0  ;;  %2223 = vmatmul.mubr.f32.gmra.mxu0 %v5550_v9  ;;  %7569 = vst [vmem:[#allocation41_spill] sm:$0xff] %v6040_v4  ;;  %v242_v9 = vld [vmem:[#allocation2 + $0x110] sm:$0xff] }
 0x11c   : > { %7568 = vst [vmem:[#allocation40_spill] sm:$0xff] %v6037_v46  ;;  %2228 = vmatprep.mubr.f32.mxu0 %v7500_v0  ;;  %v6045_v25 = vpop.f32.mrf.mxu1 }
 0x11d   : > { %v6043_v61 = vpop.f32.mrf.mxu0  ;;  %2385 = vmatmul.mubr.f32.gmra.mxu1 %v5474_v27 }
 0x11e   : > { %7570 = vst [vmem:[#allocation42_spill] sm:$0xff] %v6043_v61  ;;  %2390 = vmatprep.mubr.f32.mxu1 %v7500_v0  ;;  %v6052_v2 = vpop.f32.mrf.mxu1 }
 0x11f   : > { %v6049_v58 = vpop.f32.mrf.mxu0  ;;  %2234 = vmatmul.mubr.f32.gmra.mxu0 %v5566_v38  ;;  %7572 = vst [vmem:[#allocation44_spill] sm:$0xff] %v6052_v2  ;;  %v6066_v38 = vand.u32 4294901760, %v242_v9 }
 0x120   : > { %7571 = vst [vmem:[#allocation43_spill] sm:$0xff] %v6049_v58  ;;  %2239 = vmatprep.mubr.f32.mxu0 %v7500_v0  ;;  %v6057_v4 = vpop.f32.mrf.mxu1 }
 0x121   : > { %v6055_v46 = vpop.f32.mrf.mxu0  ;;  %7574 = vst [vmem:[#allocation46_spill] sm:$0xff] %v6057_v4  ;;  %2392 = vmatmul.mubr.f32.gmra.mxu1 %v5476_v33  ;;  %7577 = vst [vmem:[#allocation49_spill] sm:$0xff] %v6066_v38  ;;  %v7582_v33 = vand.u32 4294901760, %v5863_v56  ;;  %v214_v4 = vld [vmem:[#allocation2 + $0x30] sm:$0xff] }
 0x122   : > { %7573 = vst [vmem:[#allocation45_spill] sm:$0xff] %v6055_v46  ;;  %2397 = vmatprep.mubr.f32.mxu1 %v7500_v0  ;;  %v6064_v58 = vpop.f32.mrf.mxu1 }
 0x123   : > { %v6061_v61 = vpop.f32.mrf.mxu0  ;;  %2245 = vmatmul.mubr.f32.gmra.mxu0 %v5574_v18  ;;  %7576 = vst [vmem:[#allocation48_spill] sm:$0xff] %v6064_v58  ;;  %v6081_v18 = vsub.f32 %v242_v9, %v6066_v38 }
 0x124   : > { %7575 = vst [vmem:[#allocation47_spill] sm:$0xff] %v6061_v61  ;;  %2492 = vmatprep.mubr.f32.mxu0 %v7500_v0  ;;  %v6071_v2 = vpop.f32.mrf.mxu1 }
 0x125   : > { %v6069_v27 = vpop.f32.mrf.mxu0  ;;  %7579 = vst [vmem:[#allocation51_spill] sm:$0xff] %v6071_v2  ;;  %2399 = vmatmul.mubr.f32.gmra.mxu1 %v5490_v45  ;;  %7581 = vst [vmem:[#allocation53_spill] sm:$0xff] %v6081_v18  ;;  %v7584_v45 = vand.u32 4294901760, %v5869_v6 }
 0x126   : > { %7578 = vst [vmem:[#allocation50_spill] sm:$0xff] %v6069_v27  ;;  %2404 = vmatprep.mubr.f32.mxu1 %v7500_v0  ;;  %v6078_v61 = vpop.f32.mrf.mxu1 }
 0x127   : > { %v6075_v46 = vpop.f32.mrf.mxu0  ;;  %2495 = vmatmul.mubr.f32.vlgmr.msra.gmra.mxu0 %v5388_v29  ;;  %7580 = vst [vmem:[#allocation52_spill] sm:$0xff] %v6078_v61  ;;  %v7585_v29 = vand.u32 4294901760, %v5875_v17 }
 0x128   : > { %2500 = vmatprep.mubr.f32.mxu0 %v7500_v0  ;;  %2733 = vmatpush1.msra.mxu0 %v7582_v33  ;;  %v7587_v33 = vand.u32 4294901760, %v5879_v26 }
 0x129   : > { %v6086_v27 = vpop.f32.mrf.mxu0  ;;  %v6088_v2 = vpop.f32.mrf.mxu1  ;;  %2406 = vmatmul.mubr.f32.gmra.mxu1 %v5523_v60  ;;  %2737 = vmatprep.subr.mxu0 %v7584_v45  ;;  %v7588_v45 = vand.u32 4294901760, %v5884_v41 }
 0x12a   : > { %7583 = vst [vmem:[#allocation54_spill] sm:$0xff] %v6088_v2  ;;  %2629 = vmatprep.mubr.f32.mxu1 %v7500_v0  ;;  %2741 = vmatpush1.msra.mxu0 %v7585_v29  ;;  %v7461_v2 = vand.u32 4294901760, %v6081_v18  ;;  %v7589_v29 = vand.u32 4294901760, %v5891_v42 }
 0x12b   : > { %v6096_v9 = vpop.f32.mrf.mxu0  ;;  %2503 = vmatmul.mubr.f32.gmra.mxu0 %v5419_v43  ;;  %v6099_v56 = vpop.f32.mrf.mxu1  ;;  %2745 = vmatprep.subr.mxu0 %v7587_v33  ;;  %v215_v43 = vld [vmem:[#allocation2 + $0x38] sm:$0xff] }
 0x12c   : > { %7586 = vst [vmem:[#allocation55_spill] sm:$0xff] %v6099_v56  ;;  %2508 = vmatprep.mubr.f32.mxu0 %v7500_v0  ;;  %2749 = vmatpush1.msra.mxu0 %v7588_v45  ;;  %v3164_v41 = vsub.f32 %v6081_v18, %v7461_v2  ;;  %v248_v45 = vlaneseq  ;;  %v7590_v2 = vand.u32 4294901760, %v5903_v54 }
 0x12d   : > { %v6107_v6 = vpop.f32.mrf.mxu0  ;;  %v6109_v17 = vpop.f32.mrf.mxu1  ;;  %2633 = vmatmul.mubr.f32.vlgmr.msra.gmra.mxu1 %v5403_v37  ;;  %2753 = vmatprep.subr.mxu0 %v7589_v29 }
 0x12e   : > { %2874 = vmatpush1.msra.mxu1 %v5850_v31  ;;  %2638 = vmatprep.mubr.f32.mxu1 %v7500_v0 }
 0x12f   : > { %v6116_v26 = vpop.f32.mrf.mxu0  ;;  %2511 = vmatmul.mubr.f32.gmra.mxu0 %v5465_v15  ;;  %v6119_v33 = vpop.f32.mrf.mxu1  ;;  %2876 = vmatprep.subr.mxu1 %v5853_v59 }
 0x130   : > { %2516 = vmatprep.mubr.f32.mxu0 %v7500_v0  ;;  %2878 = vmatpush1.msra.mxu1 %v5856_v3  ;;  %v3165_v3 = vand.u32 4294901760, %v3164_v41  ;;  %v233_v41 = vld [vmem:[#allocation2 + $0xc8] sm:$0xff] }
 0x131   : > { %v6127_v42 = vpop.f32.mrf.mxu0  ;;  %v6129_v31 = vpop.f32.mrf.mxu1  ;;  %2642 = vmatmul.mubr.f32.gmra.mxu1 %v5430_v52  ;;  %2880 = vmatprep.subr.mxu1 %v5859_v50  ;;  %v6176_v61 = vand.u32 4294901760, %v233_v41 }
 0x132   : > { %2647 = vmatprep.mubr.f32.mxu1 %v7500_v0  ;;  %2882 = vmatpush1.msra.mxu1 %v5865_v22  ;;  %v6150_v22 = vshrl.u32 %v248_v45, 7 }
 0x133   : > { %v6135_v59 = vpop.f32.mrf.mxu0  ;;  %2519 = vmatmul.mubr.f32.gmra.mxu0 %v5468_v19  ;;  %v6138_v29 = vpop.f32.mrf.mxu1  ;;  %2884 = vmatprep.subr.mxu1 %v5871_v11  ;;  %v224_v19 = vld [vmem:[#allocation2 + $0x80] sm:$0xff]  ;;  %7598 = vst [vmem:[#allocation63_spill] sm:$0xff] %v6176_v61 }
 0x134   : > { %2524 = vmatprep.mubr.f32.mxu0 %v7500_v0  ;;  %2757 = vmatpush1.msra.mxu0 %v7590_v2  ;;  %7591 = vst [vmem:[#allocation56_spill] sm:$0xff] %v6150_v22  ;;  %v241_v2 = vld [vmem:[#allocation2 + $0x108] sm:$0xff]  ;;  %v250_v37 = vsub.s32 0, %v6150_v22 }
 0x135   : > { %v6144_v50 = vpop.f32.mrf.mxu0  ;;  %v6146_v52 = vpop.f32.mrf.mxu1  ;;  %2651 = vmatmul.mubr.f32.gmra.mxu1 %v5479_v39  ;;  %3001 = vmatprep.subr.mxu0 %v6066_v38  ;;  %v232_v39 = vld [vmem:[#allocation2 + $0xc0] sm:$0xff] }
 0x136   : > { %2656 = vmatprep.mubr.f32.mxu1 %v7500_v0  ;;  %2886 = vmatpush1.msra.mxu1 %v5886_v5  ;;  %v223_v5 = vld [vmem:[#allocation2 + $0x78] sm:$0xff]  ;;  %v6178_v58 = vand.u32 4294901760, %v232_v39 }
 0x137   : > { %v6154_v11 = vpop.f32.mrf.mxu0  ;;  %2527 = vmatmul.mubr.f32.gmra.mxu0 %v5488_v44  ;;  %v6157_v54 = vpop.f32.mrf.mxu1  ;;  %3166 = vmatprep.subr.mxu1 %v3165_v3  ;;  %v6167_v44 = vand.u32 4294901760, %v241_v2  ;;  %v6169_v3 = vld [vmem:[#allocation5] sm:$0xff] }
 0x138   : > { %7592 = vst [vmem:[#allocation57_spill] sm:$0xff] %v6154_v11  ;;  %2532 = vmatprep.mubr.f32.mxu0 %v7500_v0  ;;  %7595 = vst [vmem:[#allocation60_spill] sm:$0xff] %v6169_v3 }
 0x139   : > { %v6160_v15 = vpop.f32.mrf.mxu0  ;;  %v6162_v45 = vpop.f32.mrf.mxu1  ;;  %2660 = vmatmul.mubr.f32.gmra.mxu1 %v5482_v40  ;;  %v6180_v40 = vand.u32 4294901760, %v224_v19 }
 0x13a   : > { %7593 = vst [vmem:[#allocation58_spill] sm:$0xff] %v6160_v15  ;;  %7594 = vst [vmem:[#allocation59_spill] sm:$0xff] %v6162_v45  ;;  %2665 = vmatprep.mubr.f32.mxu1 %v7500_v0  ;;  %v6183_v15 = vand.u32 4294901760, %v223_v5  ;;  %v6198_v45 = vsub.f32 %v241_v2, %v6167_v44 }
 0x13b   : > { %v6171_v60 = vpop.f32.mrf.mxu0  ;;  %2535 = vmatmul.mubr.f32.gmra.mxu0 %v5498_v48  ;;  %v6174_v56 = vpop.f32.mrf.mxu1  ;;  %v6190_v48 = vand.u32 4294901760, %v215_v43 }
 0x13c   : > { %7596 = vst [vmem:[#allocation61_spill] sm:$0xff] %v6171_v60  ;;  %7597 = vst [vmem:[#allocation62_spill] sm:$0xff] %v6174_v56  ;;  %2540 = vmatprep.mubr.f32.mxu0 %v7500_v0  ;;  %v6193_v60 = vrot.slane %v6169_v3, %v250_v37  ;;  %v254_v56 = vsub.s32 1, %v6150_v22  ;;  %v6212_v37 = vsub.f32 %v224_v19, %v6180_v40  ;;  %v6214_v22 = vand.u32 4294901760, %v214_v4 }
 0x13d   : > { %v6185_v11 = vpop.f32.mrf.mxu0  ;;  %v6187_v38 = vpop.f32.mrf.mxu1  ;;  %2669 = vmatmul.mubr.f32.gmra.mxu1 %v5502_v49  ;;  %7601 = vst [vmem:[#allocation66_spill] sm:$0xff] %v6198_v45  ;;  %v6206_v49 = vsub.f32 %v232_v39, %v6178_v58  ;;  %v6218_v2 = vsub.f32 %v223_v5, %v6183_v15  ;;  %v6226_v39 = vsub.f32 %v215_v43, %v6190_v48  ;;  %v7610_v5 = vand.u32 4294901760, %v6198_v45 }
 0x13e   : > { %7599 = vst [vmem:[#allocation64_spill] sm:$0xff] %v6185_v11  ;;  %7600 = vst [vmem:[#allocation65_spill] sm:$0xff] %v6187_v38  ;;  %2674 = vmatprep.mubr.f32.mxu1 %v7500_v0  ;;  %v6209_v38 = vsub.f32 %v233_v41, %v6176_v61  ;;  %v398_v19 = vadd.f32 %v5965_v62, %v6193_v60  ;;  %v6231_v41 = vrot.slane %v6169_v3, %v254_v56 }
 0x13f   : > { %v6200_v18 = vpop.f32.mrf.mxu0  ;;  %2543 = vmatmul.mubr.f32.gmra.mxu0 %v5512_v53  ;;  %v6203_v11 = vpop.f32.mrf.mxu1  ;;  %7604 = vst [vmem:[#allocation69_spill] sm:$0xff] %v6206_v49  ;;  %7605 = vst [vmem:[#allocation70_spill] sm:$0xff] %v6212_v37  ;;  %v6244_v56 = vsub.f32 %v214_v4, %v6214_v22  ;;  %v409_v62 = vadd.f32 %v5975_v32, %v6193_v60  ;;  %v3170_v43 = vsub.f32 %v6198_v45, %v7610_v5 }
 0x140   : > { %7602 = vst [vmem:[#allocation67_spill] sm:$0xff] %v6200_v18  ;;  %7603 = vst [vmem:[#allocation68_spill] sm:$0xff] %v6203_v11  ;;  %2548 = vmatprep.mubr.f32.mxu0 %v7500_v0  ;;  %v587_v4 = vadd.f32 %v5985_v28, %v398_v19  ;;  %v7613_v32 = vand.u32 4294901760, %v6206_v49  ;;  %v7614_v19 = vand.u32 4294901760, %v6212_v37 }
 0x141   : > { %v6220_v18 = vpop.f32.mrf.mxu0  ;;  %v6222_v53 = vpop.f32.mrf.mxu1  ;;  %2678 = vmatmul.mubr.f32.gmra.mxu1 %v5521_v57  ;;  %v400_v57 = vadd.f32 %v5969_v14, %v6231_v41  ;;  %v7612_v14 = vand.u32 4294901760, %v6209_v38 }
 0x142   : > { %7606 = vst [vmem:[#allocation71_spill] sm:$0xff] %v6220_v18  ;;  %2683 = vmatprep.mubr.f32.mxu1 %v7500_v0  ;;  %v6273_v28 = vsub.f32 %v6206_v49, %v7613_v32  ;;  %v411_v49 = vadd.f32 %v5981_v23, %v6231_v41  ;;  %v594_v23 = vadd.f32 %v6001_v30, %v409_v62 }
 0x143   : > { %v6235_v11 = vpop.f32.mrf.mxu0  ;;  %2551 = vmatmul.mubr.f32.gmra.mxu0 %v5541_v8  ;;  %v6238_v18 = vpop.f32.mrf.mxu1  ;;  %v589_v45 = vadd.f32 %v5994_v63, %v400_v57  ;;  %v7617_v57 = vand.u32 4294901760, %v6226_v39 }
 0x144   : > { %7607 = vst [vmem:[#allocation72_spill] sm:$0xff] %v6235_v11  ;;  %2790 = vmatprep.mubr.f32.mxu0 %v7500_v0 }
 0x145   : > { %v6248_v3 = vpop.f32.mrf.mxu0  ;;  %v6250_v11 = vpop.f32.mrf.mxu1  ;;  %2687 = vmatmul.mubr.f32.gmra.mxu1 %v5538_v7  ;;  %v3176_v7 = vsub.f32 %v6209_v38, %v7612_v14  ;;  %v7616_v14 = vand.u32 4294901760, %v6218_v2  ;;  %v6305_v63 = vsub.f32 %v6226_v39, %v7617_v57 }
 0x146   : > { %7608 = vst [vmem:[#allocation73_spill] sm:$0xff] %v6248_v3  ;;  %7609 = vst [vmem:[#allocation74_spill] sm:$0xff] %v6250_v11  ;;  %2692 = vmatprep.mubr.f32.mxu1 %v7500_v0  ;;  %v6278_v0 = vsub.f32 %v6212_v37, %v7614_v19  ;;  %v7615_v11 = vmov 0.0   ;;  %v420_v19 = vadd.f32 %v5991_v34, %v6193_v60 }
 0x147   : > { %v1021_v3 = vpop.f32.mrf.mxu0  ;;  %2792 = vmatmul.mubr.f32.vlgmr.msra.gmra.mxu0 %v5366_v21  ;;  %v6265_v8 = vpop.f32.mrf.mxu1  ;;  %v6288_v32 = vsub.f32 %v6218_v2, %v7616_v14  ;;  %v422_v14 = vadd.f32 %v5999_v16, %v6231_v41  ;;  %v3177_v30 = vand.u32 4294901760, %v3176_v7  ;;  %v431_v7 = vadd.f32 %v6007_v12, %v6193_v60 }
 0x148   : > { %7611 = vst [vmem:[#allocation75_spill] sm:$0xff] %v6265_v8  ;;  %v725_v8 = vadd.f32 %v6075_v46, %v587_v4  ;;  %2797 = vmatprep.mubr.f32.mxu0 %v7615_v11  ;;  %3003 = vmatpush1.msra.mxu0 %v6167_v44  ;;  %v727_v46 = vadd.f32 %v6086_v27, %v589_v45  ;;  %v3171_v4 = vand.u32 4294901760, %v3170_v43  ;;  %v7618_v27 = vand.u32 4294901760, %v6244_v56 }
 0x149   : > { %v1023_v5 = vpop.f32.mrf.mxu0  ;;  %v6294_v37 = vpop.f32.mrf.mxu1  ;;  %2696 = vmatmul.mubr.f32.gmra.mxu1 %v5555_v20  ;;  %3005 = vmatprep.subr.mxu0 %v6176_v61  ;;  %v596_v20 = vadd.f32 %v6010_v24, %v411_v49  ;;  %v3183_v49 = vand.u32 4294901760, %v6273_v28  ;;  %v601_v24 = vadd.f32 %v6017_v10, %v420_v19  ;;  %v3195_v10 = vand.u32 4294901760, %v6288_v32 }
 0x14a   : > { %v863_v34 = vadd.f32 %v6109_v17, %v725_v8  ;;  %2919 = vmatprep.mubr.f32.mxu1 %v7615_v11  ;;  %3007 = vmatpush1.msra.mxu0 %v6178_v58  ;;  %v6322_v8 = vsub.f32 %v6244_v56, %v7618_v27  ;;  %v733_v17 = vadd.f32 %v6096_v9, %v594_v23  ;;  %v3189_v9 = vand.u32 4294901760, %v6278_v0 }
 0x14b   : > { %v1028_v61 = vpop.f32.mrf.mxu0  ;;  %2799 = vmatmul.mubr.f32.gmra.mxu0 %v5398_v35  ;;  %v6316_v57 = vpop.f32.mrf.mxu1  ;;  %3009 = vmatprep.subr.mxu0 %v6180_v40  ;;  %v865_v45 = vadd.f32 %v6119_v33, %v727_v46  ;;  %v735_v43 = vadd.f32 %v6107_v6, %v596_v20  ;;  %v433_v20 = vadd.f32 %v6015_v47, %v6231_v41 }
 0x14c   : > { %v1022_v16 = vadd.f32 %v1021_v3, %v863_v34  ;;  %2804 = vmatprep.mubr.f32.mxu0 %v7615_v11  ;;  %3011 = vmatpush1.msra.mxu0 %v6183_v15  ;;  %v872_v33 = vadd.f32 %v6129_v31, %v733_v17  ;;  %v603_v12 = vadd.f32 %v6027_v55, %v422_v14  ;;  %v3201_v31 = vand.u32 4294901760, %v6305_v63  ;;  %v7620_v17 = vld [vmem:[#allocation16_spill] sm:$0xff] }
 0x14d   : > { %v1030_v62 = vpop.f32.mrf.mxu0  ;;  %v1150_v27 = vpop.f32.mrf.mxu1  ;;  %2921 = vmatmul.mubr.f32.vlgmr.msra.gmra.mxu1 %v5366_v21  ;;  %3013 = vmatprep.subr.mxu0 %v6190_v48  ;;  %v1024_v3 = vadd.f32 %v1023_v5, %v865_v45  ;;  %v741_v6 = vadd.f32 %v6116_v26, %v601_v24  ;;  %v874_v5 = vadd.f32 %v6138_v29, %v735_v43 }
 0x14e   : > { %v1151_v28 = vadd.f32 %v1150_v27, %v1022_v16  ;;  %3172 = vmatpush1.msra.mxu1 %v3171_v4  ;;  %2926 = vmatprep.mubr.f32.mxu1 %v7615_v11  ;;  %v1029_v23 = vadd.f32 %v1028_v61, %v872_v33  ;;  %v442_v55 = vadd.f32 %v6024_v36, %v6193_v60  ;;  %v3207_v36 = vand.u32 4294901760, %v6322_v8 }
 0x14f   : > { %v1035_v0 = vpop.f32.mrf.mxu0  ;;  %2806 = vmatmul.mubr.f32.gmra.mxu0 %v5449_v1  ;;  %v1152_v19 = vpop.f32.mrf.mxu1  ;;  %3178 = vmatprep.subr.mxu1 %v3177_v30  ;;  %v608_v26 = vadd.f32 %v6033_v13, %v431_v7  ;;  %v743_v32 = vadd.f32 %v6127_v42, %v603_v12  ;;  %v881_v61 = vadd.f32 %v6146_v52, %v741_v6  ;;  %v7619_v42 = vld [vmem:[#allocation41_spill] sm:$0xff] }
 0x150   : > { %4648 = vst [vmem:[%s6347_s28] sm:$0xff] %v1151_v28  ;;  %v1153_v47 = vadd.f32 %v1152_v19, %v1024_v3  ;;  %2811 = vmatprep.mubr.f32.mxu0 %v7615_v11  ;;  %3184 = vmatpush1.msra.mxu1 %v3183_v49  ;;  %v1031_v29 = vadd.f32 %v1030_v62, %v874_v5  ;;  %v7622_v62 = vld [vmem:[#allocation53_spill] sm:$0xff]  ;;  %v7624_v3 = vld [vmem:[#allocation44_spill] sm:$0xff] }
 0x151   : > { %v1037_v63 = vpop.f32.mrf.mxu0  ;;  %v1157_v46 = vpop.f32.mrf.mxu1  ;;  %2928 = vmatmul.mubr.f32.gmra.mxu1 %v5398_v35  ;;  %3190 = vmatprep.subr.mxu1 %v3189_v9  ;;  %v444_v13 = vadd.f32 %v6031_v51, %v6231_v41  ;;  %v610_v4 = vadd.f32 %v7619_v42, %v433_v20  ;;  %v749_v14 = vadd.f32 %v6135_v59, %v608_v26  ;;  %v7621_v51 = vld [vmem:[#allocation40_spill] sm:$0xff]  ;;  %v7626_v20 = vld [vmem:[#allocation49_spill] sm:$0xff] }
 0x152   : > { %4649 = vst [vmem:[%s6347_s28 + $0x8] sm:$0xff] %v1153_v47  ;;  %v1158_v34 = vadd.f32 %v1157_v46, %v1029_v23  ;;  %2933 = vmatprep.mubr.f32.mxu1 %v7615_v11  ;;  %3196 = vmatpush1.msra.mxu1 %v3195_v10  ;;  %v883_v45 = vadd.f32 %v6157_v54, %v743_v32  ;;  %v7623_v54 = vld [vmem:[#allocation59_spill] sm:$0xff]  ;;  %v7625_v10 = vld [vmem:[#allocation20_spill] sm:$0xff]  ;;  %v7627_v12 = vld [vmem:[#allocation57_spill] sm:$0xff] }
 0x153   : > { %v1042_v30 = vpop.f32.mrf.mxu0  ;;  %2813 = vmatmul.mubr.f32.gmra.mxu0 %v7620_v17  ;;  %v1159_v52 = vpop.f32.mrf.mxu1  ;;  %3202 = vmatprep.subr.mxu1 %v3201_v31  ;;  %v1036_v16 = vadd.f32 %v1035_v0, %v881_v61  ;;  %v453_v8 = vadd.f32 %v7621_v51, %v6193_v60  ;;  %v615_v59 = vadd.f32 %v6045_v25, %v442_v55  ;;  %v7628_v0 = vld [vmem:[#allocation62_spill] sm:$0xff]  ;;  %v7630_v55 = vld [vmem:[#allocation43_spill] sm:$0xff] }
 0x154   : > { %4657 = vst [vmem:[%s6347_s28 + $0x48] sm:$0xff] %v1158_v34  ;;  %v1160_v49 = vadd.f32 %v1159_v52, %v1031_v29  ;;  %2818 = vmatprep.mubr.f32.mxu0 %v7615_v11  ;;  %3015 = vmatpush1.msra.mxu0 %v6214_v22  ;;  %v751_v7 = vadd.f32 %v6144_v50, %v610_v4  ;;  %v7629_v23 = vld [vmem:[#allocation42_spill] sm:$0xff] }
 0x155   : > { %v1044_v24 = vpop.f32.mrf.mxu0  ;;  %v1164_v43 = vpop.f32.mrf.mxu1  ;;  %2935 = vmatmul.mubr.f32.gmra.mxu1 %v5449_v1  ;;  %3324 = vmatprep.subr.mxu0 %v7622_v62  ;;  %v890_v27 = vadd.f32 %v7623_v54, %v749_v14  ;;  %v1038_v9 = vadd.f32 %v1037_v63, %v883_v45  ;;  %v617_v28 = vadd.f32 %v7624_v3, %v444_v13  ;;  %v7631_v32 = vld [vmem:[#allocation46_spill] sm:$0xff]  ;;  %v7634_v14 = vld [vmem:[#allocation48_spill] sm:$0xff]  ;;  %v7635_v45 = vld [vmem:[#allocation21_spill] sm:$0xff] }
 0x156   : > { %4658 = vst [vmem:[%s6347_s28 + $0x50] sm:$0xff] %v1160_v49  ;;  %v1165_v33 = vadd.f32 %v1164_v43, %v1036_v16  ;;  %2940 = vmatprep.mubr.f32.mxu1 %v7615_v11  ;;  %3208 = vmatpush1.msra.mxu1 %v3207_v36  ;;  %v757_v6 = vadd.f32 %v7627_v12, %v615_v59  ;;  %v7632_v29 = vld [vmem:[#allocation58_spill] sm:$0xff]  ;;  %v7633_v36 = vld [vmem:[#allocation65_spill] sm:$0xff]  ;;  %v7641_v12 = vld [vmem:[#allocation64_spill] sm:$0xff] }
 0x157   : > { %v1049_v25 = vpop.f32.mrf.mxu0  ;;  %2820 = vmatmul.mubr.f32.gmra.mxu0 %v7625_v10  ;;  %v1166_v50 = vpop.f32.mrf.mxu1  ;;  %3468 = vmatprep.subr.mxu1 %v7626_v20  ;;  %v892_v19 = vadd.f32 %v7628_v0, %v751_v7  ;;  %v1043_v31 = vadd.f32 %v1042_v30, %v890_v27  ;;  %v455_v47 = vadd.f32 %v7629_v23, %v6231_v41  ;;  %v7636_v49 = vld [vmem:[#allocation61_spill] sm:$0xff]  ;;  %v7639_v27 = vld [vmem:[#allocation47_spill] sm:$0xff] }
 0x158   : > { %4666 = vst [vmem:[%s6347_s28 + $0x90] sm:$0xff] %v1165_v33  ;;  %v1167_v5 = vadd.f32 %v1166_v50, %v1038_v9  ;;  %2825 = vmatprep.mubr.f32.mxu0 %v7615_v11  ;;  %v464_v26 = vadd.f32 %v7630_v55, %v6193_v60  ;;  %v622_v63 = vadd.f32 %v7631_v32, %v453_v8  ;;  %v7637_v8 = vld [vmem:[#allocation68_spill] sm:$0xff]  ;;  %v7640_v33 = vld [vmem:[#allocation51_spill] sm:$0xff] }
 0x159   : > { %v1051_v46 = vpop.f32.mrf.mxu0  ;;  %v1171_v61 = vpop.f32.mrf.mxu1  ;;  %2942 = vmatmul.mubr.f32.gmra.mxu1 %v7620_v17  ;;  %v759_v34 = vadd.f32 %v7632_v29, %v617_v28  ;;  %v899_v13 = vadd.f32 %v7633_v36, %v757_v6  ;;  %v1045_v42 = vadd.f32 %v1044_v24, %v892_v19  ;;  %v624_v30 = vadd.f32 %v7634_v14, %v455_v47  ;;  %v7638_v24 = vld [vmem:[#allocation45_spill] sm:$0xff]  ;;  %v7644_v55 = vld [vmem:[#allocation67_spill] sm:$0xff]  ;;  %v7646_v29 = vld [vmem:[#allocation54_spill] sm:$0xff] }
 0x15a   : > { %4667 = vst [vmem:[%s6347_s28 + $0x98] sm:$0xff] %v1167_v5  ;;  %v1172_v4 = vadd.f32 %v1171_v61, %v1043_v31  ;;  %2947 = vmatprep.mubr.f32.mxu1 %v7615_v11  ;;  %v765_v51 = vadd.f32 %v7636_v49, %v622_v63  ;;  %v466_v54 = vadd.f32 %v7638_v24, %v6231_v41  ;;  %v7642_v31 = vld [vmem:[#allocation52_spill] sm:$0xff]  ;;  %v7648_v14 = vld [vmem:[#allocation74_spill] sm:$0xff] }
 0x15b   : > { %v1056_v52 = vpop.f32.mrf.mxu0  ;;  %2827 = vmatmul.mubr.f32.gmra.mxu0 %v7635_v45  ;;  %v1173_v16 = vpop.f32.mrf.mxu1  ;;  %v901_v59 = vadd.f32 %v7637_v8, %v759_v34  ;;  %v1050_v7 = vadd.f32 %v1049_v25, %v899_v13  ;;  %v475_v9 = vadd.f32 %v7639_v27, %v6193_v60  ;;  %v629_v3 = vadd.f32 %v7640_v33, %v464_v26  ;;  %v7643_v60 = vld [vmem:[#allocation25_spill] sm:$0xff] }
 0x15c   : > { %4675 = vst [vmem:[%s6347_s28 + $0xd8] sm:$0xff] %v1172_v4  ;;  %v1174_v43 = vadd.f32 %v1173_v16, %v1045_v42  ;;  %2832 = vmatprep.mubr.f32.mxu0 %v7615_v11  ;;  %v767_v6 = vadd.f32 %v7641_v12, %v624_v30  ;;  %v908_v25 = vadd.f32 %v6222_v53, %v765_v51  ;;  %v7645_v53 = vld [vmem:[#allocation50_spill] sm:$0xff]  ;;  %v7647_v42 = vld [vmem:[#allocation71_spill] sm:$0xff]  ;;  %v7650_v51 = vld [vmem:[#allocation32_spill] sm:$0xff] }
 0x15d   : > { %v1058_v28 = vpop.f32.mrf.mxu0  ;;  %v1178_v50 = vpop.f32.mrf.mxu1  ;;  %2949 = vmatmul.mubr.f32.gmra.mxu1 %v7625_v10  ;;  %v1052_v0 = vadd.f32 %v1051_v46, %v901_v59  ;;  %v631_v5 = vadd.f32 %v7642_v31, %v466_v54  ;;  %v773_v26 = vadd.f32 %v7644_v55, %v629_v3  ;;  %v477_v46 = vadd.f32 %v7645_v53, %v6231_v41  ;;  %v7649_v16 = vld [vmem:[#allocation55_spill] sm:$0xff]  ;;  %v7651_v59 = vld [vmem:[#allocation72_spill] sm:$0xff]  ;;  %v7653_v3 = vld [vmem:[#allocation73_spill] sm:$0xff] }
 0x15e   : > { %4676 = vst [vmem:[%s6347_s28 + $0xe0] sm:$0xff] %v1174_v43  ;;  %v1179_v19 = vadd.f32 %v1178_v50, %v1050_v7  ;;  %2954 = vmatprep.mubr.f32.mxu1 %v7615_v11  ;;  %v910_v32 = vadd.f32 %v6238_v18, %v767_v6  ;;  %v1057_v63 = vadd.f32 %v1056_v52, %v908_v25  ;;  %v7652_v43 = vld [vmem:[#allocation75_spill] sm:$0xff] }
 0x15f   : > { %v1063_v23 = vpop.f32.mrf.mxu0  ;;  %2834 = vmatmul.mubr.f32.gmra.mxu0 %v7643_v60  ;;  %v1180_v47 = vpop.f32.mrf.mxu1  ;;  %v636_v34 = vadd.f32 %v7646_v29, %v475_v9  ;;  %v775_v4 = vadd.f32 %v7647_v42, %v631_v5  ;;  %v917_v30 = vadd.f32 %v7648_v14, %v773_v26  ;;  %v638_v49 = vadd.f32 %v7649_v16, %v477_v46  ;;  %v7658_v46 = vld [vmem:[#allocation70_spill] sm:$0xff]  ;;  %v7659_v42 = vld [vmem:[#allocation28_spill] sm:$0xff]  ;;  %v7660_v14 = vld [vmem:[#allocation63_spill] sm:$0xff] }
 0x160   : > { %4684 = vst [vmem:[%s6347_s28 + $0x120] sm:$0xff] %v1179_v19  ;;  %v1181_v61 = vadd.f32 %v1180_v47, %v1052_v0  ;;  %2839 = vmatprep.mubr.f32.mxu0 %v7615_v11  ;;  %v1059_v18 = vadd.f32 %v1058_v28, %v910_v32  ;;  %v7654_v0 = vld [vmem:[#allocation15_spill] sm:$0xff]  ;;  %v7661_v16 = vld [vmem:[#allocation30_spill] sm:$0xff] }
 0x161   : > { %v1065_v36 = vpop.f32.mrf.mxu0  ;;  %v1185_v13 = vpop.f32.mrf.mxu1  ;;  %2956 = vmatmul.mubr.f32.gmra.mxu1 %v7635_v45  ;;  %v781_v7 = vadd.f32 %v7651_v59, %v636_v34  ;;  %v919_v24 = vadd.f32 %v7652_v43, %v775_v4  ;;  %v1064_v54 = vadd.f32 %v1063_v23, %v917_v30  ;;  %v783_v28 = vadd.f32 %v7653_v3, %v638_v49  ;;  %v7663_v43 = vld [vmem:[#allocation33_spill] sm:$0xff] }
 0x162   : > { %4685 = vst [vmem:[%s6347_s28 + $0x128] sm:$0xff] %v1181_v61  ;;  %v1186_v52 = vadd.f32 %v1185_v13, %v1057_v63  ;;  %2961 = vmatprep.mubr.f32.mxu1 %v7615_v11  ;;  %v7657_v61 = vld [vmem:[#allocation17_spill] sm:$0xff]  ;;  %v7662_v59 = vand.u32 4294901760, %v7622_v62 }
 0x163   : > { %v1070_v41 = vpop.f32.mrf.mxu0  ;;  %2841 = vmatmul.mubr.f32.gmra.mxu0 %v7650_v51  ;;  %v1187_v8 = vpop.f32.mrf.mxu1  ;;  %v926_v50 = vadd.f32 %v6294_v37, %v781_v7  ;;  %v1066_v12 = vadd.f32 %v1065_v36, %v919_v24  ;;  %v928_v31 = vadd.f32 %v6316_v57, %v783_v28  ;;  %v7655_v37 = vld [vmem:[#allocation66_spill] sm:$0xff]  ;;  %v7656_v57 = vld [vmem:[#allocation69_spill] sm:$0xff] }
 0x164   : > { %4693 = vst [vmem:[%s6347_s28 + $0x168] sm:$0xff] %v1186_v52  ;;  %v1188_v27 = vadd.f32 %v1187_v8, %v1059_v18  ;;  %3048 = vmatprep.mubr.f32.mxu0 %v7615_v11 }
 0x165   : > { %v1072_v9 = vpop.f32.mrf.mxu0  ;;  %v1192_v33 = vpop.f32.mrf.mxu1  ;;  %2963 = vmatmul.mubr.f32.gmra.mxu1 %v7643_v60  ;;  %v1071_v5 = vadd.f32 %v1070_v41, %v926_v50  ;;  %v7667_v50 = vld [vmem:[#allocation38_spill] sm:$0xff] }
 0x166   : > { %4694 = vst [vmem:[%s6347_s28 + $0x170] sm:$0xff] %v1188_v27  ;;  %v1193_v6 = vadd.f32 %v1192_v33, %v1064_v54  ;;  %2968 = vmatprep.mubr.f32.mxu1 %v7615_v11  ;;  %v1073_v26 = vadd.f32 %v1072_v9, %v928_v31  ;;  %v7664_v9 = vld [vmem:[#allocation36_spill] sm:$0xff] }
 0x167   : > { %v6436_v25 = vpop.f32.mrf.mxu0  ;;  %3054 = vmatmul.mubr.f32.vlgmr.msra.gmra.mxu0 %v7654_v0  ;;  %v1194_v19 = vpop.f32.mrf.mxu1 }
 0x168   : > { %4702 = vst [vmem:[%s6347_s28 + $0x1b0] sm:$0xff] %v1193_v6  ;;  %v1195_v23 = vadd.f32 %v1194_v19, %v1066_v12  ;;  %3059 = vmatprep.mubr.f32.mxu0 %v7615_v11  ;;  %3327 = vmatpush1.msra.mxu0 %v7655_v37  ;;  %v243_v6 = vld [vmem:[#allocation2 + $0x118] sm:$0xff] }
 0x169   : > { %v6443_v47 = vpop.f32.mrf.mxu0  ;;  %v1199_v55 = vpop.f32.mrf.mxu1  ;;  %2970 = vmatmul.mubr.f32.gmra.mxu1 %v7650_v51  ;;  %3330 = vmatprep.subr.mxu0 %v6209_v38 }
 0x16a   : > { %4703 = vst [vmem:[%s6347_s28 + $0x1b8] sm:$0xff] %v1195_v23  ;;  %v1200_v32 = vadd.f32 %v1199_v55, %v1071_v5  ;;  %3241 = vmatprep.mubr.f32.mxu1 %v7615_v11  ;;  %3333 = vmatpush1.msra.mxu0 %v7656_v57  ;;  %v7671_v23 = vld [vmem:[#allocation39_spill] sm:$0xff] }
 0x16b   : > { %v6450_v63 = vpop.f32.mrf.mxu0  ;;  %3065 = vmatmul.mubr.f32.gmra.mxu0 %v7657_v61  ;;  %v1201_v53 = vpop.f32.mrf.mxu1  ;;  %3336 = vmatprep.subr.mxu0 %v7658_v46  ;;  %v7681_v61 = vld [vmem:[#allocation13_spill] sm:$0xff] }
 0x16c   : > { %4711 = vst [vmem:[%s6347_s28 + $0x1f8] sm:$0xff] %v1200_v32  ;;  %v1202_v29 = vadd.f32 %v1201_v53, %v1073_v26  ;;  %3070 = vmatprep.mubr.f32.mxu0 %v7615_v11  ;;  %3339 = vmatpush1.msra.mxu0 %v6218_v2  ;;  %v6541_v26 = vand.u32 4294901760, %v243_v6 }
 0x16d   : > { %v6457_v34 = vpop.f32.mrf.mxu0  ;;  %v6459_v36 = vpop.f32.mrf.mxu1  ;;  %3243 = vmatmul.mubr.f32.vlgmr.msra.gmra.mxu1 %v5366_v21  ;;  %3342 = vmatprep.subr.mxu0 %v6226_v39 }
 0x16e   : > { %4712 = vst [vmem:[%s6347_s28 + $0x200] sm:$0xff] %v1202_v29  ;;  %3470 = vmatpush1.msra.mxu1 %v6167_v44  ;;  %3248 = vmatprep.mubr.f32.mxu1 %v7615_v11 }
 0x16f   : > { %v6466_v13 = vpop.f32.mrf.mxu0  ;;  %3076 = vmatmul.mubr.f32.gmra.mxu0 %v7659_v42  ;;  %v6469_v4 = vpop.f32.mrf.mxu1  ;;  %3472 = vmatprep.subr.mxu1 %v7660_v14  ;;  %v7679_v42 = vand.u32 4294901760, %v6209_v38  ;;  %v7685_v38 = vand.u32 4294901760, %v6218_v2 }
 0x170   : > { %3081 = vmatprep.mubr.f32.mxu0 %v7615_v11  ;;  %3474 = vmatpush1.msra.mxu1 %v6178_v58 }
 0x171   : > { %v6474_v30 = vpop.f32.mrf.mxu0  ;;  %v6476_v18 = vpop.f32.mrf.mxu1  ;;  %3250 = vmatmul.mubr.f32.gmra.mxu1 %v5398_v35  ;;  %3476 = vmatprep.subr.mxu1 %v6180_v40 }
 0x172   : > { %3255 = vmatprep.mubr.f32.mxu1 %v7615_v11  ;;  %3478 = vmatpush1.msra.mxu1 %v6183_v15 }
 0x173   : > { %v6482_v52 = vpop.f32.mrf.mxu0  ;;  %3087 = vmatmul.mubr.f32.gmra.mxu0 %v7661_v16  ;;  %v6485_v49 = vpop.f32.mrf.mxu1  ;;  %3480 = vmatprep.subr.mxu1 %v6190_v48 }
 0x174   : > { %3092 = vmatprep.mubr.f32.mxu0 %v7615_v11  ;;  %3345 = vmatpush1.msra.mxu0 %v6244_v56 }
 0x175   : > { %v6490_v41 = vpop.f32.mrf.mxu0  ;;  %v6492_v8 = vpop.f32.mrf.mxu1  ;;  %3257 = vmatmul.mubr.f32.gmra.mxu1 %v5449_v1  ;;  %3615 = vmatprep.subr.mxu0 %v7662_v59  ;;  %v7675_v59 = vld [vmem:[#allocation11_spill] sm:$0xff] }
 0x176   : > { %3262 = vmatprep.mubr.f32.mxu1 %v7615_v11  ;;  %3482 = vmatpush1.msra.mxu1 %v6214_v22 }
 0x177   : > { %v6499_v7 = vpop.f32.mrf.mxu0  ;;  %3098 = vmatmul.mubr.f32.gmra.mxu0 %v7663_v43  ;;  %v6502_v24 = vpop.f32.mrf.mxu1  ;;  %3758 = vmatprep.subr.mxu1 %v7626_v20 }
 0x178   : > { %3103 = vmatprep.mubr.f32.mxu0 %v7615_v11 }
 0x179   : > { %v6506_v54 = vpop.f32.mrf.mxu0  ;;  %v6508_v27 = vpop.f32.mrf.mxu1  ;;  %3264 = vmatmul.mubr.f32.gmra.mxu1 %v7620_v17 }
 0x17a   : > { %3269 = vmatprep.mubr.f32.mxu1 %v7615_v11 }
 0x17b   : > { %v6512_v62 = vpop.f32.mrf.mxu0  ;;  %3109 = vmatmul.mubr.f32.gmra.mxu0 %v7664_v9  ;;  %v6515_v33 = vpop.f32.mrf.mxu1  ;;  %v7677_v9 = vand.u32 4294901760, %v7655_v37 }
 0x17c   : > { %3114 = vmatprep.mubr.f32.mxu0 %v7615_v11 }
 0x17d   : > { %v6518_v3 = vpop.f32.mrf.mxu0  ;;  %v6520_v20 = vpop.f32.mrf.mxu1  ;;  %3271 = vmatmul.mubr.f32.gmra.mxu1 %v7625_v10 }
 0x17e   : > { %7665 = vst [vmem:[#allocation41_spill] sm:$0xff] %v6518_v3  ;;  %3276 = vmatprep.mubr.f32.mxu1 %v7615_v11 }
 0x17f   : > { %v6524_v28 = vpop.f32.mrf.mxu0  ;;  %3120 = vmatmul.mubr.f32.gmra.mxu0 %v7667_v50  ;;  %v6527_v12 = vpop.f32.mrf.mxu1 }
 0x180   : > { %7666 = vst [vmem:[#allocation16_spill] sm:$0xff] %v6524_v28  ;;  %3125 = vmatprep.mubr.f32.mxu0 %v7615_v11 }
 0x181   : > { %v6530_v19 = vpop.f32.mrf.mxu0  ;;  %v6532_v31 = vpop.f32.mrf.mxu1  ;;  %3278 = vmatmul.mubr.f32.gmra.mxu1 %v7635_v45 }
 0x182   : > { %7668 = vst [vmem:[#allocation40_spill] sm:$0xff] %v6530_v19  ;;  %7669 = vst [vmem:[#allocation53_spill] sm:$0xff] %v6532_v31  ;;  %3283 = vmatprep.mubr.f32.mxu1 %v7615_v11  ;;  %v7705_v31 = vld [vmem:[#allocation29_spill] sm:$0xff] }
 0x183   : > { %v6536_v5 = vpop.f32.mrf.mxu0  ;;  %3131 = vmatmul.mubr.f32.gmra.mxu0 %v7671_v23  ;;  %v6539_v55 = vpop.f32.mrf.mxu1  ;;  %v6556_v23 = vsub.f32 %v243_v6, %v6541_v26 }
 0x184   : > { %7670 = vst [vmem:[#allocation59_spill] sm:$0xff] %v6536_v5  ;;  %7672 = vst [vmem:[#allocation44_spill] sm:$0xff] %v6539_v55  ;;  %3378 = vmatprep.mubr.f32.mxu0 %v7615_v11  ;;  %v7703_v55 = vld [vmem:[#allocation60_spill] sm:$0xff] }
 0x185   : > { %v6544_v32 = vpop.f32.mrf.mxu0  ;;  %v6546_v53 = vpop.f32.mrf.mxu1  ;;  %3285 = vmatmul.mubr.f32.gmra.mxu1 %v7643_v60  ;;  %v6579_v0 = vand.u32 4294901760, %v6556_v23 }
 0x186   : > { %7673 = vst [vmem:[#allocation20_spill] sm:$0xff] %v6544_v32  ;;  %7674 = vst [vmem:[#allocation49_spill] sm:$0xff] %v6546_v53  ;;  %3290 = vmatprep.mubr.f32.mxu1 %v7615_v11  ;;  %v216_v53 = vld [vmem:[#allocation2 + $0x40] sm:$0xff] }
 0x187   : > { %v6550_v29 = vpop.f32.mrf.mxu0  ;;  %3381 = vmatmul.mubr.f32.vlgmr.msra.gmra.mxu0 %v7675_v59  ;;  %v6553_v50 = vpop.f32.mrf.mxu1  ;;  %v7680_v59 = vand.u32 4294901760, %v7656_v57  ;;  %7684 = vst [vmem:[#allocation43_spill] sm:$0xff] %v6579_v0  ;;  %v4039_v2 = vsub.f32 %v6556_v23, %v6579_v0  ;;  %v7695_v0 = vld [vmem:[#allocation23_spill] sm:$0xff] }
 0x188   : > { %7676 = vst [vmem:[#allocation57_spill] sm:$0xff] %v6553_v50  ;;  %3386 = vmatprep.mubr.f32.mxu0 %v7615_v11  ;;  %3619 = vmatpush1.msra.mxu0 %v7677_v9  ;;  %v7683_v9 = vand.u32 4294901760, %v7658_v46 }
 0x189   : > { %v6561_v43 = vpop.f32.mrf.mxu0  ;;  %v6563_v16 = vpop.f32.mrf.mxu1  ;;  %3292 = vmatmul.mubr.f32.gmra.mxu1 %v7650_v51  ;;  %3623 = vmatprep.subr.mxu0 %v7679_v42 }
 0x18a   : > { %7678 = vst [vmem:[#allocation62_spill] sm:$0xff] %v6563_v16  ;;  %3515 = vmatprep.mubr.f32.mxu1 %v7615_v11  ;;  %3627 = vmatpush1.msra.mxu0 %v7680_v59  ;;  %v7686_v59 = vld [vmem:[#allocation12_spill] sm:$0xff] }
 0x18b   : > { %v6571_v6 = vpop.f32.mrf.mxu0  ;;  %3389 = vmatmul.mubr.f32.gmra.mxu0 %v7681_v61  ;;  %v6574_v37 = vpop.f32.mrf.mxu1  ;;  %3631 = vmatprep.subr.mxu0 %v7683_v9  ;;  %v7687_v61 = vand.u32 4294901760, %v6226_v39  ;;  %v7688_v9 = vld [vmem:[#allocation18_spill] sm:$0xff] }
 0x18c   : > { %7682 = vst [vmem:[#allocation42_spill] sm:$0xff] %v6574_v37  ;;  %3394 = vmatprep.mubr.f32.mxu0 %v7615_v11  ;;  %3635 = vmatpush1.msra.mxu0 %v7685_v38  ;;  %v7690_v38 = vld [vmem:[#allocation19_spill] sm:$0xff]  ;;  %v7696_v37 = vld [vmem:[#allocation56_spill] sm:$0xff] }
 0x18d   : > { %v6584_v42 = vpop.f32.mrf.mxu0  ;;  %v6586_v57 = vpop.f32.mrf.mxu1  ;;  %3519 = vmatmul.mubr.f32.vlgmr.msra.gmra.mxu1 %v7686_v59  ;;  %3639 = vmatprep.subr.mxu0 %v7687_v61  ;;  %v7689_v61 = vld [vmem:[#allocation14_spill] sm:$0xff]  ;;  %v258_v16 = vsub.s32 2, %v7696_v37 }
 0x18e   : > { %3760 = vmatpush1.msra.mxu1 %v6167_v44  ;;  %3524 = vmatprep.mubr.f32.mxu1 %v7615_v11 }
 0x18f   : > { %v6593_v46 = vpop.f32.mrf.mxu0  ;;  %3397 = vmatmul.mubr.f32.gmra.mxu0 %v7688_v9  ;;  %v6596_v51 = vpop.f32.mrf.mxu1  ;;  %3762 = vmatprep.subr.mxu1 %v7660_v14 }
 0x190   : > { %3402 = vmatprep.mubr.f32.mxu0 %v7615_v11  ;;  %3764 = vmatpush1.msra.mxu1 %v6178_v58  ;;  %v6617_v58 = vand.u32 4294901760, %v4039_v2  ;;  %v7693_v2 = vld [vmem:[#allocation24_spill] sm:$0xff] }
 0x191   : > { %v6603_v39 = vpop.f32.mrf.mxu0  ;;  %v6605_v44 = vpop.f32.mrf.mxu1  ;;  %3528 = vmatmul.mubr.f32.gmra.mxu1 %v7689_v61  ;;  %3766 = vmatprep.subr.mxu1 %v6180_v40  ;;  %v7691_v61 = vand.u32 4294901760, %v6244_v56  ;;  %v234_v56 = vld [vmem:[#allocation2 + $0xd0] sm:$0xff] }
 0x192   : > { %3533 = vmatprep.mubr.f32.mxu1 %v7615_v11  ;;  %3768 = vmatpush1.msra.mxu1 %v6183_v15  ;;  %v7692_v15 = vld [vmem:[#allocation22_spill] sm:$0xff]  ;;  %v6649_v50 = vand.u32 4294901760, %v234_v56 }
 0x193   : > { %v6611_v14 = vpop.f32.mrf.mxu0  ;;  %3405 = vmatmul.mubr.f32.gmra.mxu0 %v7690_v38  ;;  %v6614_v59 = vpop.f32.mrf.mxu1  ;;  %3770 = vmatprep.subr.mxu1 %v6190_v48 }
 0x194   : > { %3410 = vmatprep.mubr.f32.mxu0 %v7615_v11  ;;  %3643 = vmatpush1.msra.mxu0 %v7691_v61 }
 0x195   : > { %v6622_v40 = vpop.f32.mrf.mxu0  ;;  %v6624_v9 = vpop.f32.mrf.mxu1  ;;  %3537 = vmatmul.mubr.f32.gmra.mxu1 %v7692_v15  ;;  %4907 = vmatprep.subr.mxu0 %v6541_v26 }
 0x196   : > { %3542 = vmatprep.mubr.f32.mxu1 %v7615_v11  ;;  %3772 = vmatpush1.msra.mxu1 %v6214_v22  ;;  %v225_v22 = vld [vmem:[#allocation2 + $0x88] sm:$0xff] }
 0x197   : > { %v6630_v48 = vpop.f32.mrf.mxu0  ;;  %3413 = vmatmul.mubr.f32.gmra.mxu0 %v7693_v2  ;;  %v6633_v38 = vpop.f32.mrf.mxu1  ;;  %4927 = vmatprep.subr.mxu1 %v6617_v58  ;;  %v7698_v2 = vld [vmem:[#allocation26_spill] sm:$0xff]  ;;  %v6657_v45 = vand.u32 4294901760, %v225_v22 }
 0x198   : > { %3418 = vmatprep.mubr.f32.mxu0 %v7615_v11 }
 0x199   : > { %v6637_v61 = vpop.f32.mrf.mxu0  ;;  %v6639_v15 = vpop.f32.mrf.mxu1  ;;  %3546 = vmatmul.mubr.f32.gmra.mxu1 %v7695_v0  ;;  %v7702_v0 = vld [vmem:[#allocation27_spill] sm:$0xff]  ;;  %v6681_v3 = vsub.f32 %v225_v22, %v6657_v45 }
 0x19a   : > { %7694 = vst [vmem:[#allocation46_spill] sm:$0xff] %v6637_v61  ;;  %3551 = vmatprep.mubr.f32.mxu1 %v7615_v11  ;;  %v6660_v61 = vrot.slane %v7703_v55, %v258_v16 }
 0x19b   : > { %v6644_v32 = vpop.f32.mrf.mxu0  ;;  %3421 = vmatmul.mubr.f32.gmra.mxu0 %v7698_v2  ;;  %v6647_v60 = vpop.f32.mrf.mxu1  ;;  %v262_v2 = vsub.s32 3, %v7696_v37  ;;  %v7710_v37 = vld [vmem:[#allocation31_spill] sm:$0xff] }
 0x19c   : > { %7697 = vst [vmem:[#allocation58_spill] sm:$0xff] %v6644_v32  ;;  %7699 = vst [vmem:[#allocation65_spill] sm:$0xff] %v6647_v60  ;;  %3426 = vmatprep.mubr.f32.mxu0 %v7615_v11 }
 0x19d   : > { %v6652_v5 = vpop.f32.mrf.mxu0  ;;  %v6654_v19 = vpop.f32.mrf.mxu1  ;;  %3555 = vmatmul.mubr.f32.gmra.mxu1 %v7702_v0 }
 0x19e   : > { %7700 = vst [vmem:[#allocation48_spill] sm:$0xff] %v6652_v5  ;;  %7701 = vst [vmem:[#allocation61_spill] sm:$0xff] %v6654_v19  ;;  %3560 = vmatprep.mubr.f32.mxu1 %v7615_v11  ;;  %v6670_v5 = vsub.f32 %v234_v56, %v6649_v50  ;;  %v6672_v19 = vand.u32 4294901760, %v216_v53 }
 0x19f   : > { %v6664_v32 = vpop.f32.mrf.mxu0  ;;  %3429 = vmatmul.mubr.f32.gmra.mxu0 %v7705_v31  ;;  %v6667_v28 = vpop.f32.mrf.mxu1  ;;  %v1284_v31 = vadd.f32 %v6436_v25, %v6660_v61 }
 0x1a0   : > { %7704 = vst [vmem:[#allocation68_spill] sm:$0xff] %v6664_v32  ;;  %7706 = vst [vmem:[#allocation45_spill] sm:$0xff] %v6667_v28  ;;  %3434 = vmatprep.mubr.f32.mxu0 %v7615_v11  ;;  %v6686_v32 = vrot.slane %v7703_v55, %v262_v2  ;;  %v7712_v28 = vld [vmem:[#allocation35_spill] sm:$0xff]  ;;  %v6698_v22 = vsub.f32 %v216_v53, %v6672_v19  ;;  %v7717_v2 = vld [vmem:[#allocation34_spill] sm:$0xff] }
 0x1a1   : > { %7707 = vst [vmem:[#allocation47_spill] sm:$0xff] %v6670_v5  ;;  %v6675_v0 = vpop.f32.mrf.mxu0  ;;  %v6677_v16 = vpop.f32.mrf.mxu1  ;;  %3564 = vmatmul.mubr.f32.gmra.mxu1 %v7710_v37  ;;  %v6707_v37 = vand.u32 4294901760, %v6681_v3  ;;  %v1473_v53 = vadd.f32 %v6459_v36, %v1284_v31  ;;  %v1306_v36 = vadd.f32 %v6466_v13, %v6660_v61 }
 0x1a2   : > { %7708 = vst [vmem:[#allocation51_spill] sm:$0xff] %v6675_v0  ;;  %7709 = vst [vmem:[#allocation64_spill] sm:$0xff] %v6677_v16  ;;  %3569 = vmatprep.mubr.f32.mxu1 %v7615_v11  ;;  %v6695_v16 = vand.u32 4294901760, %v6670_v5 }
 0x1a3   : > { %v6689_v56 = vpop.f32.mrf.mxu0  ;;  %3437 = vmatmul.mubr.f32.gmra.mxu0 %v7712_v28  ;;  %v6692_v0 = vpop.f32.mrf.mxu1  ;;  %7718 = vst [vmem:[#allocation74_spill] sm:$0xff] %v6707_v37  ;;  %v1286_v28 = vadd.f32 %v6443_v47, %v6686_v32  ;;  %v1611_v60 = vadd.f32 %v6550_v29, %v1473_v53 }
 0x1a4   : > { %7711 = vst [vmem:[#allocation52_spill] sm:$0xff] %v6689_v56  ;;  %7713 = vst [vmem:[#allocation67_spill] sm:$0xff] %v6692_v0  ;;  %3676 = vmatprep.mubr.f32.mxu0 %v7615_v11  ;;  %v1295_v56 = vadd.f32 %v6450_v63, %v6660_v61  ;;  %v1297_v63 = vadd.f32 %v6457_v34, %v6686_v32  ;;  %v1308_v34 = vadd.f32 %v6474_v30, %v6686_v32 }
 0x1a5   : > { %7714 = vst [vmem:[#allocation50_spill] sm:$0xff] %v6695_v16  ;;  %v6701_v25 = vpop.f32.mrf.mxu0  ;;  %v6703_v55 = vpop.f32.mrf.mxu1  ;;  %3573 = vmatmul.mubr.f32.gmra.mxu1 %v7717_v2  ;;  %v4046_v2 = vsub.f32 %v6670_v5, %v6695_v16  ;;  %v1475_v47 = vadd.f32 %v6469_v4, %v1286_v28  ;;  %v7720_v16 = vld [vmem:[#allocation37_spill] sm:$0xff]  ;;  %v4053_v4 = vsub.f32 %v6681_v3, %v6707_v37 }
 0x1a6   : > { %7715 = vst [vmem:[#allocation54_spill] sm:$0xff] %v6701_v25  ;;  %7716 = vst [vmem:[#allocation71_spill] sm:$0xff] %v6703_v55  ;;  %3578 = vmatprep.mubr.f32.mxu1 %v7615_v11  ;;  %v6721_v55 = vand.u32 4294901760, %v6698_v22  ;;  %v1480_v28 = vadd.f32 %v6476_v18, %v1295_v56  ;;  %v1749_v53 = vadd.f32 %v6586_v57, %v1611_v60 }
 0x1a7   : > { %v1907_v0 = vpop.f32.mrf.mxu0  ;;  %3678 = vmatmul.mubr.f32.vlgmr.msra.gmra.mxu0 %v5366_v21  ;;  %v6716_v25 = vpop.f32.mrf.mxu1  ;;  %v1613_v29 = vadd.f32 %v6561_v43, %v1475_v47  ;;  %v1482_v13 = vadd.f32 %v6485_v49, %v1297_v63  ;;  %v4047_v37 = vand.u32 4294901760, %v4046_v2  ;;  %v1317_v30 = vadd.f32 %v6482_v52, %v6660_v61 }
 0x1a8   : > { %7719 = vst [vmem:[#allocation55_spill] sm:$0xff] %v6716_v25  ;;  %3683 = vmatprep.mubr.f32.mxu0 %v7615_v11  ;;  %4908 = vmatpush3.msra.mxu0 %v6541_v26  ;;  %v4060_v60 = vsub.f32 %v6698_v22, %v6721_v55  ;;  %v1619_v18 = vadd.f32 %v6571_v6, %v1480_v28  ;;  %v4054_v63 = vand.u32 4294901760, %v4053_v4 }
 0x1a9   : > { %v1909_v31 = vpop.f32.mrf.mxu0  ;;  %v6731_v25 = vpop.f32.mrf.mxu1  ;;  %3582 = vmatmul.mubr.f32.gmra.mxu1 %v7720_v16  ;;  %4909 = vmatprep.subr.mxu0 %v6649_v50  ;;  %v1751_v43 = vadd.f32 %v6596_v51, %v1613_v29  ;;  %v1908_v57 = vadd.f32 %v1907_v0, %v1749_v53  ;;  %v1487_v49 = vadd.f32 %v6492_v8, %v1306_v36 }
 0x1aa   : > { %3805 = vmatprep.mubr.f32.mxu1 %v7615_v11  ;;  %4910 = vmatpush3.msra.mxu0 %v6649_v50  ;;  %v1621_v56 = vadd.f32 %v6584_v42, %v1482_v13  ;;  %v1758_v51 = vadd.f32 %v6605_v44, %v1619_v18  ;;  %v1319_v52 = vadd.f32 %v6490_v41, %v6686_v32  ;;  %v4061_v28 = vand.u32 4294901760, %v4060_v60 }
 0x1ab   : > { %v1914_v16 = vpop.f32.mrf.mxu0  ;;  %3685 = vmatmul.mubr.f32.gmra.mxu0 %v5398_v35  ;;  %v6746_v5 = vpop.f32.mrf.mxu1  ;;  %4911 = vmatprep.subr.mxu0 %v6657_v45  ;;  %v1910_v0 = vadd.f32 %v1909_v31, %v1751_v43  ;;  %v1489_v8 = vadd.f32 %v6502_v24, %v1308_v34  ;;  %v1627_v42 = vadd.f32 %v6593_v46, %v1487_v49 }
 0x1ac   : > { %3690 = vmatprep.mubr.f32.mxu0 %v7615_v11  ;;  %4912 = vmatpush3.msra.mxu0 %v6657_v45  ;;  %v1760_v44 = vadd.f32 %v6614_v59, %v1621_v56  ;;  %v1915_v31 = vadd.f32 %v1914_v16, %v1758_v51  ;;  %v1328_v41 = vadd.f32 %v6499_v7, %v6660_v61  ;;  %v7722_v51 = vld [vmem:[#allocation41_spill] sm:$0xff] }
 0x1ad   : > { %v1916_v2 = vpop.f32.mrf.mxu0  ;;  %v2036_v47 = vpop.f32.mrf.mxu1  ;;  %3807 = vmatmul.mubr.f32.vlgmr.msra.gmra.mxu1 %v5366_v21  ;;  %4913 = vmatprep.subr.mxu0 %v6672_v19  ;;  %v1494_v24 = vadd.f32 %v6508_v27, %v1317_v30  ;;  %v1629_v46 = vadd.f32 %v6603_v39, %v1489_v8  ;;  %v1767_v59 = vadd.f32 %v6624_v9, %v1627_v42 }
 0x1ae   : > { %v2037_v6 = vadd.f32 %v2036_v47, %v1908_v57  ;;  %4928 = vmatpush3.msra.mxu1 %v6617_v58  ;;  %3812 = vmatprep.mubr.f32.mxu1 %v7615_v11  ;;  %v1917_v16 = vadd.f32 %v1916_v2, %v1760_v44  ;;  %v1330_v7 = vadd.f32 %v6506_v54, %v6686_v32  ;;  %v7721_v2 = vld [vmem:[#allocation65_spill] sm:$0xff] }
 0x1af   : > { %v1921_v36 = vpop.f32.mrf.mxu0  ;;  %3692 = vmatmul.mubr.f32.gmra.mxu0 %v5449_v1  ;;  %v2038_v4 = vpop.f32.mrf.mxu1  ;;  %4929 = vmatprep.subr.mxu1 %v4047_v37  ;;  %v1496_v27 = vadd.f32 %v6515_v33, %v1319_v52  ;;  %v1769_v9 = vadd.f32 %v6633_v38, %v1629_v46  ;;  %v1339_v54 = vadd.f32 %v6512_v62, %v6660_v61  ;;  %v7724_v52 = vld [vmem:[#allocation53_spill] sm:$0xff] }
 0x1b0   : > { %4650 = vst [vmem:[%s6347_s28 + $0x10] sm:$0xff] %v2037_v6  ;;  %v2039_v58 = vadd.f32 %v2038_v4, %v1910_v0  ;;  %3697 = vmatprep.mubr.f32.mxu0 %v7615_v11  ;;  %4930 = vmatpush3.msra.mxu1 %v4047_v37  ;;  %v1635_v37 = vadd.f32 %v6611_v14, %v1494_v24 }
 0x1b1   : > { %v1923_v29 = vpop.f32.mrf.mxu0  ;;  %v2043_v53 = vpop.f32.mrf.mxu1  ;;  %3814 = vmatmul.mubr.f32.gmra.mxu1 %v5398_v35  ;;  %4931 = vmatprep.subr.mxu1 %v4054_v63  ;;  %v1922_v60 = vadd.f32 %v1921_v36, %v1767_v59  ;;  %v1501_v33 = vadd.f32 %v6520_v20, %v1328_v41  ;;  %v1637_v14 = vadd.f32 %v6622_v40, %v1496_v27  ;;  %v7727_v41 = vld [vmem:[#allocation44_spill] sm:$0xff]  ;;  %v7729_v59 = vld [vmem:[#allocation58_spill] sm:$0xff] }
 0x1b2   : > { %4651 = vst [vmem:[%s6347_s28 + $0x18] sm:$0xff] %v2039_v58  ;;  %v2044_v34 = vadd.f32 %v2043_v53, %v1915_v31  ;;  %3819 = vmatprep.mubr.f32.mxu1 %v7615_v11  ;;  %4932 = vmatpush3.msra.mxu1 %v4054_v63  ;;  %v1776_v38 = vadd.f32 %v6639_v15, %v1635_v37 }
 0x1b3   : > { %v1928_v39 = vpop.f32.mrf.mxu0  ;;  %3699 = vmatmul.mubr.f32.gmra.mxu0 %v7620_v17  ;;  %v2045_v13 = vpop.f32.mrf.mxu1  ;;  %4933 = vmatprep.subr.mxu1 %v4061_v28  ;;  %v1924_v30 = vadd.f32 %v1923_v29, %v1769_v9  ;;  %v1503_v62 = vadd.f32 %v6527_v12, %v1330_v7  ;;  %v1643_v56 = vadd.f32 %v6630_v48, %v1501_v33  ;;  %v7723_v12 = vld [vmem:[#allocation16_spill] sm:$0xff]  ;;  %v7725_v48 = vld [vmem:[#allocation46_spill] sm:$0xff]  ;;  %v7728_v29 = vld [vmem:[#allocation21_spill] sm:$0xff] }
 0x1b4   : > { %4659 = vst [vmem:[%s6347_s28 + $0x58] sm:$0xff] %v2044_v34  ;;  %v2046_v18 = vadd.f32 %v2045_v13, %v1917_v16  ;;  %3704 = vmatprep.mubr.f32.mxu0 %v7615_v11  ;;  %4914 = vmatpush3.msra.mxu0 %v6672_v19  ;;  %v1778_v47 = vadd.f32 %v7721_v2, %v1637_v14  ;;  %v7730_v34 = vld [vmem:[#allocation45_spill] sm:$0xff]  ;;  %v7732_v9 = vld [vmem:[#allocation59_spill] sm:$0xff] }
 0x1b5   : > { %v1930_v43 = vpop.f32.mrf.mxu0  ;;  %v2050_v57 = vpop.f32.mrf.mxu1  ;;  %3821 = vmatmul.mubr.f32.gmra.mxu1 %v5449_v1  ;;  %4947 = vmatprep.subr.mxu0 %v6556_v23  ;;  %v1929_v15 = vadd.f32 %v1928_v39, %v1776_v38  ;;  %v1341_v0 = vadd.f32 %v7722_v51, %v6686_v32  ;;  %v1350_v6 = vadd.f32 %v7723_v12, %v6660_v61  ;;  %v7731_v39 = vld [vmem:[#allocation40_spill] sm:$0xff] }
 0x1b6   : > { %4660 = vst [vmem:[%s6347_s28 + $0x60] sm:$0xff] %v2046_v18  ;;  %v2051_v49 = vadd.f32 %v2050_v57, %v1922_v60  ;;  %3826 = vmatprep.mubr.f32.mxu1 %v7615_v11  ;;  %4934 = vmatpush3.msra.mxu1 %v4061_v28  ;;  %v1508_v8 = vadd.f32 %v7724_v52, %v1339_v54  ;;  %v7726_v28 = vld [vmem:[#allocation61_spill] sm:$0xff]  ;;  %v7735_v38 = vld [vmem:[#allocation64_spill] sm:$0xff] }
 0x1b7   : > { %v1935_v20 = vpop.f32.mrf.mxu0  ;;  %3706 = vmatmul.mubr.f32.gmra.mxu0 %v7625_v10  ;;  %v2052_v40 = vpop.f32.mrf.mxu1  ;;  %4967 = vmatprep.subr.mxu1 %v6541_v26  ;;  %v1645_v4 = vadd.f32 %v7725_v48, %v1503_v62  ;;  %v1785_v44 = vadd.f32 %v7726_v28, %v1643_v56  ;;  %v1931_v31 = vadd.f32 %v1930_v43, %v1778_v47  ;;  %v7733_v18 = vld [vmem:[#allocation49_spill] sm:$0xff]  ;;  %v7734_v43 = vld [vmem:[#allocation48_spill] sm:$0xff] }
 0x1b8   : > { %4668 = vst [vmem:[%s6347_s28 + $0xa0] sm:$0xff] %v2051_v49  ;;  %v2053_v63 = vadd.f32 %v2052_v40, %v1924_v30  ;;  %3711 = vmatprep.mubr.f32.mxu0 %v7615_v11  ;;  %v1510_v24 = vadd.f32 %v7727_v41, %v1341_v0  ;;  %v1651_v16 = vadd.f32 %v7729_v59, %v1508_v8  ;;  %v7738_v47 = vld [vmem:[#allocation68_spill] sm:$0xff]  ;;  %v7741_v8 = vld [vmem:[#allocation62_spill] sm:$0xff] }
 0x1b9   : > { %v1937_v42 = vpop.f32.mrf.mxu0  ;;  %v2057_v36 = vpop.f32.mrf.mxu1  ;;  %3828 = vmatmul.mubr.f32.gmra.mxu1 %v7620_v17  ;;  %v1787_v7 = vadd.f32 %v7730_v34, %v1645_v4  ;;  %v1936_v27 = vadd.f32 %v1935_v20, %v1785_v44  ;;  %v1352_v13 = vadd.f32 %v7731_v39, %v6686_v32  ;;  %v1361_v60 = vadd.f32 %v7732_v9, %v6660_v61  ;;  %v7736_v20 = vld [vmem:[#allocation57_spill] sm:$0xff]  ;;  %v7742_v4 = vld [vmem:[#allocation51_spill] sm:$0xff] }
 0x1ba   : > { %4669 = vst [vmem:[%s6347_s28 + $0xa8] sm:$0xff] %v2053_v63  ;;  %v2058_v58 = vadd.f32 %v2057_v36, %v1929_v15  ;;  %3833 = vmatprep.mubr.f32.mxu1 %v7615_v11  ;;  %v1515_v54 = vadd.f32 %v7733_v18, %v1350_v6  ;;  %v1653_v57 = vadd.f32 %v7734_v43, %v1510_v24  ;;  %v7737_v61 = vld [vmem:[#allocation25_spill] sm:$0xff]  ;;  %v7739_v63 = vld [vmem:[#allocation67_spill] sm:$0xff]  ;;  %v7740_v6 = vld [vmem:[#allocation20_spill] sm:$0xff] }
 0x1bb   : > { %v1942_v46 = vpop.f32.mrf.mxu0  ;;  %3713 = vmatmul.mubr.f32.gmra.mxu0 %v7728_v29  ;;  %v2059_v53 = vpop.f32.mrf.mxu1  ;;  %v1794_v30 = vadd.f32 %v7735_v38, %v1651_v16  ;;  %v1938_v49 = vadd.f32 %v1937_v42, %v1787_v7  ;;  %v1517_v40 = vadd.f32 %v7736_v20, %v1352_v13  ;;  %v1363_v52 = vadd.f32 %v7740_v6, %v6686_v32  ;;  %v7743_v44 = vld [vmem:[#allocation71_spill] sm:$0xff]  ;;  %v7744_v24 = vld [vmem:[#allocation42_spill] sm:$0xff]  ;;  %v7746_v16 = vld [vmem:[#allocation52_spill] sm:$0xff] }
 0x1bc   : > { %4677 = vst [vmem:[%s6347_s28 + $0xe8] sm:$0xff] %v2058_v58  ;;  %v2060_v37 = vadd.f32 %v2059_v53, %v1931_v31  ;;  %3718 = vmatprep.mubr.f32.mxu0 %v7615_v11  ;;  %v1659_v15 = vadd.f32 %v7738_v47, %v1515_v54  ;;  %v1796_v51 = vadd.f32 %v7739_v63, %v1653_v57  ;;  %v7745_v53 = vld [vmem:[#allocation32_spill] sm:$0xff]  ;;  %v7747_v7 = vld [vmem:[#allocation55_spill] sm:$0xff]  ;;  %v7749_v18 = vld [vmem:[#allocation54_spill] sm:$0xff] }
 0x1bd   : > { %v1944_v33 = vpop.f32.mrf.mxu0  ;;  %v2064_v14 = vpop.f32.mrf.mxu1  ;;  %3835 = vmatmul.mubr.f32.gmra.mxu1 %v7625_v10  ;;  %v1943_v0 = vadd.f32 %v1942_v46, %v1794_v30  ;;  %v1522_v42 = vadd.f32 %v7741_v8, %v1361_v60  ;;  %v1661_v28 = vadd.f32 %v7742_v4, %v1517_v40  ;;  %v1524_v46 = vadd.f32 %v7744_v24, %v1363_v52  ;;  %v7748_v13 = vld [vmem:[#allocation15_spill] sm:$0xff]  ;;  %v7750_v38 = vld [vmem:[#allocation17_spill] sm:$0xff]  ;;  %v7751_v40 = vld [vmem:[#allocation28_spill] sm:$0xff] }
 0x1be   : > { %4678 = vst [vmem:[%s6347_s28 + $0xf0] sm:$0xff] %v2060_v37  ;;  %v2065_v62 = vadd.f32 %v2064_v14, %v1936_v27  ;;  %3840 = vmatprep.mubr.f32.mxu1 %v7615_v11  ;;  %v1803_v31 = vadd.f32 %v7743_v44, %v1659_v15  ;;  %v1945_v58 = vadd.f32 %v1944_v33, %v1796_v51  ;;  %v7753_v15 = vld [vmem:[#allocation30_spill] sm:$0xff]  ;;  %v7754_v51 = vld [vmem:[#allocation33_spill] sm:$0xff]  ;;  %v7755_v52 = vld [vmem:[#allocation36_spill] sm:$0xff] }
 0x1bf   : > { %v1949_v56 = vpop.f32.mrf.mxu0  ;;  %3720 = vmatmul.mubr.f32.gmra.mxu0 %v7737_v61  ;;  %v2066_v2 = vpop.f32.mrf.mxu1  ;;  %v1667_v34 = vadd.f32 %v7746_v16, %v1522_v42  ;;  %v1805_v27 = vadd.f32 %v7747_v7, %v1661_v28  ;;  %v1669_v54 = vadd.f32 %v7749_v18, %v1524_v46  ;;  %v7757_v4 = vld [vmem:[#allocation39_spill] sm:$0xff]  ;;  %v7760_v24 = vld [vmem:[#allocation13_spill] sm:$0xff]  ;;  %v7763_v7 = vld [vmem:[#allocation12_spill] sm:$0xff] }
 0x1c0   : > { %4686 = vst [vmem:[%s6347_s28 + $0x130] sm:$0xff] %v2065_v62  ;;  %v2067_v12 = vadd.f32 %v2066_v2, %v1938_v49  ;;  %3725 = vmatprep.mubr.f32.mxu0 %v7615_v11  ;;  %v1950_v37 = vadd.f32 %v1949_v56, %v1803_v31  ;;  %v7758_v44 = vld [vmem:[#allocation11_spill] sm:$0xff] }
 0x1c1   : > { %v1951_v36 = vpop.f32.mrf.mxu0  ;;  %v2071_v48 = vpop.f32.mrf.mxu1  ;;  %3842 = vmatmul.mubr.f32.gmra.mxu1 %v7728_v29  ;;  %v1812_v33 = vadd.f32 %v6731_v25, %v1667_v34  ;;  %v1814_v49 = vadd.f32 %v6746_v5, %v1669_v54  ;;  %v7762_v34 = vld [vmem:[#allocation50_spill] sm:$0xff] }
 0x1c2   : > { %4687 = vst [vmem:[%s6347_s28 + $0x138] sm:$0xff] %v2067_v12  ;;  %v2072_v41 = vadd.f32 %v2071_v48, %v1943_v0  ;;  %3847 = vmatprep.mubr.f32.mxu1 %v7615_v11  ;;  %v1952_v14 = vadd.f32 %v1951_v36, %v1805_v27  ;;  %v7767_v54 = vld [vmem:[#allocation14_spill] sm:$0xff] }
 0x1c3   : > { %v1956_v32 = vpop.f32.mrf.mxu0  ;;  %3727 = vmatmul.mubr.f32.gmra.mxu0 %v7745_v53  ;;  %v2073_v59 = vpop.f32.mrf.mxu1 }
 0x1c4   : > { %4695 = vst [vmem:[%s6347_s28 + $0x178] sm:$0xff] %v2072_v41  ;;  %v2074_v39 = vadd.f32 %v2073_v59, %v1945_v58  ;;  %4915 = vmatprep.mubr.f32.mxu0 %v7748_v13  ;;  %v1957_v62 = vadd.f32 %v1956_v32, %v1812_v33  ;;  %v7761_v32 = vld [vmem:[#allocation18_spill] sm:$0xff] }
 0x1c5   : > { %v1958_v9 = vpop.f32.mrf.mxu0  ;;  %v2078_v60 = vpop.f32.mrf.mxu1  ;;  %3849 = vmatmul.mubr.f32.gmra.mxu1 %v7737_v61  ;;  %v7765_v13 = vld [vmem:[#allocation74_spill] sm:$0xff] }
 0x1c6   : > { %4696 = vst [vmem:[%s6347_s28 + $0x180] sm:$0xff] %v2074_v39  ;;  %v2079_v43 = vadd.f32 %v2078_v60, %v1950_v37  ;;  %3854 = vmatprep.mubr.f32.mxu1 %v7615_v11  ;;  %v7752_v11 = vld [vmem:[#allocation47_spill] sm:$0xff]  ;;  %v1959_v2 = vadd.f32 %v1958_v9, %v1814_v49  ;;  %v7766_v9 = vld [vmem:[#allocation24_spill] sm:$0xff]  ;;  %v7768_v33 = vld [vmem:[#allocation22_spill] sm:$0xff] }
 0x1c7   : > { %v6856_v57 = vpop.f32.mrf.mxu0  ;;  %4916 = vmatmul.mubr.f32.vlgmr.msra.gmra.mxu0 %v7750_v38  ;;  %v2080_v30 = vpop.f32.mrf.mxu1  ;;  %v7764_v37 = vld [vmem:[#allocation19_spill] sm:$0xff] }
 0x1c8   : > { %4704 = vst [vmem:[%s6347_s28 + $0x1c0] sm:$0xff] %v2079_v43  ;;  %v2081_v20 = vadd.f32 %v2080_v30, %v1952_v14  ;;  %4918 = vmatprep.mubr.f32.mxu0 %v7751_v40  ;;  %4948 = vmatpush3.msra.mxu0 %v6556_v23  ;;  %v7769_v43 = vld [vmem:[#allocation26_spill] sm:$0xff]  ;;  %v7770_v30 = vld [vmem:[#allocation29_spill] sm:$0xff] }
 0x1c9   : > { %v6863_v25 = vpop.f32.mrf.mxu0  ;;  %v2085_v56 = vpop.f32.mrf.mxu1  ;;  %3856 = vmatmul.mubr.f32.gmra.mxu1 %v7745_v53  ;;  %4949 = vmatprep.subr.mxu0 %v7752_v11 }
 0x1ca   : > { %4705 = vst [vmem:[%s6347_s28 + $0x1c8] sm:$0xff] %v2081_v20  ;;  %v2086_v47 = vadd.f32 %v2085_v56, %v1957_v62  ;;  %4935 = vmatprep.mubr.f32.mxu1 %v5366_v21  ;;  %4950 = vmatpush3.msra.mxu0 %v7752_v11  ;;  %v7771_v20 = vld [vmem:[#allocation23_spill] sm:$0xff] }
 0x1cb   : > { %v6870_v5 = vpop.f32.mrf.mxu0  ;;  %4919 = vmatmul.mubr.f32.gmra.mxu0 %v7753_v15  ;;  %v2087_v23 = vpop.f32.mrf.mxu1  ;;  %4951 = vmatprep.subr.mxu0 %v6681_v3  ;;  %v7773_v56 = vld [vmem:[#allocation35_spill] sm:$0xff] }
 0x1cc   : > { %4713 = vst [vmem:[%s6347_s28 + $0x208] sm:$0xff] %v2086_v47  ;;  %v2088_v63 = vadd.f32 %v2087_v23, %v1959_v2  ;;  %4921 = vmatprep.mubr.f32.mxu0 %v7754_v51  ;;  %4952 = vmatpush3.msra.mxu0 %v6681_v3  ;;  %v7756_v3 = vld [vmem:[#allocation38_spill] sm:$0xff]  ;;  %v7779_v51 = vld [vmem:[#allocation37_spill] sm:$0xff] }
 0x1cd   : > { %v6877_v0 = vpop.f32.mrf.mxu0  ;;  %v6879_v12 = vpop.f32.mrf.mxu1  ;;  %4936 = vmatmul.mubr.f32.vlgmr.msra.gmra.mxu1 %v5398_v35  ;;  %4953 = vmatprep.subr.mxu0 %v6698_v22  ;;  %v7776_v47 = vld [vmem:[#allocation34_spill] sm:$0xff] }
 0x1ce   : > { %4714 = vst [vmem:[%s6347_s28 + $0x210] sm:$0xff] %v2088_v63  ;;  %4968 = vmatpush3.msra.mxu1 %v6541_v26  ;;  %4938 = vmatprep.mubr.f32.mxu1 %v5449_v1 }
 0x1cf   : > { %v6886_v6 = vpop.f32.mrf.mxu0  ;;  %4922 = vmatmul.mubr.f32.gmra.mxu0 %v7755_v52  ;;  %v6889_v8 = vpop.f32.mrf.mxu1  ;;  %4969 = vmatprep.subr.mxu1 %v6649_v50 }
 0x1d0   : > { %4924 = vmatprep.mubr.f32.mxu0 %v7756_v3  ;;  %4970 = vmatpush3.msra.mxu1 %v6649_v50 }
 0x1d1   : > { %v6894_v42 = vpop.f32.mrf.mxu0  ;;  %v6896_v36 = vpop.f32.mrf.mxu1  ;;  %4939 = vmatmul.mubr.f32.gmra.mxu1 %v7620_v17  ;;  %4954 = vmatpush3.msra.mxu0 %v6698_v22  ;;  %v7759_v22 = vld [vmem:[#allocation43_spill] sm:$0xff] }
 0x1d2   : > { %4941 = vmatprep.mubr.f32.mxu1 %v7625_v10  ;;  %4971 = vmatprep.subr.mxu1 %v6657_v45 }
 0x1d3   : > { %v6902_v48 = vpop.f32.mrf.mxu0  ;;  %4925 = vmatmul.mubr.f32.gmra.mxu0 %v7757_v4  ;;  %v6905_v28 = vpop.f32.mrf.mxu1  ;;  %4972 = vmatpush3.msra.mxu1 %v6657_v45 }
 0x1d4   : > { %4955 = vmatprep.mubr.f32.mxu0 %v7758_v44  ;;  %4973 = vmatprep.subr.mxu1 %v6672_v19 }
 0x1d5   : > { %v6910_v31 = vpop.f32.mrf.mxu0  ;;  %v6912_v58 = vpop.f32.mrf.mxu1  ;;  %4942 = vmatmul.mubr.f32.gmra.mxu1 %v7728_v29  ;;  %4987 = vmatprep.subr.mxu0 %v7759_v22 }
 0x1d6   : > { %4944 = vmatprep.mubr.f32.mxu1 %v7737_v61  ;;  %4974 = vmatpush3.msra.mxu1 %v6672_v19 }
 0x1d7   : > { %v6918_v41 = vpop.f32.mrf.mxu0  ;;  %4956 = vmatmul.mubr.f32.vlgmr.msra.gmra.mxu0 %v7760_v24  ;;  %v6921_v46 = vpop.f32.mrf.mxu1  ;;  %5007 = vmatprep.subr.mxu1 %v6541_v26 }
 0x1d8   : > { %4958 = vmatprep.mubr.f32.mxu0 %v7761_v32  ;;  %4988 = vmatpush3.msra.mxu0 %v7759_v22 }
 0x1d9   : > { %v6926_v59 = vpop.f32.mrf.mxu0  ;;  %v6928_v16 = vpop.f32.mrf.mxu1  ;;  %4945 = vmatmul.mubr.f32.gmra.mxu1 %v7745_v53  ;;  %4989 = vmatprep.subr.mxu0 %v7762_v34 }
 0x1da   : > { %4975 = vmatprep.mubr.f32.mxu1 %v7763_v7  ;;  %4990 = vmatpush3.msra.mxu0 %v7762_v34 }
 0x1db   : > { %v6934_v27 = vpop.f32.mrf.mxu0  ;;  %4959 = vmatmul.mubr.f32.gmra.mxu0 %v7764_v37  ;;  %v6937_v39 = vpop.f32.mrf.mxu1  ;;  %4991 = vmatprep.subr.mxu0 %v7765_v13 }
 0x1dc   : > { %4961 = vmatprep.mubr.f32.mxu0 %v7766_v9  ;;  %4992 = vmatpush3.msra.mxu0 %v7765_v13  ;;  %v7781_v13 = vld [vmem:[#allocation56_spill] sm:$0xff] }
 0x1dd   : > { %v6942_v60 = vpop.f32.mrf.mxu0  ;;  %v6944_v18 = vpop.f32.mrf.mxu1  ;;  %4976 = vmatmul.mubr.f32.vlgmr.msra.gmra.mxu1 %v7767_v54  ;;  %4993 = vmatprep.subr.mxu0 %v6721_v55  ;;  %v266_v9 = vsub.s32 4, %v7781_v13 }
 0x1de   : > { %5008 = vmatpush3.msra.mxu1 %v6541_v26  ;;  %4978 = vmatprep.mubr.f32.mxu1 %v7768_v33  ;;  %v7772_v26 = vld [vmem:[#allocation27_spill] sm:$0xff] }
 0x1df   : > { %v6950_v14 = vpop.f32.mrf.mxu0  ;;  %4962 = vmatmul.mubr.f32.gmra.mxu0 %v7769_v43  ;;  %v6953_v38 = vpop.f32.mrf.mxu1  ;;  %5009 = vmatprep.subr.mxu1 %v6649_v50 }
 0x1e0   : > { %4964 = vmatprep.mubr.f32.mxu0 %v7770_v30  ;;  %5010 = vmatpush3.msra.mxu1 %v6649_v50 }
 0x1e1   : > { %v6958_v49 = vpop.f32.mrf.mxu0  ;;  %v6960_v62 = vpop.f32.mrf.mxu1  ;;  %4979 = vmatmul.mubr.f32.gmra.mxu1 %v7771_v20  ;;  %4994 = vmatpush3.msra.mxu0 %v6721_v55  ;;  %v7775_v55 = vld [vmem:[#allocation31_spill] sm:$0xff]  ;;  %v270_v20 = vsub.s32 5, %v7781_v13 }
 0x1e2   : > { %4981 = vmatprep.mubr.f32.mxu1 %v7772_v26  ;;  %5011 = vmatprep.subr.mxu1 %v6657_v45 }
 0x1e3   : > { %v6966_v40 = vpop.f32.mrf.mxu0  ;;  %4965 = vmatmul.mubr.f32.gmra.mxu0 %v7773_v56  ;;  %v6969_v11 = vpop.f32.mrf.mxu1  ;;  %5012 = vmatpush3.msra.mxu1 %v6657_v45 }
 0x1e4   : > { %4995 = vmatprep.mubr.f32.mxu0 %v5366_v21  ;;  %5013 = vmatprep.subr.mxu1 %v6672_v19 }
 0x1e5   : > { %v6974_v50 = vpop.f32.mrf.mxu0  ;;  %v6976_v2 = vpop.f32.mrf.mxu1  ;;  %4982 = vmatmul.mubr.f32.gmra.mxu1 %v7775_v55 }
 0x1e6   : > { %7774 = vst [vmem:[#allocation72_spill] sm:$0xff] %v6974_v50  ;;  %4984 = vmatprep.mubr.f32.mxu1 %v7776_v47  ;;  %5014 = vmatpush3.msra.mxu1 %v6672_v19 }
 0x1e7   : > { %v2496_v15 = vpop.f32.mrf.mxu0  ;;  %4996 = vmatmul.mubr.f32.vlgmr.msra.gmra.mxu0 %v5398_v35  ;;  %v6982_v23 = vpop.f32.mrf.mxu1 }
 0x1e8   : > { %7777 = vst [vmem:[#allocation75_spill] sm:$0xff] %v6982_v23  ;;  %4998 = vmatprep.mubr.f32.mxu0 %v5449_v1 }
 0x1e9   : > { %v2498_v45 = vpop.f32.mrf.mxu0  ;;  %v6985_v63 = vpop.f32.mrf.mxu1  ;;  %4985 = vmatmul.mubr.f32.gmra.mxu1 %v7779_v51 }
 0x1ea   : > { %7778 = vst [vmem:[#allocation73_spill] sm:$0xff] %v6985_v63  ;;  %5015 = vmatprep.mubr.f32.mxu1 %v5366_v21 }
 0x1eb   : > { %v6989_v52 = vpop.f32.mrf.mxu0  ;;  %4999 = vmatmul.mubr.f32.gmra.mxu0 %v7620_v17  ;;  %v6992_v3 = vpop.f32.mrf.mxu1 }
 0x1ec   : > { %7780 = vst [vmem:[#allocation66_spill] sm:$0xff] %v6992_v3  ;;  %5001 = vmatprep.mubr.f32.mxu0 %v7625_v10 }
 0x1ed   : > { %v6995_v19 = vpop.f32.mrf.mxu0  ;;  %v2634_v4 = vpop.f32.mrf.mxu1  ;;  %5016 = vmatmul.mubr.f32.vlgmr.msra.gmra.mxu1 %v5398_v35 }
 0x1ee   : > { %5018 = vmatprep.mubr.f32.mxu1 %v5449_v1 }
 0x1ef   : > { %v6999_v44 = vpop.f32.mrf.mxu0  ;;  %5002 = vmatmul.mubr.f32.gmra.mxu0 %v7728_v29  ;;  %v2636_v21 = vpop.f32.mrf.mxu1 }
 0x1f0   : > { %5004 = vmatprep.mubr.f32.mxu0 %v7737_v61 }
 0x1f1   : > { %v7003_v22 = vpop.f32.mrf.mxu0  ;;  %v2643_v24 = vpop.f32.mrf.mxu1  ;;  %5019 = vmatmul.mubr.f32.gmra.mxu1 %v7620_v17 }
 0x1f2   : > { %5021 = vmatprep.mubr.f32.mxu1 %v7625_v10 }
 0x1f3   : > { %v7007_v32 = vpop.f32.mrf.mxu0  ;;  %5005 = vmatmul.mubr.f32.gmra.mxu0 %v7745_v53  ;;  %v2645_v35 = vpop.f32.mrf.mxu1 }
 0x1f5   : > { %v7010_v1 = vpop.f32.mrf.mxu0  ;;  %v7012_v34 = vpop.f32.mrf.mxu1  ;;  %5022 = vmatmul.mubr.f32.gmra.mxu1 %v7728_v29 }
 0x1f6   : > { %5024 = vmatprep.mubr.f32.mxu1 %v7737_v61  ;;  %v7034_v61 = vld [vmem:[#allocation5] sm:$0xff] }
 0x1f7   : > { %v7016_v7 = vpop.f32.mrf.mxu0  ;;  %v7018_v37 = vpop.f32.mrf.mxu1  ;;  %7782 = vst [vmem:[#allocation69_spill] sm:$0xff] %v7034_v61  ;;  %v7037_v30 = vrot.slane %v7034_v61, %v266_v9  ;;  %v7051_v51 = vrot.slane %v7034_v61, %v270_v20 }
 0x1f9   : > { %v7020_v17 = vpop.f32.mrf.mxu0  ;;  %v7022_v10 = vpop.f32.mrf.mxu1  ;;  %5025 = vmatmul.mubr.f32.gmra.mxu1 %v7745_v53  ;;  %v2170_v47 = vadd.f32 %v6856_v57, %v7037_v30  ;;  %v2172_v50 = vadd.f32 %v6863_v25, %v7051_v51  ;;  %v2183_v25 = vadd.f32 %v6877_v0, %v7051_v51  ;;  %v2203_v0 = vadd.f32 %v6902_v48, %v7037_v30 }
 0x1fb   : > { %v7026_v54 = vpop.f32.mrf.mxu0  ;;  %v7028_v33 = vpop.f32.mrf.mxu1  ;;  %v2361_v20 = vadd.f32 %v6889_v8, %v2172_v50 }
 0x1fd   : > { %v7030_v43 = vpop.f32.mrf.mxu0  ;;  %v7032_v29 = vpop.f32.mrf.mxu1 }
 0x1ff   : > { %v7040_v26 = vpop.f32.mrf.mxu0  ;;  %v7042_v53 = vpop.f32.mrf.mxu1 }
 0x200   : > { %7783 = vst [vmem:[#allocation70_spill] sm:$0xff] %v7040_v26  ;;  %v2359_v26 = vadd.f32 %v6879_v12, %v2170_v47 }
 0x201   : > { %v7044_v56 = vpop.f32.mrf.mxu0  ;;  %v7046_v55 = vpop.f32.mrf.mxu1 }
 0x202   : > { %7784 = vst [vmem:[#allocation63_spill] sm:$0xff] %v7044_v56  ;;  %7785 = vst [vmem:[#allocation60_spill] sm:$0xff] %v7046_v55  ;;  %v2181_v56 = vadd.f32 %v6870_v5, %v7037_v30  ;;  %v2497_v61 = vadd.f32 %v2496_v15, %v2359_v26  ;;  %v2499_v5 = vadd.f32 %v2498_v45, %v2361_v20 }
 0x203   : > { %v7053_v3 = vpop.f32.mrf.mxu0  ;;  %v7055_v9 = vpop.f32.mrf.mxu1 }
 0x204   : > { %7786 = vst [vmem:[#allocation65_spill] sm:$0xff] %v7053_v3  ;;  %7787 = vst [vmem:[#allocation41_spill] sm:$0xff] %v7055_v9  ;;  %v2192_v3 = vadd.f32 %v6886_v6, %v7037_v30  ;;  %v2635_v55 = vadd.f32 %v2634_v4, %v2497_v61  ;;  %v2637_v50 = vadd.f32 %v2636_v21, %v2499_v5 }
 0x205   : > { %v7057_v63 = vpop.f32.mrf.mxu0  ;;  %v7059_v13 = vpop.f32.mrf.mxu1  ;;  %v2194_v6 = vadd.f32 %v6894_v42, %v7051_v51 }
 0x206   : > { %7788 = vst [vmem:[#allocation16_spill] sm:$0xff] %v7057_v63  ;;  %7789 = vst [vmem:[#allocation53_spill] sm:$0xff] %v7059_v13  ;;  %v2366_v13 = vadd.f32 %v6896_v36, %v2181_v56  ;;  %v2373_v36 = vadd.f32 %v6912_v58, %v2192_v3  ;;  %v2205_v58 = vadd.f32 %v6910_v31, %v7051_v51 }
 0x207   : > { %v2793_v57 = vpop.f32.mrf.mxu0  ;;  %v7066_v23 = vpop.f32.mrf.mxu1 }
 0x208   : > { %7790 = vst [vmem:[#allocation46_spill] sm:$0xff] %v7066_v23  ;;  %v2368_v23 = vadd.f32 %v6905_v28, %v2183_v25  ;;  %v2505_v8 = vadd.f32 %v6989_v52, %v2366_v13  ;;  %v2794_v15 = vadd.f32 %v2793_v57, %v2635_v55  ;;  %v2375_v52 = vadd.f32 %v6921_v46, %v2194_v6 }
 0x209   : > { %v2795_v63 = vpop.f32.mrf.mxu0  ;;  %v7071_v9 = vpop.f32.mrf.mxu1  ;;  %v2513_v55 = vadd.f32 %v6999_v44, %v2373_v36  ;;  %v2382_v20 = vadd.f32 %v6937_v39, %v2205_v58  ;;  %v7791_v58 = vld [vmem:[#allocation60_spill] sm:$0xff] }
 0x20a   : > { %v2507_v61 = vadd.f32 %v6995_v19, %v2368_v23  ;;  %v2644_v26 = vadd.f32 %v2643_v24, %v2505_v8  ;;  %v2796_v56 = vadd.f32 %v2795_v63, %v2637_v50  ;;  %v2214_v23 = vadd.f32 %v6918_v41, %v7037_v30 }
 0x20b   : > { %v2800_v12 = vpop.f32.mrf.mxu0  ;;  %v7076_v47 = vpop.f32.mrf.mxu1  ;;  %v2380_v63 = vadd.f32 %v6928_v16, %v2203_v0  ;;  %v2515_v19 = vadd.f32 %v7003_v22, %v2375_v52  ;;  %v2653_v24 = vadd.f32 %v7012_v34, %v2513_v55  ;;  %v2216_v22 = vadd.f32 %v6926_v59, %v7051_v51 }
 0x20c   : > { %v2646_v42 = vadd.f32 %v2645_v35, %v2507_v61  ;;  %v2801_v57 = vadd.f32 %v2800_v12, %v2644_v26  ;;  %v2225_v34 = vadd.f32 %v6934_v27, %v7037_v30  ;;  %v2387_v8 = vadd.f32 %v6944_v18, %v2214_v23 }
 0x20d   : > { %v2802_v45 = vpop.f32.mrf.mxu0  ;;  %v2922_v4 = vpop.f32.mrf.mxu1  ;;  %v2521_v5 = vadd.f32 %v7007_v32, %v2380_v63  ;;  %v2655_v41 = vadd.f32 %v7018_v37, %v2515_v19  ;;  %v2389_v0 = vadd.f32 %v6953_v38, %v2216_v22  ;;  %v7792_v63 = vld [vmem:[#allocation75_spill] sm:$0xff]  ;;  %v7793_v19 = vld [vmem:[#allocation70_spill] sm:$0xff] }
 0x20e   : > { %v2923_v28 = vadd.f32 %v2922_v4, %v2794_v15  ;;  %v2803_v44 = vadd.f32 %v2802_v45, %v2646_v42  ;;  %v2523_v15 = vadd.f32 %v7010_v1, %v2382_v20  ;;  %v2529_v45 = vadd.f32 %v7016_v7, %v2387_v8  ;;  %v7796_v20 = vld [vmem:[#allocation73_spill] sm:$0xff] }
 0x20f   : > { %v2807_v21 = vpop.f32.mrf.mxu0  ;;  %v2924_v13 = vpop.f32.mrf.mxu1  ;;  %v2662_v32 = vadd.f32 %v7022_v10, %v2521_v5  ;;  %v2227_v1 = vadd.f32 %v6942_v60, %v7051_v51  ;;  %v2236_v10 = vadd.f32 %v6950_v14, %v7037_v30  ;;  %v2394_v61 = vadd.f32 %v6960_v62, %v2225_v34 }
 0x210   : > { %4652 = vst [vmem:[%s6347_s28 + $0x20] sm:$0xff] %v2923_v28  ;;  %v2925_v48 = vadd.f32 %v2924_v13, %v2796_v56  ;;  %v2808_v12 = vadd.f32 %v2807_v21, %v2653_v24  ;;  %v2664_v27 = vadd.f32 %v7028_v33, %v2523_v15  ;;  %v2531_v56 = vadd.f32 %v7020_v17, %v2389_v0  ;;  %v7801_v0 = vld [vmem:[#allocation46_spill] sm:$0xff] }
 0x211   : > { %v2809_v3 = vpop.f32.mrf.mxu0  ;;  %v2929_v46 = vpop.f32.mrf.mxu1  ;;  %v2671_v7 = vadd.f32 %v7032_v29, %v2529_v45  ;;  %v2396_v52 = vadd.f32 %v6969_v11, %v2227_v1  ;;  %v2537_v13 = vadd.f32 %v7026_v54, %v2394_v61  ;;  %v2238_v17 = vadd.f32 %v6958_v49, %v7051_v51 }
 0x212   : > { %4653 = vst [vmem:[%s6347_s28 + $0x28] sm:$0xff] %v2925_v48  ;;  %v2930_v35 = vadd.f32 %v2929_v46, %v2801_v57  ;;  %v2810_v6 = vadd.f32 %v2809_v3, %v2655_v41  ;;  %v2673_v14 = vadd.f32 %v7042_v53, %v2531_v56  ;;  %v2247_v29 = vadd.f32 %v6966_v40, %v7037_v30  ;;  %v7797_v41 = vld [vmem:[#allocation63_spill] sm:$0xff] }
 0x213   : > { %v2814_v25 = vpop.f32.mrf.mxu0  ;;  %v2931_v31 = vpop.f32.mrf.mxu1  ;;  %v2401_v42 = vadd.f32 %v6976_v2, %v2236_v10  ;;  %v2539_v48 = vadd.f32 %v7030_v43, %v2396_v52  ;;  %v2680_v54 = vadd.f32 %v7791_v58, %v2537_v13  ;;  %v2403_v3 = vadd.f32 %v7792_v63, %v2238_v17 }
 0x214   : > { %4661 = vst [vmem:[%s6347_s28 + $0x68] sm:$0xff] %v2930_v35  ;;  %v2932_v16 = vadd.f32 %v2931_v31, %v2803_v44  ;;  %v2815_v4 = vadd.f32 %v2814_v25, %v2662_v32  ;;  %v7794_v44 = vld [vmem:[#allocation41_spill] sm:$0xff]  ;;  %v7795_v35 = vld [vmem:[#allocation72_spill] sm:$0xff]  ;;  %v2408_v25 = vadd.f32 %v7796_v20, %v2247_v29 }
 0x215   : > { %v2816_v39 = vpop.f32.mrf.mxu0  ;;  %v2936_v50 = vpop.f32.mrf.mxu1  ;;  %v2545_v24 = vadd.f32 %v7793_v19, %v2401_v42  ;;  %v2682_v40 = vadd.f32 %v7794_v44, %v2539_v48  ;;  %v2249_v43 = vadd.f32 %v7795_v35, %v7051_v51 }
 0x216   : > { %4662 = vst [vmem:[%s6347_s28 + $0x70] sm:$0xff] %v2932_v16  ;;  %v2937_v37 = vadd.f32 %v2936_v50, %v2808_v12  ;;  %v2817_v28 = vadd.f32 %v2816_v39, %v2664_v27  ;;  %v2547_v12 = vadd.f32 %v7797_v41, %v2403_v3  ;;  %v7798_v16 = vld [vmem:[#allocation53_spill] sm:$0xff]  ;;  %v7799_v39 = vld [vmem:[#allocation66_spill] sm:$0xff] }
 0x217   : > { %v2821_v36 = vpop.f32.mrf.mxu0  ;;  %v2938_v59 = vpop.f32.mrf.mxu1  ;;  %v2689_v22 = vadd.f32 %v7798_v16, %v2545_v24  ;;  %v2410_v50 = vadd.f32 %v7799_v39, %v2249_v43 }
 0x218   : > { %4670 = vst [vmem:[%s6347_s28 + $0xb0] sm:$0xff] %v2937_v37  ;;  %v2939_v18 = vadd.f32 %v2938_v59, %v2810_v6  ;;  %v2822_v55 = vadd.f32 %v2821_v36, %v2671_v7  ;;  %v7800_v6 = vld [vmem:[#allocation65_spill] sm:$0xff]  ;;  %v2691_v51 = vadd.f32 %v7801_v0, %v2547_v12 }
 0x219   : > { %v2823_v38 = vpop.f32.mrf.mxu0  ;;  %v2943_v26 = vpop.f32.mrf.mxu1  ;;  %v2553_v37 = vadd.f32 %v7800_v6, %v2408_v25 }
 0x21a   : > { %4671 = vst [vmem:[%s6347_s28 + $0xb8] sm:$0xff] %v2939_v18  ;;  %v2944_v33 = vadd.f32 %v2943_v26, %v2815_v4  ;;  %v2824_v23 = vadd.f32 %v2823_v38, %v2673_v14  ;;  %v7802_v4 = vld [vmem:[#allocation16_spill] sm:$0xff] }
 0x21b   : > { %v2828_v21 = vpop.f32.mrf.mxu0  ;;  %v2945_v60 = vpop.f32.mrf.mxu1  ;;  %v2555_v18 = vadd.f32 %v7802_v4, %v2410_v50  ;;  %v2698_v1 = vadd.f32 %v7071_v9, %v2553_v37 }
 0x21c   : > { %4679 = vst [vmem:[%s6347_s28 + $0xf8] sm:$0xff] %v2944_v33  ;;  %v2946_v62 = vadd.f32 %v2945_v60, %v2817_v28  ;;  %v2829_v30 = vadd.f32 %v2828_v21, %v2680_v54 }
 0x21d   : > { %v2830_v11 = vpop.f32.mrf.mxu0  ;;  %v2950_v57 = vpop.f32.mrf.mxu1  ;;  %v2700_v56 = vadd.f32 %v7076_v47, %v2555_v18 }
 0x21e   : > { %4680 = vst [vmem:[%s6347_s28 + $0x100] sm:$0xff] %v2946_v62  ;;  %v2951_v53 = vadd.f32 %v2950_v57, %v2822_v55  ;;  %v2831_v34 = vadd.f32 %v2830_v11, %v2682_v40 }
 0x21f   : > { %v2835_v46 = vpop.f32.mrf.mxu0  ;;  %v2952_v49 = vpop.f32.mrf.mxu1 }
 0x220   : > { %4688 = vst [vmem:[%s6347_s28 + $0x140] sm:$0xff] %v2951_v53  ;;  %v2953_v2 = vadd.f32 %v2952_v49, %v2824_v23  ;;  %v2836_v36 = vadd.f32 %v2835_v46, %v2689_v22 }
 0x221   : > { %v2837_v31 = vpop.f32.mrf.mxu0  ;;  %v2957_v5 = vpop.f32.mrf.mxu1 }
 0x222   : > { %4689 = vst [vmem:[%s6347_s28 + $0x148] sm:$0xff] %v2953_v2  ;;  %v2958_v8 = vadd.f32 %v2957_v5, %v2829_v30  ;;  %v2838_v10 = vadd.f32 %v2837_v31, %v2691_v51 }
 0x223   : > { %v2842_v15 = vpop.f32.mrf.mxu0  ;;  %v2959_v32 = vpop.f32.mrf.mxu1 }
 0x224   : > { %4697 = vst [vmem:[%s6347_s28 + $0x188] sm:$0xff] %v2958_v8  ;;  %v2960_v59 = vadd.f32 %v2959_v32, %v2831_v34  ;;  %v2843_v7 = vadd.f32 %v2842_v15, %v2698_v1 }
 0x225   : > { %v2844_v45 = vpop.f32.mrf.mxu0  ;;  %v2964_v27 = vpop.f32.mrf.mxu1 }
 0x226   : > { %4698 = vst [vmem:[%s6347_s28 + $0x190] sm:$0xff] %v2960_v59  ;;  %v2965_v61 = vadd.f32 %v2964_v27, %v2836_v36  ;;  %v2845_v21 = vadd.f32 %v2844_v45, %v2700_v56  ;;  %v7807_v27 = vld [vmem:[#allocation56_spill] sm:$0xff] }
 0x227   : > { %v7150_v38 = vpop.f32.mrf.mxu0  ;;  %v2966_v26 = vpop.f32.mrf.mxu1  ;;  %v274_v4 = vsub.s32 6, %v7807_v27 }
 0x228   : > { %4706 = vst [vmem:[%s6347_s28 + $0x1d0] sm:$0xff] %v2965_v61  ;;  %v2967_v28 = vadd.f32 %v2966_v26, %v2838_v10  ;;  %v7808_v26 = vld [vmem:[#allocation69_spill] sm:$0xff] }
 0x229   : > { %v7154_v33 = vpop.f32.mrf.mxu0  ;;  %v2971_v52 = vpop.f32.mrf.mxu1  ;;  %v7245_v56 = vrot.slane %v7808_v26, %v274_v4 }
 0x22a   : > { %4707 = vst [vmem:[%s6347_s28 + $0x1d8] sm:$0xff] %v2967_v28  ;;  %v2972_v60 = vadd.f32 %v2971_v52, %v2843_v7  ;;  %v278_v7 = vsub.s32 7, %v7807_v27 }
 0x22b   : > { %v7157_v9 = vpop.f32.mrf.mxu0  ;;  %v2973_v13 = vpop.f32.mrf.mxu1 }
 0x22c   : > { %4715 = vst [vmem:[%s6347_s28 + $0x218] sm:$0xff] %v2972_v60  ;;  %v2974_v14 = vadd.f32 %v2973_v13, %v2845_v21  ;;  %v3056_v13 = vadd.f32 %v7150_v38, %v7245_v56 }
 0x22d   : > { %v7160_v55 = vpop.f32.mrf.mxu0  ;;  %v7162_v62 = vpop.f32.mrf.mxu1 }
 0x22e   : > { %4716 = vst [vmem:[%s6347_s28 + $0x220] sm:$0xff] %v2974_v14  ;;  %v7259_v14 = vrot.slane %v7808_v26, %v278_v7 }
 0x22f   : > { %v7165_v47 = vpop.f32.mrf.mxu0  ;;  %v7167_v17 = vpop.f32.mrf.mxu1 }
 0x231   : > { %v7169_v29 = vpop.f32.mrf.mxu0  ;;  %v7171_v42 = vpop.f32.mrf.mxu1 }
 0x233   : > { %v7173_v11 = vpop.f32.mrf.mxu0  ;;  %v7175_v57 = vpop.f32.mrf.mxu1 }
 0x235   : > { %v7177_v48 = vpop.f32.mrf.mxu0  ;;  %v7179_v58 = vpop.f32.mrf.mxu1 }
 0x237   : > { %v7181_v54 = vpop.f32.mrf.mxu0  ;;  %v7183_v23 = vpop.f32.mrf.mxu1 }
 0x239   : > { %v7185_v53 = vpop.f32.mrf.mxu0  ;;  %v7187_v63 = vpop.f32.mrf.mxu1 }
 0x23b   : > { %v7189_v3 = vpop.f32.mrf.mxu0  ;;  %v7191_v46 = vpop.f32.mrf.mxu1 }
 0x23d   : > { %v7193_v49 = vpop.f32.mrf.mxu0  ;;  %v7195_v19 = vpop.f32.mrf.mxu1 }
 0x23f   : > { %v7197_v24 = vpop.f32.mrf.mxu0  ;;  %v7199_v44 = vpop.f32.mrf.mxu1 }
 0x241   : > { %v7201_v40 = vpop.f32.mrf.mxu0  ;;  %v7203_v30 = vpop.f32.mrf.mxu1 }
 0x243   : > { %v7205_v2 = vpop.f32.mrf.mxu0  ;;  %v7207_v35 = vpop.f32.mrf.mxu1 }
 0x245   : > { %v7209_v43 = vpop.f32.mrf.mxu0  ;;  %v7211_v20 = vpop.f32.mrf.mxu1 }
 0x246   : > { %7803 = vst [vmem:[#allocation61_spill] sm:$0xff] %v7209_v43  ;;  %v3058_v43 = vadd.f32 %v7154_v33, %v7259_v14  ;;  %v3069_v33 = vadd.f32 %v7160_v55, %v7259_v14 }
 0x247   : > { %v3382_v25 = vpop.f32.mrf.mxu0  ;;  %v7213_v31 = vpop.f32.mrf.mxu1 }
 0x248   : > { %7804 = vst [vmem:[#allocation44_spill] sm:$0xff] %v7213_v31  ;;  %v3247_v26 = vadd.f32 %v7167_v17, %v3058_v43 }
 0x249   : > { %v3384_v5 = vpop.f32.mrf.mxu0  ;;  %v7215_v41 = vpop.f32.mrf.mxu1 }
 0x24a   : > { %7805 = vst [vmem:[#allocation21_spill] sm:$0xff] %v7215_v41 }
 0x24b   : > { %v3390_v12 = vpop.f32.mrf.mxu0  ;;  %v7217_v16 = vpop.f32.mrf.mxu1 }
 0x24c   : > { %7806 = vst [vmem:[#allocation58_spill] sm:$0xff] %v7217_v16 }
 0x24d   : > { %v3392_v22 = vpop.f32.mrf.mxu0  ;;  %v3520_v34 = vpop.f32.mrf.mxu1 }
 0x24f   : > { %v3398_v8 = vpop.f32.mrf.mxu0  ;;  %v3522_v39 = vpop.f32.mrf.mxu1 }
 0x251   : > { %v7219_v50 = vpop.f32.mrf.mxu0  ;;  %v3529_v15 = vpop.f32.mrf.mxu1 }
 0x253   : > { %v7221_v32 = vpop.f32.mrf.mxu0  ;;  %v3531_v6 = vpop.f32.mrf.mxu1 }
 0x255   : > { %v7223_v37 = vpop.f32.mrf.mxu0  ;;  %v7225_v0 = vpop.f32.mrf.mxu1 }
 0x257   : > { %v7227_v51 = vpop.f32.mrf.mxu0  ;;  %v7229_v36 = vpop.f32.mrf.mxu1 }
 0x259   : > { %v7231_v59 = vpop.f32.mrf.mxu0  ;;  %v7233_v45 = vpop.f32.mrf.mxu1 }
 0x25b   : > { %v7236_v18 = vpop.f32.mrf.mxu0  ;;  %v7238_v1 = vpop.f32.mrf.mxu1 }
 0x25d   : > { %v7240_v10 = vpop.f32.mrf.mxu0  ;;  %v7242_v61 = vpop.f32.mrf.mxu1 }
 0x25f   : > { %v7248_v28 = vpop.f32.mrf.mxu0  ;;  %v7250_v52 = vpop.f32.mrf.mxu1 }
 0x260   : > { %7809 = vst [vmem:[#allocation45_spill] sm:$0xff] %v7248_v28  ;;  %v3245_v28 = vadd.f32 %v7162_v62, %v3056_v13 }
 0x261   : > { %v7252_v21 = vpop.f32.mrf.mxu0  ;;  %v7254_v60 = vpop.f32.mrf.mxu1 }
 0x262   : > { %7810 = vst [vmem:[#allocation40_spill] sm:$0xff] %v7252_v21  ;;  %7811 = vst [vmem:[#allocation59_spill] sm:$0xff] %v7254_v60  ;;  %v3067_v21 = vadd.f32 %v7157_v9, %v7245_v56  ;;  %v3383_v7 = vadd.f32 %v3382_v25, %v3245_v28  ;;  %v3385_v9 = vadd.f32 %v3384_v5, %v3247_v26 }
 0x263   : > { %v7261_v16 = vpop.f32.mrf.mxu0  ;;  %v7263_v4 = vpop.f32.mrf.mxu1  ;;  %v3089_v28 = vadd.f32 %v7173_v11, %v7245_v56  ;;  %v3091_v11 = vadd.f32 %v7177_v48, %v7259_v14 }
 0x264   : > { %7812 = vst [vmem:[#allocation49_spill] sm:$0xff] %v7261_v16  ;;  %7813 = vst [vmem:[#allocation48_spill] sm:$0xff] %v7263_v4  ;;  %v3078_v16 = vadd.f32 %v7165_v47, %v7245_v56  ;;  %v3521_v60 = vadd.f32 %v3520_v34, %v3383_v7  ;;  %v3523_v43 = vadd.f32 %v3522_v39, %v3385_v9 }
 0x265   : > { %v7265_v41 = vpop.f32.mrf.mxu0  ;;  %v7267_v27 = vpop.f32.mrf.mxu1  ;;  %v3080_v47 = vadd.f32 %v7169_v29, %v7259_v14 }
 0x266   : > { %7814 = vst [vmem:[#allocation64_spill] sm:$0xff] %v7265_v41  ;;  %7815 = vst [vmem:[#allocation57_spill] sm:$0xff] %v7267_v27  ;;  %v3252_v27 = vadd.f32 %v7171_v42, %v3067_v21  ;;  %v3259_v55 = vadd.f32 %v7179_v58, %v3078_v16  ;;  %v3100_v58 = vadd.f32 %v7181_v54, %v7245_v56 }
 0x267   : > { %v3679_v38 = vpop.f32.mrf.mxu0  ;;  %v7274_v31 = vpop.f32.mrf.mxu1 }
 0x268   : > { %7816 = vst [vmem:[#allocation25_spill] sm:$0xff] %v7274_v31  ;;  %v3254_v31 = vadd.f32 %v7175_v57, %v3069_v33  ;;  %v3391_v17 = vadd.f32 %v3390_v12, %v3252_v27  ;;  %v3680_v25 = vadd.f32 %v3679_v38, %v3521_v60  ;;  %v3261_v57 = vadd.f32 %v7183_v23, %v3080_v47 }
 0x269   : > { %v3681_v41 = vpop.f32.mrf.mxu0  ;;  %v7279_v4 = vpop.f32.mrf.mxu1  ;;  %v3399_v60 = vadd.f32 %v3398_v8, %v3259_v55 }
 0x26a   : > { %v3393_v34 = vadd.f32 %v3392_v22, %v3254_v31  ;;  %v3530_v21 = vadd.f32 %v3529_v15, %v3391_v17  ;;  %v3682_v26 = vadd.f32 %v3681_v41, %v3523_v43  ;;  %v3266_v31 = vadd.f32 %v7187_v63, %v3089_v28 }
 0x26b   : > { %v3686_v62 = vpop.f32.mrf.mxu0  ;;  %v7284_v13 = vpop.f32.mrf.mxu1  ;;  %v3401_v23 = vadd.f32 %v7219_v50, %v3261_v57  ;;  %v3539_v22 = vadd.f32 %v7225_v0, %v3399_v60  ;;  %v3102_v50 = vadd.f32 %v7185_v53, %v7259_v14  ;;  %v3111_v0 = vadd.f32 %v7189_v3, %v7245_v56 }
 0x26c   : > { %v3532_v27 = vadd.f32 %v3531_v6, %v3393_v34  ;;  %v3687_v38 = vadd.f32 %v3686_v62, %v3530_v21  ;;  %v3268_v6 = vadd.f32 %v7191_v46, %v3091_v11  ;;  %v3407_v9 = vadd.f32 %v7221_v32, %v3266_v31  ;;  %v7817_v11 = vld [vmem:[#allocation59_spill] sm:$0xff]  ;;  %v7818_v31 = vld [vmem:[#allocation44_spill] sm:$0xff] }
 0x26d   : > { %v3688_v42 = vpop.f32.mrf.mxu0  ;;  %v3808_v5 = vpop.f32.mrf.mxu1  ;;  %v3541_v54 = vadd.f32 %v7229_v36, %v3401_v23  ;;  %v3273_v17 = vadd.f32 %v7195_v19, %v3100_v58  ;;  %v3275_v28 = vadd.f32 %v7199_v44, %v3102_v50  ;;  %v3280_v34 = vadd.f32 %v7203_v30, %v3111_v0  ;;  %v7819_v23 = vld [vmem:[#allocation45_spill] sm:$0xff] }
 0x26e   : > { %v3809_v7 = vadd.f32 %v3808_v5, %v3680_v25  ;;  %v3689_v8 = vadd.f32 %v3688_v42, %v3532_v27  ;;  %v3409_v25 = vadd.f32 %v7223_v37, %v3268_v6  ;;  %v3548_v32 = vadd.f32 %v7233_v45, %v3407_v9  ;;  %v7822_v6 = vld [vmem:[#allocation21_spill] sm:$0xff] }
 0x26f   : > { %v3693_v12 = vpop.f32.mrf.mxu0  ;;  %v3810_v39 = vpop.f32.mrf.mxu1  ;;  %v3415_v42 = vadd.f32 %v7227_v51, %v3273_v17  ;;  %v3113_v37 = vadd.f32 %v7193_v49, %v7259_v14  ;;  %v3122_v45 = vadd.f32 %v7197_v24, %v7245_v56 }
 0x270   : > { %4654 = vst [vmem:[%s6347_s28 + $0x30] sm:$0xff] %v3809_v7  ;;  %v3811_v29 = vadd.f32 %v3810_v39, %v3682_v26  ;;  %v3694_v62 = vadd.f32 %v3693_v12, %v3539_v22  ;;  %v3550_v3 = vadd.f32 %v7238_v1, %v3409_v25  ;;  %v3417_v26 = vadd.f32 %v7231_v59, %v3275_v28  ;;  %v7827_v28 = vld [vmem:[#allocation25_spill] sm:$0xff] }
 0x271   : > { %v3695_v41 = vpop.f32.mrf.mxu0  ;;  %v3815_v16 = vpop.f32.mrf.mxu1  ;;  %v3557_v51 = vadd.f32 %v7242_v61, %v3415_v42  ;;  %v3282_v57 = vadd.f32 %v7207_v35, %v3113_v37  ;;  %v3423_v39 = vadd.f32 %v7236_v18, %v3280_v34  ;;  %v3124_v59 = vadd.f32 %v7201_v40, %v7259_v14 }
 0x272   : > { %4655 = vst [vmem:[%s6347_s28 + $0x38] sm:$0xff] %v3811_v29  ;;  %v3816_v15 = vadd.f32 %v3815_v16, %v3687_v38  ;;  %v3696_v47 = vadd.f32 %v3695_v41, %v3541_v54  ;;  %v3559_v24 = vadd.f32 %v7250_v52, %v3417_v26  ;;  %v3133_v61 = vadd.f32 %v7205_v2, %v7245_v56  ;;  %v7823_v54 = vld [vmem:[#allocation40_spill] sm:$0xff] }
 0x273   : > { %v3700_v33 = vpop.f32.mrf.mxu0  ;;  %v3817_v48 = vpop.f32.mrf.mxu1  ;;  %v3287_v27 = vadd.f32 %v7211_v20, %v3122_v45  ;;  %v3425_v29 = vadd.f32 %v7240_v10, %v3282_v57  ;;  %v3566_v18 = vadd.f32 %v7817_v11, %v3423_v39  ;;  %v3289_v41 = vadd.f32 %v7818_v31, %v3124_v59 }
 0x274   : > { %4663 = vst [vmem:[%s6347_s28 + $0x78] sm:$0xff] %v3816_v15  ;;  %v3818_v63 = vadd.f32 %v3817_v48, %v3689_v8  ;;  %v3701_v5 = vadd.f32 %v3700_v33, %v3548_v32  ;;  %v7820_v8 = vld [vmem:[#allocation48_spill] sm:$0xff]  ;;  %v7821_v15 = vld [vmem:[#allocation61_spill] sm:$0xff]  ;;  %v3294_v33 = vadd.f32 %v7822_v6, %v3133_v61 }
 0x275   : > { %v3702_v46 = vpop.f32.mrf.mxu0  ;;  %v3822_v43 = vpop.f32.mrf.mxu1  ;;  %v3431_v22 = vadd.f32 %v7819_v23, %v3287_v27  ;;  %v3568_v2 = vadd.f32 %v7820_v8, %v3425_v29  ;;  %v3135_v10 = vadd.f32 %v7821_v15, %v7259_v14 }
 0x276   : > { %4664 = vst [vmem:[%s6347_s28 + $0x80] sm:$0xff] %v3818_v63  ;;  %v3823_v36 = vadd.f32 %v3822_v43, %v3694_v62  ;;  %v3703_v7 = vadd.f32 %v3702_v46, %v3550_v3  ;;  %v3433_v62 = vadd.f32 %v7823_v54, %v3289_v41  ;;  %v7824_v63 = vld [vmem:[#allocation57_spill] sm:$0xff]  ;;  %v7825_v46 = vld [vmem:[#allocation58_spill] sm:$0xff] }
 0x277   : > { %v3707_v55 = vpop.f32.mrf.mxu0  ;;  %v3824_v53 = vpop.f32.mrf.mxu1  ;;  %v3575_v50 = vadd.f32 %v7824_v63, %v3431_v22  ;;  %v3296_v43 = vadd.f32 %v7825_v46, %v3135_v10  ;;  %v4829_v22 = vld [vmem:[#allocation5 + $0x8] ss:$0 sm:$0xff] }
 0x278   : > { %4672 = vst [vmem:[%s6347_s28 + $0xc0] sm:$0xff] %v3823_v36  ;;  %v3825_v19 = vadd.f32 %v3824_v53, %v3696_v47  ;;  %v3708_v60 = vadd.f32 %v3707_v55, %v3557_v51  ;;  %v7826_v47 = vld [vmem:[#allocation49_spill] sm:$0xff]  ;;  %v3577_v14 = vadd.f32 %v7827_v28, %v3433_v62 }
 0x279   : > { %v3709_v44 = vpop.f32.mrf.mxu0  ;;  %v3829_v21 = vpop.f32.mrf.mxu1  ;;  %v3439_v36 = vadd.f32 %v7826_v47, %v3294_v33 }
 0x27a   : > { %4673 = vst [vmem:[%s6347_s28 + $0xc8] sm:$0xff] %v3825_v19  ;;  %v3830_v1 = vadd.f32 %v3829_v21, %v3701_v5  ;;  %v3710_v58 = vadd.f32 %v3709_v44, %v3559_v24  ;;  %v7828_v5 = vld [vmem:[#allocation64_spill] sm:$0xff] }
 0x27b   : > { %v3714_v12 = vpop.f32.mrf.mxu0  ;;  %v3831_v49 = vpop.f32.mrf.mxu1  ;;  %v3441_v19 = vadd.f32 %v7828_v5, %v3296_v43  ;;  %v3584_v37 = vadd.f32 %v7279_v4, %v3439_v36 }
 0x27c   : > { %4681 = vst [vmem:[%s6347_s28 + $0x108] sm:$0xff] %v3830_v1  ;;  %v3832_v30 = vadd.f32 %v3831_v49, %v3703_v7  ;;  %v3715_v56 = vadd.f32 %v3714_v12, %v3566_v18 }
 0x27d   : > { %v3716_v35 = vpop.f32.mrf.mxu0  ;;  %v3836_v38 = vpop.f32.mrf.mxu1  ;;  %v3586_v26 = vadd.f32 %v7284_v13, %v3441_v19 }
 0x27e   : > { %4682 = vst [vmem:[%s6347_s28 + $0x110] sm:$0xff] %v3832_v30  ;;  %v3837_v52 = vadd.f32 %v3836_v38, %v3708_v60  ;;  %v3717_v0 = vadd.f32 %v3716_v35, %v3568_v2 }
 0x27f   : > { %v3721_v16 = vpop.f32.mrf.mxu0  ;;  %v3838_v40 = vpop.f32.mrf.mxu1 }
 0x280   : > { %4690 = vst [vmem:[%s6347_s28 + $0x150] sm:$0xff] %v3837_v52  ;;  %v3839_v20 = vadd.f32 %v3838_v40, %v3710_v58  ;;  %v3722_v55 = vadd.f32 %v3721_v16, %v3575_v50 }
 0x281   : > { %v3723_v48 = vpop.f32.mrf.mxu0  ;;  %v3843_v9 = vpop.f32.mrf.mxu1 }
 0x282   : > { %4691 = vst [vmem:[%s6347_s28 + $0x158] sm:$0xff] %v3839_v20  ;;  %v3844_v17 = vadd.f32 %v3843_v9, %v3715_v56  ;;  %v3724_v45 = vadd.f32 %v3723_v48, %v3577_v14 }
 0x283   : > { %v3728_v25 = vpop.f32.mrf.mxu0  ;;  %v3845_v32 = vpop.f32.mrf.mxu1 }
 0x284   : > { %4699 = vst [vmem:[%s6347_s28 + $0x198] sm:$0xff] %v3844_v17  ;;  %v3846_v53 = vadd.f32 %v3845_v32, %v3717_v0  ;;  %v3729_v51 = vadd.f32 %v3728_v25, %v3584_v37 }
 0x285   : > { %v3730_v42 = vpop.f32.mrf.mxu0  ;;  %v3850_v3 = vpop.f32.mrf.mxu1 }
 0x286   : > { %4700 = vst [vmem:[%s6347_s28 + $0x1a0] sm:$0xff] %v3846_v53  ;;  %v3851_v34 = vadd.f32 %v3850_v3, %v3722_v55  ;;  %v3731_v12 = vadd.f32 %v3730_v42, %v3586_v26 }
 0x287   : > { %v4917_v44 = vpop.f32.mrf.mxu0  ;;  %v3852_v21 = vpop.f32.mrf.mxu1 }
 0x288   : > { %4708 = vst [vmem:[%s6347_s28 + $0x1e0] sm:$0xff] %v3851_v34  ;;  %v3853_v7 = vadd.f32 %v3852_v21, %v3724_v45  ;;  %v3948_v15 = vadd.f32 %v4917_v44, %v4829_v22 }
 0x289   : > { %v3937_v1 = vpop.f32.mrf.mxu0  ;;  %v3857_v57 = vpop.f32.mrf.mxu1 }
 0x28a   : > { %4709 = vst [vmem:[%s6347_s28 + $0x1e8] sm:$0xff] %v3853_v7  ;;  %v3858_v49 = vadd.f32 %v3857_v57, %v3729_v51  ;;  %v3938_v9 = vadd.f32 %v4829_v22, %v3937_v1 }
 0x28b   : > { %v4920_v39 = vpop.f32.mrf.mxu0  ;;  %v3859_v24 = vpop.f32.mrf.mxu1 }
 0x28c   : > { %4717 = vst [vmem:[%s6347_s28 + $0x228] sm:$0xff] %v3858_v49  ;;  %v3860_v4 = vadd.f32 %v3859_v24, %v3731_v12  ;;  %v3968_v54 = vadd.f32 %v4920_v39, %v4829_v22 }
 0x28d   : > { %v3957_v60 = vpop.f32.mrf.mxu0  ;;  %v4937_v30 = vpop.f32.mrf.mxu1 }
 0x28e   : > { %4718 = vst [vmem:[%s6347_s28 + $0x230] sm:$0xff] %v3860_v4  ;;  %v4105_v62 = vadd.f32 %v4937_v30, %v3948_v15  ;;  %v3958_v32 = vadd.f32 %v4829_v22, %v3957_v60 }
 0x28f   : > { %v4923_v59 = vpop.f32.mrf.mxu0  ;;  %v4098_v61 = vpop.f32.mrf.mxu1 }
 0x290   : > { %v4099_v0 = vadd.f32 %v4098_v61, %v3938_v9  ;;  %v3988_v46 = vadd.f32 %v4923_v59, %v4829_v22 }
 0x291   : > { %v3977_v27 = vpop.f32.mrf.mxu0  ;;  %v4940_v35 = vpop.f32.mrf.mxu1 }
 0x292   : > { %v4117_v47 = vadd.f32 %v4940_v35, %v3968_v54  ;;  %v3978_v19 = vadd.f32 %v4829_v22, %v3977_v27 }
 0x293   : > { %v4926_v13 = vpop.f32.mrf.mxu0  ;;  %v4110_v38 = vpop.f32.mrf.mxu1 }
 0x294   : > { %v4111_v53 = vadd.f32 %v4110_v38, %v3958_v32  ;;  %v4008_v37 = vadd.f32 %v4926_v13, %v4829_v22 }
 0x295   : > { %v3997_v29 = vpop.f32.mrf.mxu0  ;;  %v4943_v11 = vpop.f32.mrf.mxu1 }
 0x296   : > { %v4129_v45 = vadd.f32 %v4943_v11, %v3988_v46  ;;  %v3998_v60 = vadd.f32 %v4829_v22, %v3997_v29 }
 0x297   : > { %v4957_v18 = vpop.f32.mrf.mxu0  ;;  %v4122_v58 = vpop.f32.mrf.mxu1 }
 0x298   : > { %v4228_v17 = vadd.f32 %v4957_v18, %v4105_v62  ;;  %v4123_v1 = vadd.f32 %v4122_v58, %v3978_v19 }
 0x299   : > { %v4220_v52 = vpop.f32.mrf.mxu0  ;;  %v4946_v31 = vpop.f32.mrf.mxu1 }
 0x29a   : > { %v4221_v36 = vadd.f32 %v4220_v52, %v4099_v0  ;;  %v4141_v30 = vadd.f32 %v4946_v31, %v4008_v37 }
 0x29b   : > { %v4960_v41 = vpop.f32.mrf.mxu0  ;;  %v4134_v16 = vpop.f32.mrf.mxu1 }
 0x29c   : > { %v4242_v42 = vadd.f32 %v4960_v41, %v4117_v47  ;;  %v4135_v11 = vadd.f32 %v4134_v16, %v3998_v60 }
 0x29d   : > { %v4234_v40 = vpop.f32.mrf.mxu0  ;;  %v4977_v23 = vpop.f32.mrf.mxu1 }
 0x29e   : > { %v4355_v28 = vadd.f32 %v4977_v23, %v4228_v17  ;;  %v4235_v21 = vadd.f32 %v4234_v40, %v4111_v53 }
 0x29f   : > { %v4963_v8 = vpop.f32.mrf.mxu0  ;;  %v4346_v2 = vpop.f32.mrf.mxu1 }
 0x2a0   : > { %v4347_v3 = vadd.f32 %v4346_v2, %v4221_v36  ;;  %v4256_v49 = vadd.f32 %v4963_v8, %v4129_v45 }
 0x2a1   : > { %v4248_v56 = vpop.f32.mrf.mxu0  ;;  %v4980_v20 = vpop.f32.mrf.mxu1 }
 0x2a2   : > { %v4371_v26 = vadd.f32 %v4980_v20, %v4242_v42  ;;  %v4249_v27 = vadd.f32 %v4248_v56, %v4123_v1 }
 0x2a3   : > { %v4966_v10 = vpop.f32.mrf.mxu0  ;;  %v4362_v6 = vpop.f32.mrf.mxu1 }
 0x2a4   : > { %v4363_v39 = vadd.f32 %v4362_v6, %v4235_v21  ;;  %v4270_v52 = vadd.f32 %v4966_v10, %v4141_v30 }
 0x2a5   : > { %v4262_v33 = vpop.f32.mrf.mxu0  ;;  %v4983_v48 = vpop.f32.mrf.mxu1 }
 0x2a6   : > { %v4387_v35 = vadd.f32 %v4983_v48, %v4256_v49  ;;  %v4263_v23 = vadd.f32 %v4262_v33, %v4135_v11 }
 0x2a7   : > { %v4997_v63 = vpop.f32.mrf.mxu0  ;;  %v4378_v50 = vpop.f32.mrf.mxu1 }
 0x2a8   : > { %v4492_v5 = vadd.f32 %v4997_v63, %v4355_v28  ;;  %v4379_v41 = vadd.f32 %v4378_v50, %v4249_v27 }
 0x2a9   : > { %v4485_v43 = vpop.f32.mrf.mxu0  ;;  %v4986_v25 = vpop.f32.mrf.mxu1 }
 0x2aa   : > { %v4486_v51 = vadd.f32 %v4485_v43, %v4347_v3  ;;  %v4403_v22 = vadd.f32 %v4986_v25, %v4270_v52 }
 0x2ab   : > { %v5000_v14 = vpop.f32.mrf.mxu0  ;;  %v4394_v55 = vpop.f32.mrf.mxu1 }
 0x2ac   : > { %v4504_v24 = vadd.f32 %v5000_v14, %v4371_v26  ;;  %v4395_v20 = vadd.f32 %v4394_v55, %v4263_v23 }
 0x2ad   : > { %v4497_v34 = vpop.f32.mrf.mxu0  ;;  %v5017_v44 = vpop.f32.mrf.mxu1 }
 0x2ae   : > { %v4609_v7 = vadd.f32 %v5017_v44, %v4492_v5  ;;  %v4498_v13 = vadd.f32 %v4497_v34, %v4363_v39 }
 0x2af   : > { %v5003_v57 = vpop.f32.mrf.mxu0  ;;  %v4602_v12 = vpop.f32.mrf.mxu1 }
 0x2b0   : > { %4665 = vst [vmem:[%s6347_s28 + $0x88] sm:$0xff] %v4609_v7  ;;  %v4603_v4 = vadd.f32 %v4602_v12, %v4486_v51  ;;  %v4516_v40 = vadd.f32 %v5003_v57, %v4387_v35 }
 0x2b1   : > { %v4509_v59 = vpop.f32.mrf.mxu0  ;;  %v5020_v61 = vpop.f32.mrf.mxu1 }
 0x2b2   : > { %4656 = vst [vmem:[%s6347_s28 + $0x40] sm:$0xff] %v4603_v4  ;;  %v4621_v38 = vadd.f32 %v5020_v61, %v4504_v24  ;;  %v4510_v8 = vadd.f32 %v4509_v59, %v4379_v41 }
 0x2b3   : > { %v5006_v18 = vpop.f32.mrf.mxu0  ;;  %v4614_v58 = vpop.f32.mrf.mxu1 }
 0x2b4   : > { %4683 = vst [vmem:[%s6347_s28 + $0x118] sm:$0xff] %v4621_v38  ;;  %v4615_v29 = vadd.f32 %v4614_v58, %v4498_v13  ;;  %v4528_v15 = vadd.f32 %v5006_v18, %v4403_v22 }
 0x2b5   : > { %v5023_v31 = vpop.f32.mrf.mxu1  ;;  %v4521_v56 = vpop.f32.mrf.mxu0 }
 0x2b6   : > { %4674 = vst [vmem:[%s6347_s28 + $0xd0] sm:$0xff] %v4615_v29  ;;  %v4633_v2 = vadd.f32 %v5023_v31, %v4516_v40  ;;  %v4522_v48 = vadd.f32 %v4521_v56, %v4395_v20 }
 0x2b7   : > { %v4626_v16 = vpop.f32.mrf.mxu1 }
 0x2b8   : > { %4701 = vst [vmem:[%s6347_s28 + $0x1a8] sm:$0xff] %v4633_v2  ;;  %v4627_v10 = vadd.f32 %v4626_v16, %v4510_v8 }
 0x2b9   : > { %v5026_v6 = vpop.f32.mrf.mxu1 }
 0x2ba   : > { %4692 = vst [vmem:[%s6347_s28 + $0x160] sm:$0xff] %v4627_v10  ;;  %v4645_v33 = vadd.f32 %v5026_v6, %v4528_v15 }
 0x2bb   : > { %v4638_v9 = vpop.f32.mrf.mxu1 }
 0x2bc   : > { %4719 = vst [vmem:[%s6347_s28 + $0x238] sm:$0xff] %v4645_v33  ;;  %v4639_v54 = vadd.f32 %v4638_v9, %v4522_v48 }
 0x2be   : > { %4710 = vst [vmem:[%s6347_s28 + $0x1f0] sm:$0xff] %v4639_v54 }
 0x2bf   : > { %5160 = shalt.err (!%p5157_p4)
}
 0x2c0   : > { %s5161_s11 = scalar_lea.hbm %s7371_s6, 9216  ;;  %s5165_s20 = scalar_lea.hbm %s7422_s3, 36864 }
 0x2c1   : > { %p5162_p7 = scmp.ne.s32.totalorder %s7371_s6, %s5161_s11  ;;  %p5166_p9 = scmp.lt.s32.totalorder %s7371_s6, %s7422_s3 }
 0x2c2   : > { %p5167_p12 = scmp.lt.s32.totalorder %s5165_s20, %s5161_s11 }
 0x2c3   : > { %p5163_p13 = pnand %p5162_p7, %p5283_p5 }
 0x2c4   : > { %p5168_p10 = por %p5167_p12, %p5166_p9 }
 0x2c5   : > { %p5164_p8 = pneg %p5163_p13 }
 0x2c7   : > { %p5169_p11 = pnand %p5168_p10, %p5164_p8 }
 0x2c9   : > { %5172 = shalt.err (!%p5169_p11)
}
 0x2ca   : > { %s5223_s26 = smov 1152   ;;  %s5224_s27 = smov 72  }
 0x2cb   : > { %5037 = dma.vmem_to_hbm [thread:$0]  (%p5283_p5), %s7373_s30, 9216, %s7371_s6, %s7379_s16, %s5223_s26, %s5223_s26, %s5224_s27  }
 0x2cc PF: > { %p5054_p0 = scmp.ge.s32.totalorder %s5215_s15, 2  ;;  %s4750_s28 = sand.u32 1, %s5203_s12  }
 0x2cd   : > { %s4751_s29 = scalar_lea.sflag [#allocation4], %s4750_s28 }
 0x2ce   : > { %p5047_p1 = pnand %p5054_p0, %p5287_p6 }
 0x2d0   : > { %p5048_p3 = pneg %p5047_p1 }
 0x2d2   : > { %5198 = dma.done.wait (%p5048_p3), %s4751_s29, 9216  }
 0x2d3   : > { %5200 = vsyncadd (%p5048_p3), %s4751_s29, 4294958080  ;;  %p15_p2 = scmp.ge.s32.totalorder %s5270_s18, 6   ;;  %s7829_s12 = smov %s5207_s13 }
 0x2d4   : > { %s7830_s13 = smov %s5211_s14  ;;  %s7831_s14 = smov %s5281_s21 }
 0x2d5   : > { %s7832_s15 = smov %s5270_s18  ;;  %17 = sbr.rel (!%p15_p2) target bundleno = 5 (0x5), region = 76 }
 0x2da   :  { %4756 = vsyncpa [#allocation3], 1 }
 0x2db   :  { %4758 = vsyncpa [#allocation3 + $0x1], 1 }
 0x2dc   :  { %4759 = vsyncpa [#allocation6], 1 }
 0x2dd   :  { %4760 = vsyncpa [#allocation4], 1 }
 0x2de   :  { %4762 = vsyncpa [#allocation4 + $0x1], 1 }

</bundles_post_ra>
